<compile_context>
chip_gen: v7x
topology: tpu7x:2x2x1
jax: 0.10.0
libtpu: 0.0.40
codegen_flags: <defaults>
</compile_context>

<pallas_src>
import math

import jax
import jax.numpy as jnp
from jax import lax
from jax.experimental import pallas as pl
from jax.experimental.pallas import tpu as pltpu

SQRT2 = math.sqrt(2.0)
SQRT_HALF = math.sqrt(0.5)
LANE = 128


def _round_up(v, m):
    return ((v + m - 1) // m) * m


def _block_kernel(x_ref, wc_ref, bc_ref, w0_ref, b0_ref, ws_ref, w1_ref, b1_ref,
                  o_ref, pad_ref):
    # x_ref  : (1, H, W, Cin)   f32
    # wc_ref : (Cin, Ctp)       bf16   (weight gain * sqrt(2) folded in)
    # bc_ref : (1, Ctp)         f32    (* sqrt(2) folded in)
    # w0_ref : (9*Ctp, Ctp)     bf16   im2col layout (ky, kx, cin), gain*sqrt(.5) folded in
    # b0_ref : (1, Ctp)         f32
    # ws_ref : (Ctp, Cop)       bf16
    # w1_ref : (9*Ctp, Cop)     bf16
    # b1_ref : (1, Cop)         f32
    # o_ref  : (1, H*W, Cop)    f32    lane-dense output slab (Cop is a multiple of 128)
    # pad_ref: (H+2, W+2, Ctp)  f32    scratch: zero halo, interior overwritten per conv
    H = x_ref.shape[1]
    W = x_ref.shape[2]
    Cin = x_ref.shape[3]
    Ctp = wc_ref.shape[1]

    # Zero only the 1-pixel halo, once (scratch persists across grid steps; the interior is
    # fully overwritten before each 3x3 conv, so no re-zeroing is ever needed).
    @pl.when(pl.program_id(0) == 0)
    def _():
        pad_ref[0:1, :, :] = jnp.zeros((1, W + 2, Ctp), pad_ref.dtype)
        pad_ref[H + 1:H + 2, :, :] = jnp.zeros((1, W + 2, Ctp), pad_ref.dtype)
        pad_ref[:, 0:1, :] = jnp.zeros((H + 2, 1, Ctp), pad_ref.dtype)
        pad_ref[:, W + 1:W + 2, :] = jnp.zeros((H + 2, 1, Ctp), pad_ref.dtype)

    def conv3x3(rows_f32, w_ref, b_ref):
        # rows_f32: (H*W, Ctp) f32 -> (H*W, Co) f32 via a single fused im2col matmul.
        # Only 3 column-shifted (sublane) views are built; row shifts are contiguous slices.
        pad_ref[1:H + 1, 1:W + 1, :] = rows_f32.reshape(H, W, Ctp)
        p = pad_ref[...]
        cols = jnp.concatenate(
            [p[:, 0:W, :], p[:, 1:W + 1, :], p[:, 2:W + 2, :]], axis=-1)     # (H+2, W, 3*Ctp)
        taps = jnp.concatenate(
            [cols[0:H], cols[1:H + 1], cols[2:H + 2]], axis=-1)              # (H, W, 9*Ctp)
        im2col = taps.reshape(H * W, 9 * Ctp).astype(w_ref.dtype)            # bf16 MXU operand
        return jnp.dot(im2col, w_ref[...],
                       preferred_element_type=jnp.float32) + b_ref[...]

    # ---- conv_compress: 1x1 conv + bias + lrelu (sqrt(2) act gain pre-folded) ----
    xin = x_ref[0].reshape(H * W, Cin).astype(wc_ref.dtype)
    h = jnp.dot(xin, wc_ref[...], preferred_element_type=jnp.float32) + bc_ref[...]
    h = jnp.where(h >= 0.0, h, 0.2 * h)

    # ---- conv0 (3x3) + residual add (sqrt(0.5) folded into w0/b0) ----
    xres = h + conv3x3(h, w0_ref, b0_ref)

    # ---- skip (1x1, no bias) and conv1 (3x3); gains folded into ws / w1,b1 ----
    ys = jnp.dot(xres.astype(ws_ref.dtype), ws_ref[...],
                 preferred_element_type=jnp.float32)
    y1 = conv3x3(xres, w1_ref, b1_ref)

    o_ref[0] = (y1 + ys).astype(o_ref.dtype)


def init_params(key, in_channels, tmp_channels, out_channels):
    """Same init as the PyTorch module: weights ~ N(0,1), biases = 0 (skip has no bias)."""
    k_c, k_0, k_1, k_s = jax.random.split(key, 4)
    return {
        # OIHW, like torch
        "wc": jax.random.normal(k_c, (tmp_channels, in_channels, 1, 1), jnp.float32),
        "bc": jnp.zeros((tmp_channels,), jnp.float32),
        "w0": jax.random.normal(k_0, (tmp_channels, tmp_channels, 3, 3), jnp.float32),
        "b0": jnp.zeros((tmp_channels,), jnp.float32),
        "w1": jax.random.normal(k_1, (out_channels, tmp_channels, 3, 3), jnp.float32),
        "b1": jnp.zeros((out_channels,), jnp.float32),
        "ws": jax.random.normal(k_s, (out_channels, tmp_channels, 1, 1), jnp.float32),
    }


@jax.jit
def depth_prediction_block(x_nchw, params):
    """x_nchw: (N, Cin, R, R) float32 -> (N, Cout, R, R) float32."""
    x_nchw = x_nchw.astype(jnp.float32)
    N, Cin, H, W = x_nchw.shape
    Ct = params["w0"].shape[0]
    Cout = params["w1"].shape[0]
    Ctp = _round_up(Ct, LANE)      # lane-pad channel dims (exact: padded channels stay zero)
    Cop = _round_up(Cout, LANE)

    x = jnp.transpose(x_nchw, (0, 2, 3, 1))  # NHWC

    # StyleGAN2 runtime weight gains with the activation gains folded in
    # (lrelu is positively homogeneous, so sqrt(2) can be folded into wc/bc).
    gc = SQRT2 / math.sqrt(Cin)
    g0 = SQRT_HALF / math.sqrt(Ct * 9)
    g1 = SQRT_HALF / math.sqrt(Ct * 9)
    gs = SQRT_HALF / math.sqrt(Ct)

    wc = jnp.pad((params["wc"][:, :, 0, 0] * gc).T, ((0, 0), (0, Ctp - Ct)))
    bc = jnp.pad(params["bc"] * SQRT2, (0, Ctp - Ct)).reshape(1, Ctp)
    w0 = jnp.pad(jnp.transpose(params["w0"] * g0, (2, 3, 1, 0)),           # (ky,kx,cin,cout)
                 ((0, 0), (0, 0), (0, Ctp - Ct), (0, Ctp - Ct))).reshape(9 * Ctp, Ctp)
    b0 = jnp.pad(params["b0"] * SQRT_HALF, (0, Ctp - Ct)).reshape(1, Ctp)
    ws = jnp.pad((params["ws"][:, :, 0, 0] * gs).T, ((0, Ctp - Ct), (0, Cop - Cout)))
    w1 = jnp.pad(jnp.transpose(params["w1"] * g1, (2, 3, 1, 0)),
                 ((0, 0), (0, 0), (0, Ctp - Ct), (0, Cop - Cout))).reshape(9 * Ctp, Cop)
    b1 = jnp.pad(params["b1"] * SQRT_HALF, (0, Cop - Cout)).reshape(1, Cop)

    # bf16 matmul operands (f32 accumulation in-kernel) for the v6e/v7x MXU fast path.
    wc = wc.astype(jnp.bfloat16)
    w0 = w0.astype(jnp.bfloat16)
    ws = ws.astype(jnp.bfloat16)
    w1 = w1.astype(jnp.bfloat16)

    def const_spec(shape):
        return pl.BlockSpec(shape, lambda n, _nd=len(shape): (0,) * _nd)

    # VMEM budget: actual buffer plan with headroom, capped under v7x's 64 MiB physical VMEM.
    bytes_plan = (
        2 * 4 * H * W * Cin                                                   # x block (x2 bufs)
        + 2 * 4 * H * W * Cop                                                 # out block (x2 bufs)
        + 2 * 2 * (Cin * Ctp + 9 * Ctp * Ctp + Ctp * Cop + 9 * Ctp * Cop)     # bf16 weights (x2)
        + 2 * 4 * (2 * Ctp + Cop)                                             # f32 biases (x2)
        + 4 * (H + 2) * (W + 2) * Ctp                                         # pad scratch
        + (4 + 2) * H * W * 9 * Ctp                                           # im2col temps
    )
    vmem_limit = int(min(64 << 20, max(32 << 20, 2 * bytes_plan)))

    out = pl.pallas_call(
        _block_kernel,
        out_shape=jax.ShapeDtypeStruct((N, H * W, Cop), jnp.float32),
        grid_spec=pltpu.PrefetchScalarGridSpec(
            num_scalar_prefetch=0,
            grid=(N,),
            in_specs=[
                pl.BlockSpec((1, H, W, Cin), lambda n: (n, 0, 0, 0)),
                const_spec((Cin, Ctp)),
                const_spec((1, Ctp)),
                const_spec((9 * Ctp, Ctp)),
                const_spec((1, Ctp)),
                const_spec((Ctp, Cop)),
                const_spec((9 * Ctp, Cop)),
                const_spec((1, Cop)),
            ],
            out_specs=pl.BlockSpec((1, H * W, Cop), lambda n: (n, 0, 0)),
            scratch_shapes=[pltpu.VMEM((H + 2, W + 2, Ctp), jnp.float32)],
        ),
        compiler_params=pltpu.CompilerParams(
            dimension_semantics=("parallel",),
            vmem_limit_bytes=vmem_limit),
    )(x, wc, bc, w0, b0, ws, w1, b1)

    out = out[:, :, :Cout].reshape(N, H, W, Cout)   # drop lane padding
    return jnp.transpose(out, (0, 3, 1, 2))          # back to NCHW


def _reference(x_nchw, params):
    """Pure-JAX f32 reference of the PyTorch forward (NCHW), for validation."""
    Cin = x_nchw.shape[1]
    Ct = params["w0"].shape[0]

    def conv(x, w, pad):
        return lax.conv_general_dilated(
            x, w, window_strides=(1, 1), padding=[(pad, pad), (pad, pad)],
            dimension_numbers=("NCHW", "OIHW", "NCHW"))

    gc = 1.0 / math.sqrt(Cin * 1)
    g0 = 1.0 / math.sqrt(Ct * 9)
    g1 = 1.0 / math.sqrt(Ct * 9)
    gs = 1.0 / math.sqrt(Ct * 1)

    bc = params["bc"][None, :, None, None]
    b0 = params["b0"][None, :, None, None]
    b1 = params["b1"][None, :, None, None]

    h = conv(x_nchw, params["wc"] * gc, 0) + bc
    h = jnp.where(h >= 0.0, h, 0.2 * h) * SQRT2
    y0 = (conv(h, params["w0"] * g0, 1) + b0) * SQRT_HALF
    xres = h + y0
    ys = conv(xres, params["ws"] * gs, 0) * SQRT_HALF
    y1 = (conv(xres, params["w1"] * g1, 1) + b1) * SQRT_HALF
    return y1 + ys


if __name__ == "__main__":
    # Small shapes consistent with the module: NCHW input [N, in_channels, res, res].
    batch = 2
    in_channels = 8
    tmp_channels = 16
    out_channels = 16
    resolution = 16

    key = jax.random.PRNGKey(0)
    k_x, k_p = jax.random.split(key)
    x = jax.random.normal(k_x, (batch, in_channels, resolution, resolution), jnp.float32)
    params = init_params(k_p, in_channels, tmp_channels, out_channels)

    out = jax.block_until_ready(depth_prediction_block(x, params))
    ref = jax.block_until_ready(_reference(x, params))

    assert out.shape == (batch, out_channels, resolution, resolution)
    assert out.dtype == jnp.float32
    # bf16 MXU operands with f32 accumulation -> relaxed tolerance vs the pure-f32 reference.
    if not jnp.allclose(out, ref, rtol=3e-2, atol=3e-2):
        raise AssertionError("Pallas kernel output does not match reference")

    print("KERNEL_OK")
</pallas_src>

<mosaic_0001>
module attributes {stable_mosaic.version = 11 : i64} {
  func.func @_block_kernel(%arg0: i32, %arg1: memref<1x16x16x8xf32, #tpu.memory_space<vmem>>, %arg2: memref<8x128xbf16, #tpu.memory_space<vmem>>, %arg3: memref<1x128xf32, #tpu.memory_space<vmem>>, %arg4: memref<1152x128xbf16, #tpu.memory_space<vmem>>, %arg5: memref<1x128xf32, #tpu.memory_space<vmem>>, %arg6: memref<128x128xbf16, #tpu.memory_space<vmem>>, %arg7: memref<1152x128xbf16, #tpu.memory_space<vmem>>, %arg8: memref<1x128xf32, #tpu.memory_space<vmem>>, %arg9: memref<1x256x128xf32, #tpu.memory_space<vmem>>, %arg10: memref<18x18x128xf32, #tpu.memory_space<vmem>>) attributes {dimension_semantics = [#tpu.dimension_semantics<parallel>], iteration_bounds = array<i64: 2>, scalar_prefetch = 0 : i64, scratch_operands = 1 : i64, tpu.core_type = #tpu.core_type<tc>, window_params = [{transform_indices = @transform_0, window_bounds = array<i64: 1, 16, 16, 8>}, {pipeline_mode = #tpu.pipeline_mode<synchronous>, transform_indices = @transform_1, window_bounds = array<i64: 8, 128>}, {pipeline_mode = #tpu.pipeline_mode<synchronous>, transform_indices = @transform_2, window_bounds = array<i64: 1, 128>}, {pipeline_mode = #tpu.pipeline_mode<synchronous>, transform_indices = @transform_3, window_bounds = array<i64: 1152, 128>}, {pipeline_mode = #tpu.pipeline_mode<synchronous>, transform_indices = @transform_4, window_bounds = array<i64: 1, 128>}, {pipeline_mode = #tpu.pipeline_mode<synchronous>, transform_indices = @transform_5, window_bounds = array<i64: 128, 128>}, {pipeline_mode = #tpu.pipeline_mode<synchronous>, transform_indices = @transform_6, window_bounds = array<i64: 1152, 128>}, {pipeline_mode = #tpu.pipeline_mode<synchronous>, transform_indices = @transform_7, window_bounds = array<i64: 1, 128>}, {transform_indices = @transform_8, window_bounds = array<i64: 1, 256, 128>}]} {
    %c0_i32 = arith.constant 0 : i32
    %0 = arith.cmpi eq, %arg0, %c0_i32 : i32
    %1 = arith.extui %0 : i1 to i32
    %c0_i32_0 = arith.constant 0 : i32
    %2 = arith.cmpi ne, %1, %c0_i32_0 : i32
    scf.if %2 {
      %cst_37 = arith.constant 0.000000e+00 : f32
      %61 = vector.broadcast %cst_37 : f32 to vector<1x18x128xf32>
      %c0_38 = arith.constant 0 : index
      %c0_39 = arith.constant 0 : index
      %c0_40 = arith.constant 0 : index
      %62 = vector.load %arg10[%c0_38, %c0_39, %c0_40] : memref<18x18x128xf32, #tpu.memory_space<vmem>>, vector<1x18x128xf32>
      tpu.vector_store %arg10[%c0_38, %c0_39, %c0_40], %61 {strides = array<i32>} : memref<18x18x128xf32, #tpu.memory_space<vmem>>, vector<1x18x128xf32>,
      %cst_41 = arith.constant 0.000000e+00 : f32
      %63 = vector.broadcast %cst_41 : f32 to vector<1x18x128xf32>
      %c17 = arith.constant 17 : index
      %c0_42 = arith.constant 0 : index
      %c0_43 = arith.constant 0 : index
      %64 = vector.load %arg10[%c17, %c0_42, %c0_43] : memref<18x18x128xf32, #tpu.memory_space<vmem>>, vector<1x18x128xf32>
      tpu.vector_store %arg10[%c17, %c0_42, %c0_43], %63 {strides = array<i32>} : memref<18x18x128xf32, #tpu.memory_space<vmem>>, vector<1x18x128xf32>,
      %cst_44 = arith.constant 0.000000e+00 : f32
      %65 = vector.broadcast %cst_44 : f32 to vector<18x1x128xf32>
      %c0_45 = arith.constant 0 : index
      %c0_46 = arith.constant 0 : index
      %c0_47 = arith.constant 0 : index
      %66 = vector.load %arg10[%c0_45, %c0_46, %c0_47] : memref<18x18x128xf32, #tpu.memory_space<vmem>>, vector<18x1x128xf32>
      tpu.vector_store %arg10[%c0_45, %c0_46, %c0_47], %65 {strides = array<i32>} : memref<18x18x128xf32, #tpu.memory_space<vmem>>, vector<18x1x128xf32>,
      %cst_48 = arith.constant 0.000000e+00 : f32
      %67 = vector.broadcast %cst_48 : f32 to vector<18x1x128xf32>
      %c0_49 = arith.constant 0 : index
      %c17_50 = arith.constant 17 : index
      %c0_51 = arith.constant 0 : index
      %68 = vector.load %arg10[%c0_49, %c17_50, %c0_51] : memref<18x18x128xf32, #tpu.memory_space<vmem>>, vector<18x1x128xf32>
      tpu.vector_store %arg10[%c0_49, %c17_50, %c0_51], %67 {strides = array<i32>} : memref<18x18x128xf32, #tpu.memory_space<vmem>>, vector<18x1x128xf32>,
    } else {
    }
    %c0 = arith.constant 0 : index
    %c0_1 = arith.constant 0 : index
    %c0_2 = arith.constant 0 : index
    %c0_3 = arith.constant 0 : index
    %3 = vector.load %arg1[%c0, %c0_1, %c0_2, %c0_3] : memref<1x16x16x8xf32, #tpu.memory_space<vmem>>, vector<1x16x16x8xf32>
    %4 = vector.shape_cast %3 : vector<1x16x16x8xf32> to vector<16x16x8xf32>
    %5 = vector.shape_cast %4 : vector<16x16x8xf32> to vector<256x8xf32>
    %6 = arith.truncf %5 : vector<256x8xf32> to vector<256x8xbf16>
    %c0_4 = arith.constant 0 : index
    %c0_5 = arith.constant 0 : index
    %7 = vector.load %arg2[%c0_4, %c0_5] : memref<8x128xbf16, #tpu.memory_space<vmem>>, vector<8x128xbf16>
    %cst = arith.constant dense<0.000000e+00> : vector<256x128xf32>
    %8 = tpu.matmul %6, %7, %cst {dimension_numbers = #tpu.dot_dimension_numbers<[1], [0], [0], [1], [0, 0, 1, 1], [], []>} : vector<256x8xbf16>, vector<8x128xbf16>, vector<256x128xf32> -> vector<256x128xf32>
    %c0_6 = arith.constant 0 : index
    %c0_7 = arith.constant 0 : index
    %9 = vector.load %arg3[%c0_6, %c0_7] : memref<1x128xf32, #tpu.memory_space<vmem>>, vector<1x128xf32>
    %10 = vector.broadcast %9 : vector<1x128xf32> to vector<256x128xf32>
    %11 = arith.addf %8, %10 : vector<256x128xf32>
    %cst_8 = arith.constant 0.000000e+00 : f32
    %12 = vector.broadcast %cst_8 : f32 to vector<256x128xf32>
    %13 = arith.cmpf oge, %11, %12 : vector<256x128xf32>
    %cst_9 = arith.constant 2.000000e-01 : f32
    %14 = vector.broadcast %cst_9 : f32 to vector<256x128xf32>
    %15 = arith.mulf %14, %11 : vector<256x128xf32>
    %16 = arith.select %13, %11, %15 : vector<256x128xi1>, vector<256x128xf32>
    %17 = vector.shape_cast %16 : vector<256x128xf32> to vector<16x16x128xf32>
    %c1 = arith.constant 1 : index
    %c1_10 = arith.constant 1 : index
    %c0_11 = arith.constant 0 : index
    %18 = vector.load %arg10[%c1, %c1_10, %c0_11] : memref<18x18x128xf32, #tpu.memory_space<vmem>>, vector<16x16x128xf32>
    tpu.vector_store %arg10[%c1, %c1_10, %c0_11], %17 {strides = array<i32>} : memref<18x18x128xf32, #tpu.memory_space<vmem>>, vector<16x16x128xf32>,
    %c0_12 = arith.constant 0 : index
    %c0_13 = arith.constant 0 : index
    %c0_14 = arith.constant 0 : index
    %19 = vector.load %arg10[%c0_12, %c0_13, %c0_14] : memref<18x18x128xf32, #tpu.memory_space<vmem>>, vector<18x18x128xf32>
    %20 = vector.extract_strided_slice %19 {offsets = [0, 0, 0], sizes = [18, 16, 128], strides = [1, 1, 1]} : vector<18x18x128xf32> to vector<18x16x128xf32>
    %21 = vector.extract_strided_slice %19 {offsets = [0, 1, 0], sizes = [18, 16, 128], strides = [1, 1, 1]} : vector<18x18x128xf32> to vector<18x16x128xf32>
    %22 = vector.extract_strided_slice %19 {offsets = [0, 2, 0], sizes = [18, 16, 128], strides = [1, 1, 1]} : vector<18x18x128xf32> to vector<18x16x128xf32>
    %23 = tpu.concatenate %20, %21, %22 in 2 : vector<18x16x128xf32>, vector<18x16x128xf32>, vector<18x16x128xf32> -> vector<18x16x384xf32>
    %24 = vector.extract_strided_slice %23 {offsets = [0, 0, 0], sizes = [16, 16, 384], strides = [1, 1, 1]} : vector<18x16x384xf32> to vector<16x16x384xf32>
    %25 = vector.extract_strided_slice %23 {offsets = [1, 0, 0], sizes = [16, 16, 384], strides = [1, 1, 1]} : vector<18x16x384xf32> to vector<16x16x384xf32>
    %26 = vector.extract_strided_slice %23 {offsets = [2, 0, 0], sizes = [16, 16, 384], strides = [1, 1, 1]} : vector<18x16x384xf32> to vector<16x16x384xf32>
    %27 = tpu.concatenate %24, %25, %26 in 2 : vector<16x16x384xf32>, vector<16x16x384xf32>, vector<16x16x384xf32> -> vector<16x16x1152xf32>
    %28 = vector.shape_cast %27 : vector<16x16x1152xf32> to vector<256x1152xf32>
    %29 = arith.truncf %28 : vector<256x1152xf32> to vector<256x1152xbf16>
    %c0_15 = arith.constant 0 : index
    %c0_16 = arith.constant 0 : index
    %30 = vector.load %arg4[%c0_15, %c0_16] : memref<1152x128xbf16, #tpu.memory_space<vmem>>, vector<1152x128xbf16>
    %cst_17 = arith.constant dense<0.000000e+00> : vector<256x128xf32>
    %31 = tpu.matmul %29, %30, %cst_17 {dimension_numbers = #tpu.dot_dimension_numbers<[1], [0], [0], [1], [0, 0, 1, 1], [], []>} : vector<256x1152xbf16>, vector<1152x128xbf16>, vector<256x128xf32> -> vector<256x128xf32>
    %c0_18 = arith.constant 0 : index
    %c0_19 = arith.constant 0 : index
    %32 = vector.load %arg5[%c0_18, %c0_19] : memref<1x128xf32, #tpu.memory_space<vmem>>, vector<1x128xf32>
    %33 = vector.broadcast %32 : vector<1x128xf32> to vector<256x128xf32>
    %34 = arith.addf %31, %33 : vector<256x128xf32>
    %35 = arith.addf %16, %34 : vector<256x128xf32>
    %36 = arith.truncf %35 : vector<256x128xf32> to vector<256x128xbf16>
    %c0_20 = arith.constant 0 : index
    %c0_21 = arith.constant 0 : index
    %37 = vector.load %arg6[%c0_20, %c0_21] : memref<128x128xbf16, #tpu.memory_space<vmem>>, vector<128x128xbf16>
    %cst_22 = arith.constant dense<0.000000e+00> : vector<256x128xf32>
    %38 = tpu.matmul %36, %37, %cst_22 {dimension_numbers = #tpu.dot_dimension_numbers<[1], [0], [0], [1], [0, 0, 1, 1], [], []>} : vector<256x128xbf16>, vector<128x128xbf16>, vector<256x128xf32> -> vector<256x128xf32>
    %39 = vector.shape_cast %35 : vector<256x128xf32> to vector<16x16x128xf32>
    %c1_23 = arith.constant 1 : index
    %c1_24 = arith.constant 1 : index
    %c0_25 = arith.constant 0 : index
    %40 = vector.load %arg10[%c1_23, %c1_24, %c0_25] : memref<18x18x128xf32, #tpu.memory_space<vmem>>, vector<16x16x128xf32>
    tpu.vector_store %arg10[%c1_23, %c1_24, %c0_25], %39 {strides = array<i32>} : memref<18x18x128xf32, #tpu.memory_space<vmem>>, vector<16x16x128xf32>,
    %c0_26 = arith.constant 0 : index
    %c0_27 = arith.constant 0 : index
    %c0_28 = arith.constant 0 : index
    %41 = vector.load %arg10[%c0_26, %c0_27, %c0_28] : memref<18x18x128xf32, #tpu.memory_space<vmem>>, vector<18x18x128xf32>
    %42 = vector.extract_strided_slice %41 {offsets = [0, 0, 0], sizes = [18, 16, 128], strides = [1, 1, 1]} : vector<18x18x128xf32> to vector<18x16x128xf32>
    %43 = vector.extract_strided_slice %41 {offsets = [0, 1, 0], sizes = [18, 16, 128], strides = [1, 1, 1]} : vector<18x18x128xf32> to vector<18x16x128xf32>
    %44 = vector.extract_strided_slice %41 {offsets = [0, 2, 0], sizes = [18, 16, 128], strides = [1, 1, 1]} : vector<18x18x128xf32> to vector<18x16x128xf32>
    %45 = tpu.concatenate %42, %43, %44 in 2 : vector<18x16x128xf32>, vector<18x16x128xf32>, vector<18x16x128xf32> -> vector<18x16x384xf32>
    %46 = vector.extract_strided_slice %45 {offsets = [0, 0, 0], sizes = [16, 16, 384], strides = [1, 1, 1]} : vector<18x16x384xf32> to vector<16x16x384xf32>
    %47 = vector.extract_strided_slice %45 {offsets = [1, 0, 0], sizes = [16, 16, 384], strides = [1, 1, 1]} : vector<18x16x384xf32> to vector<16x16x384xf32>
    %48 = vector.extract_strided_slice %45 {offsets = [2, 0, 0], sizes = [16, 16, 384], strides = [1, 1, 1]} : vector<18x16x384xf32> to vector<16x16x384xf32>
    %49 = tpu.concatenate %46, %47, %48 in 2 : vector<16x16x384xf32>, vector<16x16x384xf32>, vector<16x16x384xf32> -> vector<16x16x1152xf32>
    %50 = vector.shape_cast %49 : vector<16x16x1152xf32> to vector<256x1152xf32>
    %51 = arith.truncf %50 : vector<256x1152xf32> to vector<256x1152xbf16>
    %c0_29 = arith.constant 0 : index
    %c0_30 = arith.constant 0 : index
    %52 = vector.load %arg7[%c0_29, %c0_30] : memref<1152x128xbf16, #tpu.memory_space<vmem>>, vector<1152x128xbf16>
    %cst_31 = arith.constant dense<0.000000e+00> : vector<256x128xf32>
    %53 = tpu.matmul %51, %52, %cst_31 {dimension_numbers = #tpu.dot_dimension_numbers<[1], [0], [0], [1], [0, 0, 1, 1], [], []>} : vector<256x1152xbf16>, vector<1152x128xbf16>, vector<256x128xf32> -> vector<256x128xf32>
    %c0_32 = arith.constant 0 : index
    %c0_33 = arith.constant 0 : index
    %54 = vector.load %arg8[%c0_32, %c0_33] : memref<1x128xf32, #tpu.memory_space<vmem>>, vector<1x128xf32>
    %55 = vector.broadcast %54 : vector<1x128xf32> to vector<256x128xf32>
    %56 = arith.addf %53, %55 : vector<256x128xf32>
    %57 = arith.addf %56, %38 : vector<256x128xf32>
    %c0_34 = arith.constant 0 : index
    %c0_35 = arith.constant 0 : index
    %c0_36 = arith.constant 0 : index
    %58 = vector.load %arg9[%c0_34, %c0_35, %c0_36] : memref<1x256x128xf32, #tpu.memory_space<vmem>>, vector<1x256x128xf32>
    %59 = vector.shape_cast %58 : vector<1x256x128xf32> to vector<256x128xf32>
    %60 = vector.shape_cast %57 : vector<256x128xf32> to vector<1x256x128xf32>
    tpu.vector_store %arg9[%c0_34, %c0_35, %c0_36], %60 {strides = array<i32>} : memref<1x256x128xf32, #tpu.memory_space<vmem>>, vector<1x256x128xf32>,
    return
  }
  func.func @transform_0(%arg0: i32) -> (i32, i32, i32, i32) {
    %c0_i32 = arith.constant 0 : i32
    %c0_i32_0 = arith.constant 0 : i32
    %c0_i32_1 = arith.constant 0 : i32
    %c0_i32_2 = arith.constant 0 : i32
    return %arg0, %c0_i32, %c0_i32_0, %c0_i32_1 : i32, i32, i32, i32
  }
  func.func @transform_1(%arg0: i32) -> (i32, i32) {
    %c0_i32 = arith.constant 0 : i32
    %c0_i32_0 = arith.constant 0 : i32
    %c0_i32_1 = arith.constant 0 : i32
    return %c0_i32, %c0_i32_0 : i32, i32
  }
  func.func @transform_2(%arg0: i32) -> (i32, i32) {
    %c0_i32 = arith.constant 0 : i32
    %c0_i32_0 = arith.constant 0 : i32
    %c0_i32_1 = arith.constant 0 : i32
    return %c0_i32, %c0_i32_0 : i32, i32
  }
  func.func @transform_3(%arg0: i32) -> (i32, i32) {
    %c0_i32 = arith.constant 0 : i32
    %c0_i32_0 = arith.constant 0 : i32
    %c0_i32_1 = arith.constant 0 : i32
    return %c0_i32, %c0_i32_0 : i32, i32
  }
  func.func @transform_4(%arg0: i32) -> (i32, i32) {
    %c0_i32 = arith.constant 0 : i32
    %c0_i32_0 = arith.constant 0 : i32
    %c0_i32_1 = arith.constant 0 : i32
    return %c0_i32, %c0_i32_0 : i32, i32
  }
  func.func @transform_5(%arg0: i32) -> (i32, i32) {
    %c0_i32 = arith.constant 0 : i32
    %c0_i32_0 = arith.constant 0 : i32
    %c0_i32_1 = arith.constant 0 : i32
    return %c0_i32, %c0_i32_0 : i32, i32
  }
  func.func @transform_6(%arg0: i32) -> (i32, i32) {
    %c0_i32 = arith.constant 0 : i32
    %c0_i32_0 = arith.constant 0 : i32
    %c0_i32_1 = arith.constant 0 : i32
    return %c0_i32, %c0_i32_0 : i32, i32
  }
  func.func @transform_7(%arg0: i32) -> (i32, i32) {
    %c0_i32 = arith.constant 0 : i32
    %c0_i32_0 = arith.constant 0 : i32
    %c0_i32_1 = arith.constant 0 : i32
    return %c0_i32, %c0_i32_0 : i32, i32
  }
  func.func @transform_8(%arg0: i32) -> (i32, i32, i32) {
    %c0_i32 = arith.constant 0 : i32
    %c0_i32_0 = arith.constant 0 : i32
    %c0_i32_1 = arith.constant 0 : i32
    return %arg0, %c0_i32, %c0_i32_0 : i32, i32, i32
  }
}

</mosaic_0001>

<bundles_post_ra>
// kernel: depth_prediction_block.1
= control target key start
LH: loop header
LB: loop body
LE: loop exit
PB: predicated region body
PF: predicated region fallthrough
CT: control target
= control target key end

     0   :  { %s6459_s27 = smov 0   ;;  %s8986_s0 = inlined_call_operand.vmem [shape: f32[2,16,16,8], index: 0, kind: input, shape index: {}]   ;;  %s8987_s1 = inlined_call_operand.vmem [shape: bf16[8,128], index: 1, kind: input, shape index: {}]   ;;  %s8988_s2 = inlined_call_operand.vmem [shape: f32[1,128], index: 2, kind: input, shape index: {}]   ;;  %s8989_s3 = inlined_call_operand.vmem [shape: bf16[1152,128], index: 3, kind: input, shape index: {}]   ;;  %s8990_s4 = inlined_call_operand.vmem [shape: f32[1,128], index: 4, kind: input, shape index: {}]   ;;  %s8991_s5 = inlined_call_operand.vmem [shape: bf16[128,128], index: 5, kind: input, shape index: {}]   ;;  %s8992_s6 = inlined_call_operand.vmem [shape: bf16[1152,128], index: 6, kind: input, shape index: {}]   ;;  %s8993_s7 = inlined_call_operand.vmem [shape: f32[1,128], index: 7, kind: input, shape index: {}]   ;;  %s8994_s8 = inlined_call_operand.vmem [shape: f32[2,256,128], index: 8, kind: output, shape index: {}]  }
   0x1 LB: > { %s4783_s28 = sadd.s32 4294967295, %s6411_s27   ;;  %p4787_p0 = scmp.ge.s32.totalorder %s6411_s27, 1  ;;  %s6411_s27 = sphi %s6459_s27, %s18_s27  }
   0x2   : > { %p262_p1 = scmp.lt.s32.totalorder %s6411_s27, 3 }
   0x4   : > { %p263_p2 = pnand %p4787_p0, %p262_p1 }
   0x6   : > { %266 = sbr.rel (%p263_p2) target bundleno = 1389 (0x56d), region = 52 }
   0xd   : > { %p296_p3 = scmp.lt.s32.totalorder %s4783_s28, 1  ;;  %p4792_p4 = scmp.ne.s32.totalorder %s4783_s28, 0 }
   0xe   : > { %v6413_v0 = vmov (!%p4792_p4), 0.0  }
   0xf   : > { %s297_s29 = scalar_select %p296_p3, %s4783_s28, 1 }
  0x10   : > { %310 = sbr.rel (%p4792_p4) target bundleno = 37 (0x25), region = 56  ;;  %311 = vst [vmem:[#allocation2] sm:$0xff] (!%p4792_p4), %v6413_v0  ;;  %312 = vst [vmem:[#allocation2 + $0x8] sm:$0xff] (!%p4792_p4), %v6413_v0 }
  0x11   : > { %s4966_s30 = sshll.u32 %s297_s29, 8  ;;  %313 = vst [vmem:[#allocation2 + $0x10] sm:$0x3] (!%p4792_p4), %v6413_v0  ;;  %315 = vst [vmem:[#allocation2 + $0x198] sm:$0xff] (!%p4792_p4), %v6413_v0 }
  0x12   : > { %s6470_s11 = scalar_lea.vmem %s8986_s0, %s4966_s30  ;;  %s6475_s14 = scalar_lea.vmem %s8994_s8, %s4966_s30  ;;  %316 = vst [vmem:[#allocation2 + $0x1a0] sm:$0xff] (!%p4792_p4), %v6413_v0  ;;  %317 = vst [vmem:[#allocation2 + $0x1a8] sm:$0x3] (!%p4792_p4), %v6413_v0 }
  0x13   : > { %319 = vst [vmem:[#allocation2 + $0x18] sm:$0x1] (!%p4792_p4), %v6413_v0  ;;  %320 = vst [vmem:[#allocation2 + $0x30] sm:$0x1] (!%p4792_p4), %v6413_v0 }
  0x14   : > { %321 = vst [vmem:[#allocation2 + $0x48] sm:$0x1] (!%p4792_p4), %v6413_v0  ;;  %322 = vst [vmem:[#allocation2 + $0x60] sm:$0x1] (!%p4792_p4), %v6413_v0 }
  0x15   : > { %323 = vst [vmem:[#allocation2 + $0x78] sm:$0x1] (!%p4792_p4), %v6413_v0  ;;  %324 = vst [vmem:[#allocation2 + $0x90] sm:$0x1] (!%p4792_p4), %v6413_v0 }
  0x16   : > { %325 = vst [vmem:[#allocation2 + $0xa8] sm:$0x1] (!%p4792_p4), %v6413_v0  ;;  %326 = vst [vmem:[#allocation2 + $0xc0] sm:$0x1] (!%p4792_p4), %v6413_v0 }
  0x17   : > { %327 = vst [vmem:[#allocation2 + $0xd8] sm:$0x1] %v6413_v0  ;;  %328 = vst [vmem:[#allocation2 + $0xf0] sm:$0x1] %v6413_v0 }
  0x18   : > { %329 = vst [vmem:[#allocation2 + $0x108] sm:$0x1] %v6413_v0  ;;  %330 = vst [vmem:[#allocation2 + $0x120] sm:$0x1] %v6413_v0 }
  0x19   : > { %331 = vst [vmem:[#allocation2 + $0x138] sm:$0x1] %v6413_v0  ;;  %332 = vst [vmem:[#allocation2 + $0x150] sm:$0x1] %v6413_v0 }
  0x1a   : > { %333 = vst [vmem:[#allocation2 + $0x168] sm:$0x1] %v6413_v0  ;;  %334 = vst [vmem:[#allocation2 + $0x180] sm:$0x1] %v6413_v0 }
  0x1b   : > { %337 = vst [vmem:[#allocation2 + $0x29] sm:$0x1] %v6413_v0  ;;  %338 = vst [vmem:[#allocation2 + $0x41] sm:$0x1] %v6413_v0 }
  0x1c   : > { %339 = vst [vmem:[#allocation2 + $0x59] sm:$0x1] %v6413_v0  ;;  %340 = vst [vmem:[#allocation2 + $0x71] sm:$0x1] %v6413_v0 }
  0x1d   : > { %341 = vst [vmem:[#allocation2 + $0x89] sm:$0x1] %v6413_v0  ;;  %342 = vst [vmem:[#allocation2 + $0xa1] sm:$0x1] %v6413_v0 }
  0x1e   : > { %343 = vst [vmem:[#allocation2 + $0xb9] sm:$0x1] %v6413_v0  ;;  %344 = vst [vmem:[#allocation2 + $0xd1] sm:$0x1] %v6413_v0 }
  0x1f   : > { %345 = vst [vmem:[#allocation2 + $0xe9] sm:$0x1] %v6413_v0  ;;  %346 = vst [vmem:[#allocation2 + $0x101] sm:$0x1] %v6413_v0 }
  0x20   : > { %347 = vst [vmem:[#allocation2 + $0x119] sm:$0x1] %v6413_v0  ;;  %348 = vst [vmem:[#allocation2 + $0x131] sm:$0x1] %v6413_v0 }
  0x21   : > { %349 = vst [vmem:[#allocation2 + $0x149] sm:$0x1] %v6413_v0  ;;  %350 = vst [vmem:[#allocation2 + $0x161] sm:$0x1] %v6413_v0 }
  0x22   : > { %351 = vst [vmem:[#allocation2 + $0x179] sm:$0x1] %v6413_v0  ;;  %352 = vst [vmem:[#allocation2 + $0x191] sm:$0x1] %v6413_v0 }
  0x23   : > { %318 = vst [vmem:[#allocation2] sm:$0x1] %v6413_v0  ;;  %335 = vst [vmem:[#allocation2 + $0x198] sm:$0x1] %v6413_v0 }
  0x24   : > { %336 = vst [vmem:[#allocation2 + $0x11] sm:$0x1] %v6413_v0  ;;  %353 = vst [vmem:[#allocation2 + $0x1a9] sm:$0x1] %v6413_v0 }
  0x25 PF: > { %v402_v1 = vld [vmem:[%s8987_s1] sm:$0xf]  ;;  %vm459_vm0 = vcmask 1043456   ;;  %v355_v3 = vld [vmem:[%s6470_s11 + $0x8] sm:$0xff]  ;;  %vm410_vm1 = vcmask 64512   ;;  %v356_v6 = vld [vmem:[%s6470_s11 + $0x10] sm:$0xff] }
  0x26   : > { %v354_v2 = vld [vmem:[%s6470_s11] sm:$0xff]  ;;  %6211 = vmatprep.subr.msk.bf16.mxu0 %vm459_vm0, %v402_v1  ;;  %v461_v4 = vsel %vm459_vm0, %v402_v1, 0  ;;  %v357_v7 = vld [vmem:[%s6470_s11 + $0x18] sm:$0xff]  ;;  %v359_v10 = vld [vmem:[%s6470_s11 + $0x28] sm:$0xff]  ;;  %vm861_vm2 = vcmask 1046528   ;;  %vm988_vm3 = vcmask 1045504  }
  0x27   : > { %v386_v5 = vpack.c.bf16 %v355_v3, %v354_v2  ;;  %v358_v8 = vld [vmem:[%s6470_s11 + $0x20] sm:$0xff]  ;;  %5954 = vmatpush3.bf16.msra.mxu0 %v461_v4  ;;  %v387_v9 = vpack.c.bf16 %v357_v7, %v356_v6  ;;  %v360_v12 = vld [vmem:[%s6470_s11 + $0x30] sm:$0xff]  ;;  %v361_v13 = vld [vmem:[%s6470_s11 + $0x38] sm:$0xff] }
  0x28   : > { %v388_v11 = vpack.c.bf16 %v359_v10, %v358_v8  ;;  %v362_v14 = vld [vmem:[%s6470_s11 + $0x40] sm:$0xff]  ;;  %v363_v15 = vld [vmem:[%s6470_s11 + $0x48] sm:$0xff]  ;;  %v389_v16 = vpack.c.bf16 %v361_v13, %v360_v12  ;;  %v364_v19 = vld [vmem:[%s6470_s11 + $0x50] sm:$0xff] }
  0x29   : > { %5955 = vmatprep.mubr.msk.bf16.mxu0 %vm410_vm1, %v386_v5  ;;  %v390_v17 = vpack.c.bf16 %v363_v15, %v362_v14  ;;  %v6221_v18 = vld [vmem:[%s8989_s3 + $0x40] sm:$0xff]   ;;  %v365_v20 = vld [vmem:[%s6470_s11 + $0x58] sm:$0xff]  ;;  %v367_v23 = vld [vmem:[%s6470_s11 + $0x68] sm:$0xff] }
  0x2a   : > { %5956 = vmatmul.mubr.msk.bf16.vlgmr.msra.gmra.mrb[0].mxu0 %vm410_vm1, %v387_v9  ;;  %v6222_v21 = vld [vmem:[%s8989_s3] sm:$0xff]   ;;  %4985 = vmatprep.subr.bf16.mxu1 %v6221_v18  ;;  %v6223_v24 = vld [vmem:[%s8989_s3 + $0x48] sm:$0xff]   ;;  %v6225_v26 = vld [vmem:[%s8989_s3 + $0x50] sm:$0xff]   ;;  %v391_v28 = vpack.c.bf16 %v365_v20, %v364_v19 }
  0x2b   : > { %5959 = vmatprep.mubr.msk.bf16.mxu0 %vm410_vm1, %v388_v11  ;;  %v366_v22 = vld [vmem:[%s6470_s11 + $0x60] sm:$0xff]  ;;  %4986 = vmatpush3.bf16.msra.mxu1 %v6222_v21  ;;  %v6224_v25 = vld [vmem:[%s8989_s3 + $0x8] sm:$0xff]   ;;  %v6227_v29 = vld [vmem:[%s8989_s3 + $0x10] sm:$0xff]  }
  0x2c   : > { %4987 = vmatprep.subr.bf16.mxu1 %v6223_v24  ;;  %v6517_v27 = vld [vmem:[%s8989_s3 + $0xc0] sm:$0xff]   ;;  %v392_v30 = vpack.c.bf16 %v367_v23, %v366_v22  ;;  %v6229_v32 = vld [vmem:[%s8989_s3 + $0x58] sm:$0xff]   ;;  %v368_v33 = vld [vmem:[%s6470_s11 + $0x70] sm:$0xff] }
  0x2d   : > { %5097 = vmatprep.subr.bf16.mxu0 %v6517_v27  ;;  %v6526_v31 = vld [vmem:[%s8989_s3 + $0x80] sm:$0xff]   ;;  %v369_v34 = vld [vmem:[%s6470_s11 + $0x78] sm:$0xff]  ;;  %v6537_v35 = vld [vmem:[%s8989_s3 + $0xc8] sm:$0xff]  }
  0x2e   : > { %5098 = vmatpush3.bf16.msra.mxu0 %v6526_v31  ;;  %v370_v36 = vld [vmem:[%s6470_s11 + $0x80] sm:$0xff]  ;;  %v371_v37 = vld [vmem:[%s6470_s11 + $0x88] sm:$0xff]  ;;  %v6231_v38 = vld [vmem:[%s8989_s3 + $0x18] sm:$0xff]   ;;  %v393_v42 = vpack.c.bf16 %v369_v34, %v368_v33 }
  0x2f   : > { %4988 = vmatpush3.bf16.msra.mxu1 %v6224_v25  ;;  %v6549_v39 = vld [vmem:[%s8989_s3 + $0x88] sm:$0xff]   ;;  %5099 = vmatprep.subr.bf16.mxu0 %v6537_v35  ;;  %v6233_v40 = vld [vmem:[%s8989_s3 + $0x60] sm:$0xff]   ;;  %v6559_v41 = vld [vmem:[%s8989_s3 + $0xd0] sm:$0xff]   ;;  %v394_v44 = vpack.c.bf16 %v371_v37, %v370_v36 }
  0x30   : > { %4989 = vmatprep.subr.bf16.mxu1 %v6225_v26  ;;  %v6235_v43 = vld [vmem:[%s8989_s3 + $0x20] sm:$0xff]   ;;  %v6568_v45 = vld [vmem:[%s8989_s3 + $0x90] sm:$0xff]   ;;  %v373_v47 = vld [vmem:[%s6470_s11 + $0x98] sm:$0xff] }
  0x31   : > { %v372_v46 = vld [vmem:[%s6470_s11 + $0x90] sm:$0xff]  ;;  %v374_v48 = vld [vmem:[%s6470_s11 + $0xa0] sm:$0xff]  ;;  %v375_v49 = vld [vmem:[%s6470_s11 + $0xa8] sm:$0xff] }
  0x32   : > { %5960 = vmatmul.mubr.msk.bf16.gmra.mrb[4].mxu0 %vm410_vm1, %v389_v16  ;;  %v395_v50 = vpack.c.bf16 %v373_v47, %v372_v46  ;;  %v396_v51 = vpack.c.bf16 %v375_v49, %v374_v48  ;;  %v376_v52 = vld [vmem:[%s6470_s11 + $0xb0] sm:$0xff]  ;;  %v377_v53 = vld [vmem:[%s6470_s11 + $0xb8] sm:$0xff]  ;;  %v378_v54 = vld [vmem:[%s6470_s11 + $0xc0] sm:$0xff] }
  0x33   : > { %5963 = vmatprep.mubr.msk.bf16.mxu0 %vm410_vm1, %v390_v17  ;;  %4990 = vmatpush3.bf16.msra.mxu1 %v6227_v29  ;;  %v379_v55 = vld [vmem:[%s6470_s11 + $0xc8] sm:$0xff]  ;;  %v397_v56 = vpack.c.bf16 %v377_v53, %v376_v52  ;;  %v380_v58 = vld [vmem:[%s6470_s11 + $0xd0] sm:$0xff]  ;;  %v381_v59 = vld [vmem:[%s6470_s11 + $0xd8] sm:$0xff] }
  0x34   : > { %4991 = vmatprep.subr.bf16.mxu1 %v6229_v32  ;;  %5100 = vmatpush3.bf16.msra.mxu0 %v6549_v39  ;;  %v398_v57 = vpack.c.bf16 %v379_v55, %v378_v54  ;;  %v382_v60 = vld [vmem:[%s6470_s11 + $0xe0] sm:$0xff]  ;;  %v383_v61 = vld [vmem:[%s6470_s11 + $0xe8] sm:$0xff]  ;;  %v399_v62 = vpack.c.bf16 %v381_v59, %v380_v58  ;;  %v384_v0 = vld [vmem:[%s6470_s11 + $0xf0] sm:$0xff] }
  0x35   : > { %5101 = vmatprep.subr.bf16.mxu0 %v6559_v41  ;;  %v400_v63 = vpack.c.bf16 %v383_v61, %v382_v60  ;;  %v385_v1 = vld [vmem:[%s6470_s11 + $0xf8] sm:$0xff]  ;;  %v6237_v3 = vld [vmem:[%s8989_s3 + $0x68] sm:$0xff]   ;;  %v6241_v7 = vld [vmem:[%s8989_s3 + $0x70] sm:$0xff]  }
  0x36   : > { %v401_v2 = vpack.c.bf16 %v385_v1, %v384_v0  ;;  %v6238_v4 = vld [vmem:[%s8989_s3 + $0xd8] sm:$0xff]   ;;  %v6239_v5 = vld [vmem:[%s8989_s3 + $0x28] sm:$0xff]   ;;  %v6242_v8 = vld [vmem:[%s8989_s3 + $0xe0] sm:$0xff]  }
  0x37   : > { %4992 = vmatpush3.bf16.msra.mxu1 %v6231_v38  ;;  %v6240_v6 = vld [vmem:[%s8989_s3 + $0x98] sm:$0xff]   ;;  %v6243_v9 = vld [vmem:[%s8989_s3 + $0x30] sm:$0xff]   ;;  %v6244_v10 = vld [vmem:[%s8989_s3 + $0xa0] sm:$0xff]  }
  0x38   : > { %4993 = vmatprep.subr.bf16.mxu1 %v6233_v40  ;;  %5102 = vmatpush3.bf16.msra.mxu0 %v6568_v45  ;;  %v753_v11 = vld [vmem:[#allocation2] sm:$0xff]  ;;  %v754_v12 = vld [vmem:[#allocation2 + $0x8] sm:$0xff]  ;;  %v755_v13 = vld [vmem:[#allocation2 + $0x10] sm:$0x3] }
  0x39   : > { %5103 = vmatprep.subr.bf16.mxu0 %v6238_v4  ;;  %v6245_v14 = vld [vmem:[%s8989_s3 + $0x78] sm:$0xff]   ;;  %v6246_v15 = vld [vmem:[%s8989_s3 + $0xe8] sm:$0xff]   ;;  %v862_v16 = vrot.slane %v753_v11, 1  ;;  %v863_v17 = vrot.slane %v754_v12, 1  ;;  %v865_v18 = vrot.slane %v755_v13, 1  ;;  %v1115_v24 = vpack.c.bf16 %v754_v12, %v753_v11  ;;  %v6249_v25 = vld [vmem:[%s8989_s3 + $0xf0] sm:$0xff]  }
  0x3a   : > { %5964 = vmatmul.mubr.msk.bf16.gmra.mrb[8].mxu0 %vm410_vm1, %v391_v28  ;;  %v6247_v19 = vld [vmem:[%s8989_s3 + $0x38] sm:$0xff]   ;;  %v6248_v20 = vld [vmem:[%s8989_s3 + $0xa8] sm:$0xff]   ;;  %v6250_v26 = vld [vmem:[%s8989_s3 + $0xb0] sm:$0xff]   ;;  %v989_v28 = vrot.slane %v753_v11, 2  ;;  %v990_v29 = vrot.slane %v754_v12, 2 }
  0x3b   : > { %5967 = vmatprep.mubr.msk.bf16.mxu0 %vm410_vm1, %v392_v30  ;;  %4994 = vmatpush3.bf16.msra.mxu1 %v6235_v43  ;;  %v864_v21 = vsel %vm861_vm2, %v862_v16, %v863_v17  ;;  %v866_v22 = vsel %vm861_vm2, %v863_v17, %v865_v18  ;;  %v992_v30 = vrot.slane %v755_v13, 2  ;;  %v6251_v32 = vld [vmem:[%s8989_s3 + $0xf8] sm:$0xff]   ;;  %v6664_v36 = vld [vmem:[%s8988_s2] ss:$0 sm:$0xff] }
  0x3c   : > { %4995 = vmatprep.subr.bf16.mxu1 %v6237_v3  ;;  %5104 = vmatpush3.bf16.msra.mxu0 %v6240_v6  ;;  %v1116_v23 = vpack.c.bf16 %v866_v22, %v864_v21 }
  0x3d   : > { %5105 = vmatprep.subr.bf16.mxu0 %v6242_v8  ;;  %v6648_v33 = vsel %vm988_vm3, %v990_v29, %v992_v30 }
  0x3e   : > { %1784 = vmatprep.mubr.bf16.mxu1 %v1116_v23 }
  0x3f   : > { %4996 = vmatpush3.bf16.msra.mxu1 %v6239_v5 }
  0x40   : > { %4997 = vmatprep.subr.bf16.mxu1 %v6241_v7  ;;  %5106 = vmatpush3.bf16.msra.mxu0 %v6244_v10 }
  0x41   : > { %5107 = vmatprep.subr.bf16.mxu0 %v6246_v15 }
  0x42   : > { %5968 = vmatmul.mubr.msk.bf16.gmra.mrb[12].mxu0 %vm410_vm1, %v393_v42 }
  0x43   : > { %5971 = vmatprep.mubr.msk.bf16.mxu0 %vm410_vm1, %v394_v44  ;;  %4998 = vmatpush3.bf16.msra.mxu1 %v6243_v9 }
  0x44   : > { %4999 = vmatprep.subr.bf16.mxu1 %v6245_v14  ;;  %5108 = vmatpush3.bf16.msra.mxu0 %v6248_v20 }
  0x45   : > { %5109 = vmatprep.subr.bf16.mxu0 %v6249_v25 }
  0x47   : > { %5000 = vmatpush3.bf16.msra.mxu1 %v6247_v19 }
  0x48   : > { %6131 = vmatprep.subr.bf16.mxu1 %v6517_v27  ;;  %5110 = vmatpush3.bf16.msra.mxu0 %v6250_v26  ;;  %v6252_v27 = vld [vmem:[%s8989_s3 + $0xb8] sm:$0xff]  }
  0x49   : > { %5111 = vmatprep.subr.bf16.mxu0 %v6251_v32 }
  0x4a   : > { %5972 = vmatmul.mubr.msk.bf16.gmra.mrb[16].mxu0 %vm410_vm1, %v395_v50  ;;  %1785 = vmatmul.mubr.bf16.vlgmr.msra.gmra.mrb[0].mxu1 %v1115_v24  ;;  %v6254_v24 = vld [vmem:[%s8989_s3 + $0x180] sm:$0xff]  }
  0x4b   : > { %5975 = vmatprep.mubr.msk.bf16.mxu0 %vm410_vm1, %v396_v51  ;;  %6139 = vmatpush3.bf16.msra.mxu1 %v6526_v31  ;;  %v6651_v31 = vsel %vm988_vm3, %v989_v28, %v990_v29 }
  0x4c   : > { %6132 = vmatprep.subr.bf16.mxu1 %v6537_v35  ;;  %5112 = vmatpush3.bf16.msra.mxu0 %v6252_v27  ;;  %v1117_v34 = vpack.c.bf16 %v6648_v33, %v6651_v31  ;;  %v6253_v35 = vld [vmem:[%s8989_s3 + $0x1c0] sm:$0xff]   ;;  %v6256_v33 = vld [vmem:[%s8989_s3 + $0x188] sm:$0xff]  }
  0x4d   : > { %5321 = vmatprep.subr.bf16.mxu0 %v6253_v35 }
  0x4f   : > { %6140 = vmatpush3.bf16.msra.mxu1 %v6549_v39 }
  0x50   : > { %6133 = vmatprep.subr.bf16.mxu1 %v6559_v41 }
  0x52   : > { %5976 = vmatmul.mubr.msk.bf16.gmra.mrb[20].mxu0 %vm410_vm1, %v397_v56 }
  0x53   : > { %5979 = vmatprep.mubr.msk.bf16.mxu0 %vm410_vm1, %v398_v57  ;;  %6141 = vmatpush3.bf16.msra.mxu1 %v6568_v45 }
  0x54   : > { %6134 = vmatprep.subr.bf16.mxu1 %v6238_v4 }
  0x57   : > { %6142 = vmatpush3.bf16.msra.mxu1 %v6240_v6 }
  0x58   : > { %6135 = vmatprep.subr.bf16.mxu1 %v6242_v8 }
  0x5a   : > { %5980 = vmatmul.mubr.msk.bf16.gmra.mrb[24].mxu0 %vm410_vm1, %v399_v62 }
  0x5b   : > { %5983 = vmatprep.mubr.msk.bf16.mxu0 %vm410_vm1, %v400_v63  ;;  %6143 = vmatpush3.bf16.msra.mxu1 %v6244_v10 }
  0x5c   : > { %6136 = vmatprep.subr.bf16.mxu1 %v6246_v15 }
  0x5f   : > { %6144 = vmatpush3.bf16.msra.mxu1 %v6248_v20 }
  0x60   : > { %6137 = vmatprep.subr.bf16.mxu1 %v6249_v25 }
  0x62   : > { %5984 = vmatmul.mubr.msk.bf16.gmra.mrb[28].mxu0 %vm410_vm1, %v401_v2  ;;  %v6269_v2 = vld [vmem:[%s8989_s3 + $0x140] sm:$0xff]  }
  0x63   : > { %6145 = vmatpush3.bf16.msra.mxu1 %v6250_v26 }
  0x64   : > { %6138 = vmatprep.subr.bf16.mxu1 %v6251_v32  ;;  %v6255_v32 = vld [vmem:[%s8989_s3 + $0x1c8] sm:$0xff]  }
  0x67   : > { %6146 = vmatpush3.bf16.msra.mxu1 %v6252_v27 }
  0x68   : > { %5209 = vmatprep.subr.bf16.mxu1 %v6269_v2 }
  0xfd   : > { %v5957_v37 = vpop.f32.mrb[0].mxu0 }
  0xfe   : > { %v506_v38 = vadd.f32 %v5957_v37, %v6664_v36  ;;  %v497_v39 = vpop.f32.mrb[1].mxu0 }
  0xff   : > { %v498_v40 = vadd.f32 %v6664_v36, %v497_v39  ;;  %v5958_v41 = vpop.f32.mrb[2].mxu0 }
 0x100   : > { %vm626_vm4 = vcmp.ge.f32.partialorder %v506_v38, 0.0  ;;  %v658_v42 = vmul.f32 0.2, %v506_v38  ;;  %v509_v43 = vadd.f32 %v5958_v41, %v6664_v36  ;;  %v500_v44 = vpop.f32.mrb[3].mxu0 }
 0x101   : > { %vm624_vm5 = vcmp.ge.f32.partialorder %v498_v40, 0.0  ;;  %v656_v45 = vmul.f32 0.2, %v498_v40  ;;  %v501_v46 = vadd.f32 %v6664_v36, %v500_v44 }
 0x102   : > { %v690_v47 = vsel %vm626_vm4, %v506_v38, %v658_v42  ;;  %vm627_vm6 = vcmp.ge.f32.partialorder %v509_v43, 0.0  ;;  %v659_v48 = vmul.f32 0.2, %v509_v43 }
 0x103   : > { %723 = vst [vmem:[#allocation2 + $0x31] sm:$0xff] %v690_v47  ;;  %v688_v49 = vsel %vm624_vm5, %v498_v40, %v656_v45  ;;  %vm625_vm7 = vcmp.ge.f32.partialorder %v501_v46, 0.0  ;;  %v657_v50 = vmul.f32 0.2, %v501_v46 }
 0x104   : > { %721 = vst [vmem:[#allocation2 + $0x19] sm:$0xff] %v688_v49  ;;  %v691_v51 = vsel %vm627_vm6, %v509_v43, %v659_v48  ;;  %v6257_v49 = vld [vmem:[%s8989_s3 + $0x1d0] sm:$0xff]  }
 0x105   : > { %724 = vst [vmem:[#allocation2 + $0x39] sm:$0xff] %v691_v51  ;;  %v689_v52 = vsel %vm625_vm7, %v501_v46, %v657_v50  ;;  %v5961_v53 = vpop.f32.mrb[4].mxu0 }
 0x106   : > { %722 = vst [vmem:[#allocation2 + $0x21] sm:$0xff] %v689_v52  ;;  %v522_v54 = vadd.f32 %v5961_v53, %v6664_v36  ;;  %v513_v55 = vpop.f32.mrb[5].mxu0 }
 0x107   : > { %v514_v56 = vadd.f32 %v6664_v36, %v513_v55  ;;  %v5962_v57 = vpop.f32.mrb[6].mxu0 }
 0x108   : > { %vm630_vm8 = vcmp.ge.f32.partialorder %v522_v54, 0.0  ;;  %v662_v58 = vmul.f32 0.2, %v522_v54  ;;  %v525_v59 = vadd.f32 %v5962_v57, %v6664_v36  ;;  %v516_v60 = vpop.f32.mrb[7].mxu0 }
 0x109   : > { %vm628_vm9 = vcmp.ge.f32.partialorder %v514_v56, 0.0  ;;  %v660_v61 = vmul.f32 0.2, %v514_v56  ;;  %v517_v62 = vadd.f32 %v6664_v36, %v516_v60 }
 0x10a   : > { %v694_v63 = vsel %vm630_vm8, %v522_v54, %v662_v58  ;;  %vm631_vm10 = vcmp.ge.f32.partialorder %v525_v59, 0.0  ;;  %v663_v0 = vmul.f32 0.2, %v525_v59  ;;  %v6674_v1 = vld [vmem:[#allocation2 + $0x30] sm:$0xff] }
 0x10b   : > { %727 = vst [vmem:[#allocation2 + $0x61] sm:$0xff] %v694_v63  ;;  %v692_v3 = vsel %vm628_vm9, %v514_v56, %v660_v61  ;;  %vm629_vm11 = vcmp.ge.f32.partialorder %v517_v62, 0.0  ;;  %v661_v4 = vmul.f32 0.2, %v517_v62  ;;  %v756_v5 = vld [vmem:[#allocation2 + $0x18] sm:$0xff]  ;;  %v872_v10 = vrot.slane %v6674_v1, 1 }
 0x10c   : > { %725 = vst [vmem:[#allocation2 + $0x49] sm:$0xff] %v692_v3  ;;  %v695_v6 = vsel %vm631_vm10, %v525_v59, %v663_v0  ;;  %v6679_v7 = vld [vmem:[#allocation2 + $0x38] sm:$0xff]  ;;  %v867_v8 = vrot.slane %v756_v5, 1  ;;  %v6681_v9 = vld [vmem:[#allocation2 + $0x40] sm:$0x3]  ;;  %v994_v11 = vrot.slane %v756_v5, 2 }
 0x10d   : > { %728 = vst [vmem:[#allocation2 + $0x69] sm:$0xff] %v695_v6  ;;  %v693_v12 = vsel %vm629_vm11, %v517_v62, %v661_v4  ;;  %v757_v13 = vld [vmem:[#allocation2 + $0x20] sm:$0xff]  ;;  %v6686_v14 = vpack.c.bf16 %v6679_v7, %v6674_v1  ;;  %v758_v15 = vld [vmem:[#allocation2 + $0x28] sm:$0x3]  ;;  %v873_v16 = vrot.slane %v6679_v7, 1  ;;  %v875_v17 = vrot.slane %v6681_v9, 1 }
 0x10e   : > { %v5965_v18 = vpop.f32.mrb[8].mxu0  ;;  %726 = vst [vmem:[#allocation2 + $0x51] sm:$0xff] %v693_v12  ;;  %v1118_v19 = vpack.c.bf16 %v757_v13, %v756_v5  ;;  %v868_v20 = vrot.slane %v757_v13, 1  ;;  %v870_v21 = vrot.slane %v758_v15, 1  ;;  %v995_v29 = vrot.slane %v757_v13, 2  ;;  %v6258_v61 = vld [vmem:[%s8989_s3 + $0x190] sm:$0xff]  }
 0x10f   : > { %v538_v22 = vadd.f32 %v5965_v18, %v6664_v36  ;;  %v529_v23 = vpop.f32.mrb[9].mxu0  ;;  %v874_v25 = vsel %vm861_vm2, %v872_v10, %v873_v16  ;;  %v876_v26 = vsel %vm861_vm2, %v873_v16, %v875_v17  ;;  %v997_v43 = vrot.slane %v758_v15, 2  ;;  %v6259_v3 = vld [vmem:[%s8989_s3 + $0x1d8] sm:$0xff]  }
 0x110   : > { %v530_v28 = vadd.f32 %v6664_v36, %v529_v23  ;;  %v5966_v30 = vpop.f32.mrb[10].mxu0  ;;  %1945 = vmatprep.mubr.bf16.mxu0 %v1118_v19  ;;  %v869_v27 = vsel %vm861_vm2, %v867_v8, %v868_v20  ;;  %v871_v35 = vsel %vm861_vm2, %v868_v20, %v870_v21  ;;  %v6702_v37 = vpack.c.bf16 %v876_v26, %v874_v25  ;;  %v6260_v17 = vld [vmem:[%s8989_s3 + $0x198] sm:$0xff]   ;;  %v6261_v20 = vld [vmem:[%s8989_s3 + $0x1e0] sm:$0xff]  }
 0x111   : > { %vm634_vm12 = vcmp.ge.f32.partialorder %v538_v22, 0.0  ;;  %v532_v38 = vpop.f32.mrb[11].mxu0  ;;  %1946 = vmatmul.mubr.bf16.vlgmr.msra.gmra.mrb[32].mxu0 %v1117_v34  ;;  %v6707_v39 = vpack.c.bf16 %v871_v35, %v869_v27  ;;  %v666_v40 = vmul.f32 0.2, %v538_v22  ;;  %v996_v42 = vsel %vm988_vm3, %v994_v11, %v995_v29 }
 0x112   : > { %vm632_vm13 = vcmp.ge.f32.partialorder %v530_v28, 0.0  ;;  %v664_v41 = vmul.f32 0.2, %v530_v28  ;;  %1953 = vmatprep.mubr.bf16.mxu0 %v6686_v14  ;;  %v541_v44 = vadd.f32 %v5966_v30, %v6664_v36  ;;  %v533_v45 = vadd.f32 %v6664_v36, %v532_v38  ;;  %5322 = vmatpush3.bf16.msra.mxu0 %v6254_v24  ;;  %v6742_v0 = vld [vmem:[#allocation2 + $0x60] sm:$0xff] }
 0x113   : > { %1792 = vmatprep.mubr.bf16.mxu1 %v6707_v39  ;;  %v698_v31 = vsel %vm634_vm12, %v538_v22, %v666_v40  ;;  %v6717_v46 = vld [vmem:[#allocation2 + $0x48] sm:$0xff]  ;;  %v1000_v47 = vrot.slane %v6679_v7, 2  ;;  %v1002_v48 = vrot.slane %v6681_v9, 2  ;;  %5323 = vmatprep.subr.bf16.mxu0 %v6255_v32  ;;  %v998_v50 = vsel %vm988_vm3, %v995_v29, %v997_v43  ;;  %v6262_v38 = vld [vmem:[%s8989_s3 + $0x1a0] sm:$0xff]  }
 0x114   : > { %v696_v34 = vsel %vm632_vm13, %v530_v28, %v664_v41  ;;  %1793 = vmatmul.mubr.bf16.gmra.mrb[4].mxu1 %v1118_v19  ;;  %731 = vst [vmem:[#allocation2 + $0x91] sm:$0xff] %v698_v31  ;;  %vm635_vm14 = vcmp.ge.f32.partialorder %v541_v44, 0.0  ;;  %v667_v51 = vmul.f32 0.2, %v541_v44  ;;  %vm633_vm15 = vcmp.ge.f32.partialorder %v533_v45, 0.0  ;;  %v6750_v7 = vld [vmem:[#allocation2 + $0x68] sm:$0xff] }
 0x115   : > { %729 = vst [vmem:[#allocation2 + $0x79] sm:$0xff] %v696_v34  ;;  %1800 = vmatprep.mubr.bf16.mxu1 %v6702_v37  ;;  %v665_v52 = vmul.f32 0.2, %v533_v45  ;;  %v6726_v53 = vld [vmem:[#allocation2 + $0x50] sm:$0xff]  ;;  %v6728_v54 = vld [vmem:[#allocation2 + $0x58] sm:$0x3]  ;;  %v6740_v62 = vpack.c.bf16 %v998_v50, %v996_v42  ;;  %v6791_v43 = vpack.c.bf16 %v6750_v7, %v6742_v0 }
 0x116   : > { %v877_v55 = vrot.slane %v6717_v46, 1  ;;  %v699_v56 = vsel %vm635_vm14, %v541_v44, %v667_v51  ;;  %v6733_v57 = vpack.c.bf16 %v6726_v53, %v6717_v46  ;;  %v878_v58 = vrot.slane %v6726_v53, 1  ;;  %v5969_v60 = vpop.f32.mrb[12].mxu0  ;;  %5324 = vmatpush3.bf16.msra.mxu0 %v6256_v33  ;;  %v6755_v10 = vld [vmem:[#allocation2 + $0x70] sm:$0x3]  ;;  %v6263_v40 = vld [vmem:[%s8989_s3 + $0x1e8] sm:$0xff]  }
 0x117   : > { %v880_v59 = vrot.slane %v6728_v54, 1  ;;  %732 = vst [vmem:[#allocation2 + $0x99] sm:$0xff] %v699_v56  ;;  %v697_v63 = vsel %vm633_vm15, %v533_v45, %v665_v52  ;;  %v545_v2 = vpop.f32.mrb[13].mxu0  ;;  %5325 = vmatprep.subr.bf16.mxu0 %v6257_v49  ;;  %v999_v6 = vrot.slane %v6674_v1, 2  ;;  %v554_v11 = vadd.f32 %v5969_v60, %v6664_v36  ;;  %v6265_v60 = vld [vmem:[%s8989_s3 + $0x1f0] sm:$0xff]  }
 0x118   : > { %730 = vst [vmem:[#allocation2 + $0x81] sm:$0xff] %v697_v63  ;;  %v879_v4 = vsel %vm861_vm2, %v877_v55, %v878_v58  ;;  %v5970_v8 = vpop.f32.mrb[14].mxu0  ;;  %v546_v12 = vadd.f32 %v6664_v36, %v545_v2  ;;  %v1003_v1 = vsel %vm988_vm3, %v1000_v47, %v1002_v48  ;;  %v882_v16 = vrot.slane %v6742_v0, 1  ;;  %v6264_v55 = vld [vmem:[%s8989_s3 + $0x1a8] sm:$0xff]  }
 0x119   : > { %v881_v5 = vsel %vm861_vm2, %v878_v58, %v880_v59  ;;  %1954 = vmatmul.mubr.bf16.gmra.mrb[36].mxu0 %v6740_v62  ;;  %v548_v13 = vpop.f32.mrb[15].mxu0  ;;  %v1001_v15 = vsel %vm988_vm3, %v999_v6, %v1000_v47  ;;  %v883_v18 = vrot.slane %v6750_v7, 1  ;;  %vm638_vm0 = vcmp.ge.f32.partialorder %v554_v11, 0.0 }
 0x11a   : > { %v6753_v9 = vpack.c.bf16 %v881_v5, %v879_v4  ;;  %1961 = vmatprep.mubr.bf16.mxu0 %v6733_v57  ;;  %5326 = vmatpush3.bf16.msra.mxu0 %v6258_v61  ;;  %v670_v19 = vmul.f32 0.2, %v554_v11  ;;  %vm636_vm1 = vcmp.ge.f32.partialorder %v546_v12, 0.0  ;;  %v885_v21 = vrot.slane %v6755_v10, 1 }
 0x11b   : > { %5327 = vmatprep.subr.bf16.mxu0 %v6259_v3  ;;  %v668_v22 = vmul.f32 0.2, %v546_v12  ;;  %v1004_v23 = vrot.slane %v6717_v46, 2  ;;  %v1005_v24 = vrot.slane %v6726_v53, 2  ;;  %v1007_v26 = vrot.slane %v6728_v54, 2 }
 0x11c   : > { %1801 = vmatmul.mubr.bf16.gmra.mrb[8].mxu1 %v6686_v14  ;;  %v702_v25 = vsel %vm638_vm0, %v554_v11, %v670_v19  ;;  %v557_v28 = vadd.f32 %v5970_v8, %v6664_v36  ;;  %v549_v29 = vadd.f32 %v6664_v36, %v548_v13  ;;  %v6778_v32 = vpack.c.bf16 %v1003_v1, %v1001_v15  ;;  %v6781_v35 = vld [vmem:[#allocation2 + $0x78] sm:$0xff]  ;;  %v6832_v13 = vld [vmem:[#allocation2 + $0x90] sm:$0xff] }
 0x11d   : > { %1808 = vmatprep.mubr.bf16.mxu1 %v6753_v9  ;;  %v5973_v30 = vpop.f32.mrb[16].mxu0  ;;  %735 = vst [vmem:[#allocation2 + $0xc1] sm:$0xff] %v702_v25  ;;  %v700_v27 = vsel %vm636_vm1, %v546_v12, %v668_v22  ;;  %v884_v44 = vsel %vm861_vm2, %v882_v16, %v883_v18  ;;  %v886_v45 = vsel %vm861_vm2, %v883_v18, %v885_v21  ;;  %v887_v51 = vrot.slane %v6781_v35, 1 }
 0x11e   : > { %5328 = vmatpush3.bf16.msra.mxu0 %v6260_v17  ;;  %733 = vst [vmem:[#allocation2 + $0xa9] sm:$0xff] %v700_v27  ;;  %vm639_vm4 = vcmp.ge.f32.partialorder %v557_v28, 0.0  ;;  %v671_v41 = vmul.f32 0.2, %v557_v28  ;;  %vm637_vm5 = vcmp.ge.f32.partialorder %v549_v29, 0.0  ;;  %v561_v34 = vpop.f32.mrb[17].mxu0  ;;  %v1006_v46 = vsel %vm988_vm3, %v1004_v23, %v1005_v24 }
 0x11f   : > { %v669_v42 = vmul.f32 0.2, %v549_v29  ;;  %5329 = vmatprep.subr.bf16.mxu0 %v6261_v20  ;;  %v6795_v33 = vld [vmem:[#allocation2 + $0x80] sm:$0xff]  ;;  %v6797_v31 = vld [vmem:[#allocation2 + $0x88] sm:$0x3]  ;;  %v1008_v47 = vsel %vm988_vm3, %v1005_v24, %v1007_v26  ;;  %v5974_v50 = vpop.f32.mrb[18].mxu0  ;;  %v6809_v56 = vpack.c.bf16 %v886_v45, %v884_v44  ;;  %v570_v58 = vadd.f32 %v5973_v30, %v6664_v36 }
 0x120   : > { %v703_v48 = vsel %vm639_vm4, %v557_v28, %v671_v41  ;;  %v888_v52 = vrot.slane %v6795_v33, 1  ;;  %v890_v53 = vrot.slane %v6797_v31, 1  ;;  %v564_v54 = vpop.f32.mrb[19].mxu0  ;;  %v562_v59 = vadd.f32 %v6664_v36, %v561_v34  ;;  %v6267_v17 = vld [vmem:[%s8989_s3 + $0x1f8] sm:$0xff]   ;;  %v6841_v19 = vld [vmem:[#allocation2 + $0xa0] sm:$0x3] }
 0x121   : > { %1962 = vmatmul.mubr.bf16.gmra.mrb[40].mxu0 %v6778_v32  ;;  %v701_v49 = vsel %vm637_vm5, %v549_v29, %v669_v42  ;;  %736 = vst [vmem:[#allocation2 + $0xc9] sm:$0xff] %v703_v48  ;;  %v6817_v61 = vpack.c.bf16 %v1008_v47, %v1006_v46  ;;  %v1009_v63 = vrot.slane %v6742_v0, 2  ;;  %v6823_v2 = vpack.c.bf16 %v6795_v33, %v6781_v35  ;;  %v6266_v0 = vld [vmem:[%s8989_s3 + $0x1b0] sm:$0xff]   ;;  %v6839_v18 = vld [vmem:[#allocation2 + $0x98] sm:$0xff] }
 0x122   : > { %1969 = vmatprep.mubr.bf16.mxu0 %v6791_v43  ;;  %734 = vst [vmem:[#allocation2 + $0xb1] sm:$0xff] %v701_v49  ;;  %5330 = vmatpush3.bf16.msra.mxu0 %v6262_v38  ;;  %v1010_v3 = vrot.slane %v6750_v7, 2  ;;  %vm642_vm6 = vcmp.ge.f32.partialorder %v570_v58, 0.0  ;;  %v674_v4 = vmul.f32 0.2, %v570_v58  ;;  %v889_v6 = vsel %vm861_vm2, %v887_v51, %v888_v52  ;;  %v6268_v26 = vld [vmem:[%s8989_s3 + $0x1b8] sm:$0xff]  }
 0x123   : > { %5331 = vmatprep.subr.bf16.mxu0 %v6263_v40  ;;  %v891_v8 = vsel %vm861_vm2, %v888_v52, %v890_v53  ;;  %vm640_vm7 = vcmp.ge.f32.partialorder %v562_v59, 0.0  ;;  %v672_v11 = vmul.f32 0.2, %v562_v59  ;;  %v1012_v12 = vrot.slane %v6755_v10, 2 }
 0x124   : > { %1809 = vmatmul.mubr.bf16.gmra.mrb[12].mxu1 %v6733_v57  ;;  %v706_v15 = vsel %vm642_vm6, %v570_v58, %v674_v4  ;;  %v573_v7 = vadd.f32 %v5974_v50, %v6664_v36  ;;  %v565_v1 = vadd.f32 %v6664_v36, %v564_v54  ;;  %v6844_v21 = vpack.c.bf16 %v891_v8, %v889_v6 }
 0x125   : > { %1816 = vmatprep.mubr.bf16.mxu1 %v6809_v56  ;;  %v5977_v5 = vpop.f32.mrb[20].mxu0  ;;  %739 = vst [vmem:[#allocation2 + $0xf1] sm:$0xff] %v706_v15  ;;  %v704_v20 = vsel %vm640_vm7, %v562_v59, %v672_v11  ;;  %v1011_v23 = vsel %vm988_vm3, %v1009_v63, %v1010_v3  ;;  %v892_v24 = vrot.slane %v6832_v13, 1  ;;  %v1013_v28 = vsel %vm988_vm3, %v1010_v3, %v1012_v12  ;;  %v6863_v45 = vld [vmem:[#allocation2 + $0xa8] sm:$0xff] }
 0x126   : > { %5332 = vmatpush3.bf16.msra.mxu0 %v6264_v55  ;;  %v577_v16 = vpop.f32.mrb[21].mxu0  ;;  %737 = vst [vmem:[#allocation2 + $0xd9] sm:$0xff] %v704_v20  ;;  %vm643_vm8 = vcmp.ge.f32.partialorder %v573_v7, 0.0  ;;  %v675_v22 = vmul.f32 0.2, %v573_v7  ;;  %vm641_vm9 = vcmp.ge.f32.partialorder %v565_v1, 0.0  ;;  %v6857_v42 = vpack.c.bf16 %v1013_v28, %v1011_v23 }
 0x127   : > { %5333 = vmatprep.subr.bf16.mxu0 %v6265_v60  ;;  %v5978_v10 = vpop.f32.mrb[22].mxu0  ;;  %v673_v25 = vmul.f32 0.2, %v565_v1  ;;  %v893_v29 = vrot.slane %v6839_v18, 1  ;;  %v895_v30 = vrot.slane %v6841_v19, 1  ;;  %v6861_v44 = vpack.c.bf16 %v6839_v18, %v6832_v13  ;;  %v6902_v28 = vld [vmem:[#allocation2 + $0xc0] sm:$0xff] }
 0x128   : > { %v707_v27 = vsel %vm643_vm8, %v573_v7, %v675_v22  ;;  %v580_v38 = vpop.f32.mrb[23].mxu0  ;;  %v586_v34 = vadd.f32 %v5977_v5, %v6664_v36  ;;  %v578_v46 = vadd.f32 %v6664_v36, %v577_v16  ;;  %v1014_v50 = vrot.slane %v6781_v35, 2 }
 0x129   : > { %1970 = vmatmul.mubr.bf16.gmra.mrb[44].mxu0 %v6817_v61  ;;  %740 = vst [vmem:[#allocation2 + $0xf9] sm:$0xff] %v707_v27  ;;  %v705_v40 = vsel %vm641_vm9, %v565_v1, %v673_v25  ;;  %v894_v48 = vsel %vm861_vm2, %v892_v24, %v893_v29  ;;  %v896_v49 = vsel %vm861_vm2, %v893_v29, %v895_v30  ;;  %v1015_v51 = vrot.slane %v6795_v33, 2  ;;  %v6871_v52 = vld [vmem:[#allocation2 + $0xb0] sm:$0xff]  ;;  %v6873_v53 = vld [vmem:[#allocation2 + $0xb8] sm:$0x3]  ;;  %v6909_v30 = vld [vmem:[#allocation2 + $0xc8] sm:$0xff] }
 0x12a   : > { %1977 = vmatprep.mubr.bf16.mxu0 %v6823_v2  ;;  %5334 = vmatpush3.bf16.msra.mxu0 %v6266_v0  ;;  %738 = vst [vmem:[#allocation2 + $0xe1] sm:$0xff] %v705_v40  ;;  %v1017_v55 = vrot.slane %v6797_v31, 2  ;;  %vm646_vm10 = vcmp.ge.f32.partialorder %v586_v34, 0.0  ;;  %v678_v58 = vmul.f32 0.2, %v586_v34  ;;  %vm644_vm11 = vcmp.ge.f32.partialorder %v578_v46, 0.0 }
 0x12b   : > { %5335 = vmatprep.subr.bf16.mxu0 %v6267_v17  ;;  %v897_v60 = vrot.slane %v6863_v45, 1  ;;  %v676_v63 = vmul.f32 0.2, %v578_v46  ;;  %v589_v35 = vadd.f32 %v5978_v10, %v6664_v36  ;;  %v898_v33 = vrot.slane %v6871_v52, 1 }
 0x12c   : > { %1817 = vmatmul.mubr.bf16.gmra.mrb[16].mxu1 %v6791_v43  ;;  %v900_v3 = vrot.slane %v6873_v53, 1  ;;  %v710_v4 = vsel %vm646_vm10, %v586_v34, %v678_v58  ;;  %v581_v31 = vadd.f32 %v6664_v36, %v580_v38  ;;  %v6885_v5 = vpack.c.bf16 %v896_v49, %v894_v48 }
 0x12d   : > { %1824 = vmatprep.mubr.bf16.mxu1 %v6844_v21  ;;  %v5981_v41 = vpop.f32.mrb[24].mxu0  ;;  %743 = vst [vmem:[#allocation2 + $0x121] sm:$0xff] %v710_v4  ;;  %v708_v6 = vsel %vm644_vm11, %v578_v46, %v676_v63  ;;  %vm647_vm12 = vcmp.ge.f32.partialorder %v589_v35, 0.0  ;;  %v679_v8 = vmul.f32 0.2, %v589_v35  ;;  %v1016_v11 = vsel %vm988_vm3, %v1014_v50, %v1015_v51 }
 0x12e   : > { %v593_v47 = vpop.f32.mrb[25].mxu0  ;;  %5336 = vmatpush3.bf16.msra.mxu0 %v6268_v26  ;;  %v1018_v0 = vsel %vm988_vm3, %v1015_v51, %v1017_v55  ;;  %741 = vst [vmem:[#allocation2 + $0x109] sm:$0xff] %v708_v6  ;;  %vm645_vm13 = vcmp.ge.f32.partialorder %v581_v31, 0.0  ;;  %v677_v12 = vmul.f32 0.2, %v581_v31  ;;  %v6893_v15 = vpack.c.bf16 %v6871_v52, %v6863_v45 }
 0x12f   : > { %v6875_v54 = vpop.f32.mrb[26].mxu0  ;;  %v1019_v7 = vrot.slane %v6832_v13, 2  ;;  %v711_v1 = vsel %vm647_vm12, %v589_v35, %v679_v8  ;;  %v899_v17 = vsel %vm861_vm2, %v897_v60, %v898_v33  ;;  %v901_v20 = vsel %vm861_vm2, %v898_v33, %v900_v3 }
 0x130   : > { %v596_v59 = vpop.f32.mrb[27].mxu0  ;;  %v1020_v10 = vrot.slane %v6839_v18, 2  ;;  %744 = vst [vmem:[#allocation2 + $0x129] sm:$0xff] %v711_v1  ;;  %v709_v22 = vsel %vm645_vm13, %v581_v31, %v677_v12  ;;  %v6899_v24 = vpack.c.bf16 %v1018_v0, %v1016_v11  ;;  %v1022_v25 = vrot.slane %v6841_v19, 2  ;;  %v6911_v18 = vld [vmem:[#allocation2 + $0xd0] sm:$0x3] }
 0x131   : > { %1978 = vmatmul.mubr.bf16.gmra.mrb[48].mxu0 %v6857_v42  ;;  %742 = vst [vmem:[#allocation2 + $0x111] sm:$0xff] %v709_v22  ;;  %v6907_v29 = vpack.c.bf16 %v901_v20, %v899_v17  ;;  %v602_v27 = vadd.f32 %v5981_v41, %v6664_v36  ;;  %v594_v38 = vadd.f32 %v6664_v36, %v593_v47  ;;  %v902_v34 = vrot.slane %v6902_v28, 1  ;;  %v6927_v47 = vld [vmem:[#allocation2 + $0xd8] sm:$0xff]  ;;  %v6936_v33 = vld [vmem:[#allocation2 + $0xe0] sm:$0xff]  ;;  %v6938_v3 = vld [vmem:[#allocation2 + $0xe8] sm:$0x3] }
 0x132   : > { %1985 = vmatprep.mubr.bf16.mxu0 %v6861_v44  ;;  %v1021_v19 = vsel %vm988_vm3, %v1019_v7, %v1020_v10  ;;  %v1023_v40 = vsel %vm988_vm3, %v1020_v10, %v1022_v25  ;;  %v903_v48 = vrot.slane %v6909_v30, 1  ;;  %v905_v49 = vrot.slane %v6911_v18, 1 }
 0x133   : > { %vm650_vm14 = vcmp.ge.f32.partialorder %v602_v27, 0.0  ;;  %v682_v46 = vmul.f32 0.2, %v602_v27  ;;  %vm648_vm15 = vcmp.ge.f32.partialorder %v594_v38, 0.0  ;;  %v680_v41 = vmul.f32 0.2, %v594_v38 }
 0x134   : > { %1825 = vmatmul.mubr.bf16.gmra.mrb[20].mxu1 %v6823_v2  ;;  %v6925_v50 = vpack.c.bf16 %v6909_v30, %v6902_v28  ;;  %v605_v55 = vadd.f32 %v6875_v54, %v6664_v36  ;;  %v597_v58 = vadd.f32 %v6664_v36, %v596_v59  ;;  %v6932_v60 = vpack.c.bf16 %v1023_v40, %v1021_v19 }
 0x135   : > { %1832 = vmatprep.mubr.bf16.mxu1 %v6885_v5  ;;  %v5985_v16 = vpop.f32.mrb[28].mxu0  ;;  %v714_v51 = vsel %vm650_vm14, %v602_v27, %v682_v46  ;;  %v1024_v63 = vrot.slane %v6863_v45, 2  ;;  %v1025_v35 = vrot.slane %v6871_v52, 2  ;;  %v712_v4 = vsel %vm648_vm15, %v594_v38, %v680_v41 }
 0x136   : > { %v609_v23 = vpop.f32.mrb[29].mxu0  ;;  %747 = vst [vmem:[#allocation2 + $0x151] sm:$0xff] %v714_v51  ;;  %745 = vst [vmem:[#allocation2 + $0x139] sm:$0xff] %v712_v4  ;;  %vm651_vm0 = vcmp.ge.f32.partialorder %v605_v55, 0.0  ;;  %v683_v31 = vmul.f32 0.2, %v605_v55  ;;  %v904_v54 = vsel %vm861_vm2, %v902_v34, %v903_v48  ;;  %v906_v59 = vsel %vm861_vm2, %v903_v48, %v905_v49 }
 0x137   : > { %v5986_v26 = vpop.f32.mrb[30].mxu0  ;;  %vm649_vm1 = vcmp.ge.f32.partialorder %v597_v58, 0.0  ;;  %v681_v6 = vmul.f32 0.2, %v597_v58  ;;  %v1027_v8 = vrot.slane %v6873_v53, 2  ;;  %v907_v45 = vrot.slane %v6927_v47, 1 }
 0x138   : > { %v6904_v13 = vpop.f32.mrb[31].mxu0  ;;  %v908_v52 = vrot.slane %v6936_v33, 1  ;;  %v715_v11 = vsel %vm651_vm0, %v605_v55, %v683_v31  ;;  %v618_v12 = vadd.f32 %v5985_v16, %v6664_v36  ;;  %v910_v7 = vrot.slane %v6938_v3, 1  ;;  %v6970_v51 = vld [vmem:[#allocation2 + $0xf0] sm:$0xff] }
 0x139   : > { %1986 = vmatmul.mubr.bf16.gmra.mrb[52].mxu0 %v6899_v24  ;;  %v713_v0 = vsel %vm649_vm1, %v597_v58, %v681_v6  ;;  %748 = vst [vmem:[#allocation2 + $0x159] sm:$0xff] %v715_v11  ;;  %v610_v1 = vadd.f32 %v6664_v36, %v609_v23  ;;  %v6950_v17 = vpack.c.bf16 %v906_v59, %v904_v54  ;;  %v1029_v48 = vrot.slane %v6902_v28, 2  ;;  %v6977_v58 = vld [vmem:[#allocation2 + $0x100] sm:$0x3]  ;;  %v6994_v59 = vld [vmem:[#allocation2 + $0x108] sm:$0xff] }
 0x13a   : > { %1993 = vmatprep.mubr.bf16.mxu0 %v6893_v15  ;;  %746 = vst [vmem:[#allocation2 + $0x141] sm:$0xff] %v713_v0  ;;  %v1026_v53 = vsel %vm988_vm3, %v1024_v63, %v1025_v35  ;;  %vm654_vm4 = vcmp.ge.f32.partialorder %v618_v12, 0.0  ;;  %v686_v20 = vmul.f32 0.2, %v618_v12  ;;  %v1028_v10 = vsel %vm988_vm3, %v1025_v35, %v1027_v8  ;;  %v6996_v8 = vld [vmem:[#allocation2 + $0x110] sm:$0xff] }
 0x13b   : > { %vm652_vm5 = vcmp.ge.f32.partialorder %v610_v1, 0.0  ;;  %v684_v16 = vmul.f32 0.2, %v610_v1  ;;  %v621_v22 = vadd.f32 %v5986_v26, %v6664_v36  ;;  %v6959_v25 = vpack.c.bf16 %v6936_v33, %v6927_v47 }
 0x13c   : > { %1833 = vmatmul.mubr.bf16.gmra.mrb[24].mxu1 %v6861_v44  ;;  %v909_v23 = vsel %vm861_vm2, %v907_v45, %v908_v52  ;;  %v718_v27 = vsel %vm654_vm4, %v618_v12, %v686_v20  ;;  %v613_v19 = vadd.f32 %v6664_v36, %v6904_v13  ;;  %v911_v38 = vsel %vm861_vm2, %v908_v52, %v910_v7  ;;  %v6972_v36 = vld [vmem:[#allocation2 + $0xf8] sm:$0xff] }
 0x13d   : > { %1840 = vmatprep.mubr.bf16.mxu1 %v6907_v29  ;;  %751 = vst [vmem:[#allocation2 + $0x181] sm:$0xff] %v718_v27  ;;  %v716_v40 = vsel %vm652_vm5, %v610_v1, %v684_v16  ;;  %vm655_vm6 = vcmp.ge.f32.partialorder %v621_v22, 0.0  ;;  %v687_v34 = vmul.f32 0.2, %v621_v22  ;;  %v6965_v46 = vpack.c.bf16 %v1028_v10, %v1026_v53  ;;  %v6998_v45 = vld [vmem:[#allocation2 + $0x118] sm:$0x3] }
 0x13e   : > { %749 = vst [vmem:[#allocation2 + $0x169] sm:$0xff] %v716_v40  ;;  %vm653_vm7 = vcmp.ge.f32.partialorder %v613_v19, 0.0  ;;  %v685_v26 = vmul.f32 0.2, %v613_v19  ;;  %v1030_v49 = vrot.slane %v6909_v30, 2  ;;  %v1032_v41 = vrot.slane %v6911_v18, 2 }
 0x13f   : > { %v719_v13 = vsel %vm655_vm6, %v621_v22, %v687_v34  ;;  %v6975_v55 = vpack.c.bf16 %v911_v38, %v909_v23  ;;  %v912_v28 = vrot.slane %v6970_v51, 1  ;;  %v913_v30 = vrot.slane %v6972_v36, 1  ;;  %v7022_v23 = vld [vmem:[#allocation2 + $0x120] sm:$0xff]  ;;  %v7024_v27 = vld [vmem:[#allocation2 + $0x128] sm:$0xff] }
 0x140   : > { %752 = vst [vmem:[#allocation2 + $0x189] sm:$0xff] %v719_v13  ;;  %v717_v63 = vsel %vm653_vm7, %v613_v19, %v685_v26  ;;  %v1031_v18 = vsel %vm988_vm3, %v1029_v48, %v1030_v49  ;;  %v1033_v35 = vsel %vm988_vm3, %v1030_v49, %v1032_v41  ;;  %v915_v4 = vrot.slane %v6977_v58, 1  ;;  %v7026_v19 = vld [vmem:[#allocation2 + $0x130] sm:$0x3]  ;;  %v5001_v26 = vpop.f32.mrb[0].mxu1  ;;  %v7036_v13 = vld [vmem:[#allocation2 + $0x138] sm:$0xff] }
 0x141   : > { %1994 = vmatmul.mubr.bf16.gmra.mrb[56].mxu0 %v6932_v60  ;;  %750 = vst [vmem:[#allocation2 + $0x171] sm:$0xff] %v717_v63  ;;  %v6987_v31 = vpack.c.bf16 %v1033_v35, %v1031_v18  ;;  %v6991_v6 = vpack.c.bf16 %v6972_v36, %v6970_v51  ;;  %v914_v54 = vsel %vm861_vm2, %v912_v28, %v913_v30  ;;  %v1034_v11 = vrot.slane %v6927_v47, 2  ;;  %v5002_v48 = vpop.f32.mrb[1].mxu1  ;;  %v7038_v63 = vld [vmem:[#allocation2 + $0x140] sm:$0xff]  ;;  %v7040_v28 = vld [vmem:[#allocation2 + $0x148] sm:$0x3] }
 0x142   : > { %2001 = vmatprep.mubr.bf16.mxu0 %v6925_v50  ;;  %v916_v52 = vsel %vm861_vm2, %v913_v30, %v915_v4  ;;  %v1035_v0 = vrot.slane %v6936_v33, 2  ;;  %v1037_v12 = vrot.slane %v6938_v3, 2  ;;  %v917_v7 = vrot.slane %v6994_v59, 1  ;;  %v5004_v41 = vpop.f32.mrb[2].mxu1 }
 0x143   : > { %v918_v1 = vrot.slane %v6996_v8, 1  ;;  %v920_v53 = vrot.slane %v6998_v45, 1  ;;  %v7009_v20 = vpack.c.bf16 %v916_v52, %v914_v54  ;;  %v922_v38 = vrot.slane %v7022_v23, 1  ;;  %v5005_v30 = vpop.f32.mrb[3].mxu1 }
 0x144   : > { %1841 = vmatmul.mubr.bf16.gmra.mrb[28].mxu1 %v6893_v15  ;;  %v1036_v47 = vsel %vm988_vm3, %v1034_v11, %v1035_v0  ;;  %v1038_v33 = vsel %vm988_vm3, %v1035_v0, %v1037_v12  ;;  %v923_v40 = vrot.slane %v7024_v27, 1  ;;  %v925_v34 = vrot.slane %v7026_v19, 1 }
 0x145   : > { %1848 = vmatprep.mubr.bf16.mxu1 %v6950_v17  ;;  %v919_v3 = vsel %vm861_vm2, %v917_v7, %v918_v1  ;;  %v921_v10 = vsel %vm861_vm2, %v918_v1, %v920_v53  ;;  %v7017_v16 = vpack.c.bf16 %v1038_v33, %v1036_v47  ;;  %v7034_v49 = vadd.f32 %v5002_v48, %v5001_v26  ;;  %v7064_v53 = vld [vmem:[#allocation2 + $0x150] sm:$0xff]  ;;  %v7066_v47 = vld [vmem:[#allocation2 + $0x158] sm:$0xff]  ;;  %v7068_v33 = vld [vmem:[#allocation2 + $0x160] sm:$0x3] }
 0x146   : > { %v7020_v22 = vpack.c.bf16 %v921_v10, %v919_v3  ;;  %v924_v18 = vsel %vm861_vm2, %v922_v38, %v923_v40  ;;  %v926_v35 = vsel %vm861_vm2, %v923_v40, %v925_v34  ;;  %v7044_v4 = vadd.f32 %v5005_v30, %v5004_v41  ;;  %v7080_v40 = vld [vmem:[#allocation2 + $0x168] sm:$0xff] }
 0x147   : > { %v7050_v54 = vpack.c.bf16 %v6996_v8, %v6994_v59  ;;  %v927_v52 = vrot.slane %v7036_v13, 1  ;;  %v928_v11 = vrot.slane %v7038_v63, 1  ;;  %v930_v0 = vrot.slane %v7040_v28, 1 }
 0x148   : > { %v7055_v12 = vpack.c.bf16 %v926_v35, %v924_v18  ;;  %v7073_v3 = vpack.c.bf16 %v7024_v27, %v7022_v23  ;;  %v932_v10 = vrot.slane %v7064_v53, 1  ;;  %v935_v38 = vrot.slane %v7068_v33, 1  ;;  %v7082_v34 = vld [vmem:[#allocation2 + $0x170] sm:$0xff]  ;;  %v7084_v26 = vld [vmem:[#allocation2 + $0x178] sm:$0x3] }
 0x149   : > { %2002 = vmatmul.mubr.bf16.gmra.mrb[60].mxu0 %v6965_v46  ;;  %v931_v7 = vsel %vm861_vm2, %v928_v11, %v930_v0  ;;  %v7092_v30 = vpack.c.bf16 %v7038_v63, %v7036_v13  ;;  %v937_v18 = vrot.slane %v7080_v40, 1  ;;  %v938_v35 = vrot.slane %v7082_v34, 1 }
 0x14a   : > { %2009 = vmatprep.mubr.bf16.mxu0 %v6959_v25 }
 0x14c   : > { %1849 = vmatmul.mubr.bf16.gmra.mrb[32].mxu1 %v6925_v50 }
 0x14d   : > { %1856 = vmatprep.mubr.bf16.mxu1 %v6975_v55 }
 0x151   : > { %2010 = vmatmul.mubr.bf16.gmra.mrb[64].mxu0 %v6987_v31 }
 0x152   : > { %2017 = vmatprep.mubr.bf16.mxu0 %v6991_v6 }
 0x154   : > { %1857 = vmatmul.mubr.bf16.gmra.mrb[36].mxu1 %v6959_v25 }
 0x155   : > { %1864 = vmatprep.mubr.bf16.mxu1 %v7009_v20 }
 0x159   : > { %2018 = vmatmul.mubr.bf16.gmra.mrb[68].mxu0 %v7017_v16 }
 0x15a   : > { %2267 = vmatprep.mubr.bf16.mxu0 %v6702_v37 }
 0x15c   : > { %1865 = vmatmul.mubr.bf16.gmra.mrb[40].mxu1 %v6991_v6 }
 0x15d   : > { %1872 = vmatprep.mubr.bf16.mxu1 %v7020_v22 }
 0x161   : > { %2268 = vmatmul.mubr.bf16.vlgmr.msra.gmra.mrb[72].mxu0 %v6686_v14  ;;  %v929_v14 = vsel %vm861_vm2, %v927_v52, %v928_v11  ;;  %v940_v52 = vrot.slane %v7084_v26, 1 }
 0x162   : > { %2275 = vmatprep.mubr.bf16.mxu0 %v6753_v9  ;;  %v7062_v1 = vpack.c.bf16 %v931_v7, %v929_v14  ;;  %v7109_v7 = vpack.c.bf16 %v7066_v47, %v7064_v53 }
 0x163   : > { %v941_v0 = vsel %vm861_vm2, %v938_v35, %v940_v52  ;;  %v6273_v52 = vld [vmem:[%s8989_s3 + $0x150] sm:$0xff]  }
 0x164   : > { %1873 = vmatmul.mubr.bf16.gmra.mrb[44].mxu1 %v7050_v54 }
 0x165   : > { %1880 = vmatprep.mubr.bf16.mxu1 %v7055_v12 }
 0x169   : > { %2276 = vmatmul.mubr.bf16.gmra.mrb[76].mxu0 %v6733_v57  ;;  %v933_v57 = vrot.slane %v7066_v47, 1 }
 0x16a   : > { %2283 = vmatprep.mubr.bf16.mxu0 %v6809_v56 }
 0x16b   : > { %v934_v48 = vsel %vm861_vm2, %v932_v10, %v933_v57  ;;  %v936_v41 = vsel %vm861_vm2, %v933_v57, %v935_v38  ;;  %v7117_v10 = vpack.c.bf16 %v7082_v34, %v7080_v40  ;;  %v1040_v57 = vrot.slane %v6972_v36, 2  ;;  %v6271_v36 = vld [vmem:[%s8989_s3 + $0x148] sm:$0xff]  }
 0x16c   : > { %1881 = vmatmul.mubr.bf16.gmra.mrb[48].mxu1 %v7073_v3  ;;  %v7097_v11 = vpack.c.bf16 %v936_v41, %v934_v48  ;;  %v1042_v38 = vrot.slane %v6977_v58, 2  ;;  %v6270_v41 = vld [vmem:[%s8989_s3 + $0x100] sm:$0xff]   ;;  %v1044_v58 = vrot.slane %v6994_v59, 2 }
 0x16d   : > { %1888 = vmatprep.mubr.bf16.mxu1 %v7062_v1 }
 0x171   : > { %2284 = vmatmul.mubr.bf16.gmra.mrb[80].mxu0 %v6791_v43  ;;  %v939_v43 = vsel %vm861_vm2, %v937_v18, %v938_v35  ;;  %v1045_v18 = vrot.slane %v6996_v8, 2  ;;  %v1047_v35 = vrot.slane %v6998_v45, 2  ;;  %v6274_v45 = vld [vmem:[%s8989_s3 + $0x110] sm:$0xff]  }
 0x172   : > { %2291 = vmatprep.mubr.bf16.mxu0 %v6844_v21  ;;  %v7104_v14 = vpack.c.bf16 %v941_v0, %v939_v43  ;;  %v6275_v0 = vld [vmem:[%s8989_s3 + $0x158] sm:$0xff]  }
 0x173   : > { %v1046_v59 = vsel %vm988_vm3, %v1044_v58, %v1045_v18  ;;  %v1048_v8 = vsel %vm988_vm3, %v1045_v18, %v1047_v35  ;;  %v1055_v58 = vrot.slane %v7038_v63, 2  ;;  %v6280_v18 = vld [vmem:[%s8989_s3 + $0x128] sm:$0xff]   ;;  %v6281_v35 = vld [vmem:[%s8989_s3 + $0x170] sm:$0xff]  }
 0x174   : > { %1889 = vmatmul.mubr.bf16.gmra.mrb[52].mxu1 %v7092_v30  ;;  %v7154_v43 = vpack.c.bf16 %v1048_v8, %v1046_v59  ;;  %v1059_v59 = vrot.slane %v7064_v53, 2  ;;  %v1060_v8 = vrot.slane %v7066_v47, 2 }
 0x175   : > { %1896 = vmatprep.mubr.bf16.mxu1 %v7097_v11 }
 0x176   : > { %v1061_v53 = vsel %vm988_vm3, %v1059_v59, %v1060_v8 }
 0x179   : > { %2292 = vmatmul.mubr.bf16.gmra.mrb[84].mxu0 %v6823_v2  ;;  %v1039_v2 = vrot.slane %v6970_v51, 2 }
 0x17a   : > { %2299 = vmatprep.mubr.bf16.mxu0 %v6885_v5 }
 0x17b   : > { %v1041_v48 = vsel %vm988_vm3, %v1039_v2, %v1040_v57  ;;  %v1049_v2 = vrot.slane %v7022_v23, 2 }
 0x17c   : > { %1897 = vmatmul.mubr.bf16.gmra.mrb[56].mxu1 %v7109_v7 }
 0x17d   : > { %1904 = vmatprep.mubr.bf16.mxu1 %v7104_v14 }
 0x181   : > { %2300 = vmatmul.mubr.bf16.gmra.mrb[88].mxu0 %v6861_v44  ;;  %v1043_v44 = vsel %vm988_vm3, %v1040_v57, %v1042_v38  ;;  %v1050_v57 = vrot.slane %v7024_v27, 2  ;;  %v6276_v38 = vld [vmem:[%s8989_s3 + $0x118] sm:$0xff]  }
 0x182   : > { %2307 = vmatprep.mubr.bf16.mxu0 %v6907_v29  ;;  %v7131_v51 = vpack.c.bf16 %v1043_v44, %v1041_v48  ;;  %v6277_v48 = vld [vmem:[%s8989_s3 + $0x160] sm:$0xff]  }
 0x183   : > { %v1051_v23 = vsel %vm988_vm3, %v1049_v2, %v1050_v57  ;;  %v7218_v2 = vld [vmem:[#allocation2 + $0x180] sm:$0xff] }
 0x184   : > { %1905 = vmatmul.mubr.bf16.gmra.mrb[60].mxu1 %v7117_v10 }
 0x185   : > { %2025 = vmatprep.mubr.bf16.mxu1 %v7050_v54 }
 0x189   : > { %2308 = vmatmul.mubr.bf16.gmra.mrb[92].mxu0 %v6893_v15  ;;  %v6272_v15 = vld [vmem:[%s8989_s3 + $0x108] sm:$0xff]  }
 0x18a   : > { %2315 = vmatprep.mubr.bf16.mxu0 %v6950_v17 }
 0x18c   : > { %2026 = vmatmul.mubr.bf16.vlgmr.msra.gmra.mrb[64].mxu1 %v7131_v51 }
 0x18d   : > { %5210 = vmatpush3.bf16.msra.mxu1 %v6270_v41  ;;  %2033 = vmatprep.mubr.bf16.mxu1 %v7073_v3  ;;  %v6279_v41 = vld [vmem:[%s8989_s3 + $0x168] sm:$0xff]  }
 0x18e   : > { %5211 = vmatprep.subr.bf16.mxu1 %v6271_v36  ;;  %v1054_v36 = vrot.slane %v7036_v13, 2 }
 0x190   : > { %v1056_v13 = vsel %vm988_vm3, %v1054_v36, %v1055_v58  ;;  %v7263_v36 = vld [vmem:[#allocation2 + $0x1a0] sm:$0xff] }
 0x191   : > { %2316 = vmatmul.mubr.bf16.gmra.mrb[96].mxu0 %v6925_v50  ;;  %5212 = vmatpush3.bf16.msra.mxu1 %v6272_v15  ;;  %v1052_v50 = vrot.slane %v7026_v19, 2  ;;  %v6278_v19 = vld [vmem:[%s8989_s3 + $0x120] sm:$0xff]  }
 0x192   : > { %2323 = vmatprep.mubr.bf16.mxu0 %v6975_v55  ;;  %5213 = vmatprep.subr.bf16.mxu1 %v6273_v52  ;;  %v6283_v52 = vld [vmem:[%s8989_s3 + $0x178] sm:$0xff]  }
 0x193   : > { %v1053_v27 = vsel %vm988_vm3, %v1050_v57, %v1052_v50 }
 0x194   : > { %2034 = vmatmul.mubr.bf16.gmra.mrb[68].mxu1 %v7154_v43  ;;  %v7177_v44 = vpack.c.bf16 %v1053_v27, %v1051_v23  ;;  %v1067_v23 = vrot.slane %v7084_v26, 2 }
 0x195   : > { %2041 = vmatprep.mubr.bf16.mxu1 %v7092_v30  ;;  %5214 = vmatpush3.bf16.msra.mxu1 %v6274_v45  ;;  %v6284_v45 = vld [vmem:[%s8989_s3 + $0x138] sm:$0xff]  }
 0x196   : > { %5215 = vmatprep.subr.bf16.mxu1 %v6275_v0  ;;  %v6285_v0 = vld [vmem:[%s8989_s3 + $0x200] sm:$0xff]  }
 0x199   : > { %2324 = vmatmul.mubr.bf16.gmra.mrb[100].mxu0 %v6959_v25  ;;  %5216 = vmatpush3.bf16.msra.mxu1 %v6276_v38  ;;  %v1057_v25 = vrot.slane %v7040_v28, 2  ;;  %v6282_v28 = vld [vmem:[%s8989_s3 + $0x130] sm:$0xff]   ;;  %v1064_v38 = vrot.slane %v7080_v40, 2  ;;  %v6286_v40 = vld [vmem:[%s8989_s3 + $0x208] sm:$0xff]  }
 0x19a   : > { %2331 = vmatprep.mubr.bf16.mxu0 %v7009_v20  ;;  %5217 = vmatprep.subr.bf16.mxu1 %v6277_v48  ;;  %v1065_v48 = vrot.slane %v7082_v34, 2  ;;  %v942_v34 = vrot.slane %v7218_v2, 1 }
 0x19b   : > { %v1058_v63 = vsel %vm988_vm3, %v1055_v58, %v1057_v25 }
 0x19c   : > { %2042 = vmatmul.mubr.bf16.gmra.mrb[72].mxu1 %v7177_v44  ;;  %v7200_v15 = vpack.c.bf16 %v1058_v63, %v1056_v13  ;;  %v1068_v27 = vsel %vm988_vm3, %v1065_v48, %v1067_v23 }
 0x19d   : > { %2049 = vmatprep.mubr.bf16.mxu1 %v7109_v7  ;;  %5218 = vmatpush3.bf16.msra.mxu1 %v6278_v19 }
 0x19e   : > { %5219 = vmatprep.subr.bf16.mxu1 %v6279_v41  ;;  %v7261_v41 = vld [vmem:[#allocation2 + $0x198] sm:$0xff] }
 0x1a1   : > { %2332 = vmatmul.mubr.bf16.gmra.mrb[104].mxu0 %v6991_v6  ;;  %5220 = vmatpush3.bf16.msra.mxu1 %v6280_v18  ;;  %v1062_v6 = vrot.slane %v7068_v33, 2  ;;  %v7220_v33 = vld [vmem:[#allocation2 + $0x188] sm:$0xff]  ;;  %v6289_v18 = vld [vmem:[%s8989_s3 + $0x220] sm:$0xff]  }
 0x1a2   : > { %2339 = vmatprep.mubr.bf16.mxu0 %v7020_v22  ;;  %5221 = vmatprep.subr.bf16.mxu1 %v6281_v35  ;;  %v1163_v50 = vpack.c.bf16 %v7220_v33, %v7218_v2  ;;  %v943_v26 = vrot.slane %v7220_v33, 1  ;;  %v948_v35 = vrot.slane %v7263_v36, 1 }
 0x1a3   : > { %v1063_v47 = vsel %vm988_vm3, %v1060_v8, %v1062_v6  ;;  %v6292_v6 = vld [vmem:[%s8989_s3 + $0x238] sm:$0xff]  }
 0x1a4   : > { %2050 = vmatmul.mubr.bf16.gmra.mrb[76].mxu1 %v7200_v15  ;;  %v7224_v57 = vpack.c.bf16 %v1063_v47, %v1061_v53  ;;  %v944_v58 = vsel %vm861_vm2, %v942_v34, %v943_v26 }
 0x1a5   : > { %2057 = vmatprep.mubr.bf16.mxu1 %v7117_v10  ;;  %5222 = vmatpush3.bf16.msra.mxu1 %v6282_v28  ;;  %v6290_v28 = vld [vmem:[%s8989_s3 + $0x228] sm:$0xff]  }
 0x1a6   : > { %5223 = vmatprep.subr.bf16.mxu1 %v6283_v52 }
 0x1a9   : > { %2340 = vmatmul.mubr.bf16.gmra.mrb[108].mxu0 %v7050_v54  ;;  %5224 = vmatpush3.bf16.msra.mxu1 %v6284_v45  ;;  %v1066_v54 = vsel %vm988_vm3, %v1064_v38, %v1065_v48  ;;  %v7302_v45 = vld [vmem:[%s8990_s4] ss:$0 sm:$0xff] }
 0x1aa   : > { %2347 = vmatprep.mubr.bf16.mxu0 %v7055_v12  ;;  %5987 = vmatprep.subr.bf16.mxu1 %v6285_v0  ;;  %v7236_v19 = vpack.c.bf16 %v1068_v27, %v1066_v54  ;;  %v1787_v53 = vadd.f32 %v7034_v49, %v7302_v45  ;;  %v1790_v48 = vadd.f32 %v7044_v4, %v7302_v45 }
 0x1ac   : > { %2058 = vmatmul.mubr.bf16.gmra.mrb[80].mxu1 %v7224_v57 }
 0x1ad   : > { %2065 = vmatprep.mubr.bf16.mxu1 %v1163_v50 }
 0x1b1   : > { %2348 = vmatmul.mubr.bf16.gmra.mrb[112].mxu0 %v7073_v3  ;;  %v7247_v3 = vld [vmem:[#allocation2 + $0x190] sm:$0x3] }
 0x1b2   : > { %2355 = vmatprep.mubr.bf16.mxu0 %v7062_v1 }
 0x1b4   : > { %2066 = vmatmul.mubr.bf16.gmra.mrb[84].mxu1 %v7236_v19 }
 0x1b5   : > { %2106 = vmatprep.mubr.bf16.mxu1 %v6740_v62  ;;  %v6287_v62 = vld [vmem:[%s8989_s3 + $0x210] sm:$0xff]  }
 0x1b9   : > { %2356 = vmatmul.mubr.bf16.gmra.mrb[116].mxu0 %v7092_v30  ;;  %v945_v30 = vrot.slane %v7247_v3, 1 }
 0x1ba   : > { %2363 = vmatprep.mubr.bf16.mxu0 %v7097_v11 }
 0x1bb   : > { %v946_v25 = vsel %vm861_vm2, %v943_v26, %v945_v30 }
 0x1bc   : > { %2107 = vmatmul.mubr.bf16.vlgmr.msra.gmra.mrb[88].mxu1 %v6707_v39  ;;  %v6288_v39 = vld [vmem:[%s8989_s3 + $0x218] sm:$0xff]   ;;  %v7276_v63 = vpack.c.bf16 %v946_v25, %v944_v58 }
 0x1bd   : > { %5988 = vmatpush3.bf16.msra.mxu1 %v6285_v0  ;;  %2114 = vmatprep.mubr.bf16.mxu1 %v6778_v32 }
 0x1be   : > { %5989 = vmatprep.subr.bf16.mxu1 %v6286_v40 }
 0x1c1   : > { %2364 = vmatmul.mubr.bf16.gmra.mrb[120].mxu0 %v7109_v7  ;;  %5990 = vmatpush3.bf16.msra.mxu1 %v6286_v40  ;;  %v7265_v7 = vld [vmem:[#allocation2 + $0x1a8] sm:$0x3] }
 0x1c2   : > { %2371 = vmatprep.mubr.bf16.mxu0 %v7104_v14  ;;  %5991 = vmatprep.subr.bf16.mxu1 %v6287_v62  ;;  %v950_v13 = vrot.slane %v7265_v7, 1 }
 0x1c4   : > { %2115 = vmatmul.mubr.bf16.gmra.mrb[92].mxu1 %v6702_v37  ;;  %v947_v37 = vrot.slane %v7261_v41, 1  ;;  %v951_v59 = vsel %vm861_vm2, %v948_v35, %v950_v13 }
 0x1c5   : > { %2122 = vmatprep.mubr.bf16.mxu1 %v6817_v61  ;;  %5992 = vmatpush3.bf16.msra.mxu1 %v6287_v62 }
 0x1c6   : > { %5993 = vmatprep.subr.bf16.mxu1 %v6288_v39  ;;  %v949_v52 = vsel %vm861_vm2, %v947_v37, %v948_v35 }
 0x1c7   : > { %v1167_v8 = vpack.c.bf16 %v951_v59, %v949_v52 }
 0x1c9   : > { %2372 = vmatmul.mubr.bf16.gmra.mrb[124].mxu0 %v7117_v10  ;;  %5994 = vmatpush3.bf16.msra.mxu1 %v6288_v39  ;;  %v6291_v10 = vld [vmem:[%s8989_s3 + $0x230] sm:$0xff]  }
 0x1ca   : > { %2379 = vmatprep.mubr.bf16.mxu0 %v7276_v63  ;;  %5995 = vmatprep.subr.bf16.mxu1 %v6289_v18 }
 0x1cc   : > { %2123 = vmatmul.mubr.bf16.gmra.mrb[96].mxu1 %v6753_v9  ;;  %v1166_v9 = vpack.c.bf16 %v7263_v36, %v7261_v41 }
 0x1cd   : > { %2130 = vmatprep.mubr.bf16.mxu1 %v6857_v42  ;;  %5996 = vmatpush3.bf16.msra.mxu1 %v6289_v18 }
 0x1ce   : > { %5997 = vmatprep.subr.bf16.mxu1 %v6290_v28 }
 0x1d1   : > { %2380 = vmatmul.mubr.bf16.gmra.mrb[128].mxu0 %v1163_v50  ;;  %5998 = vmatpush3.bf16.msra.mxu1 %v6290_v28 }
 0x1d2   : > { %5999 = vmatprep.subr.bf16.mxu1 %v6291_v10  ;;  %2387 = vmatprep.mubr.bf16.mxu0 %v1167_v8 }
 0x1d4   : > { %2131 = vmatmul.mubr.bf16.gmra.mrb[100].mxu1 %v6809_v56 }
 0x1d5   : > { %2138 = vmatprep.mubr.bf16.mxu1 %v6899_v24  ;;  %6000 = vmatpush3.bf16.msra.mxu1 %v6291_v10 }
 0x1d6   : > { %6001 = vmatprep.subr.bf16.mxu1 %v6292_v6 }
 0x1d9   : > { %6002 = vmatpush3.bf16.msra.mxu1 %v6292_v6  ;;  %2388 = vmatmul.mubr.bf16.gmra.mrb[132].mxu0 %v1166_v9 }
 0x1dc   : > { %2139 = vmatmul.mubr.bf16.gmra.mrb[104].mxu1 %v6844_v21 }
 0x1dd   : > { %2146 = vmatprep.mubr.bf16.mxu1 %v6932_v60 }
 0x1e4   : > { %v5113_v0 = vpop.f32.mrb[32].mxu0  ;;  %2147 = vmatmul.mubr.bf16.gmra.mrb[108].mxu1 %v6885_v5 }
 0x1e5   : > { %v5114_v56 = vpop.f32.mrb[33].mxu0  ;;  %2154 = vmatprep.mubr.bf16.mxu1 %v6965_v46 }
 0x1e6   : > { %v5115_v47 = vadd.f32 %v5114_v56, %v5113_v0  ;;  %v5116_v50 = vpop.f32.mrb[34].mxu0  ;;  %v1074_v0 = vrot.slane %v7261_v41, 2  ;;  %v1075_v56 = vrot.slane %v7263_v36, 2 }
 0x1e7   : > { %v5007_v38 = vpop.f32.mrb[4].mxu1  ;;  %v5117_v21 = vpop.f32.mrb[35].mxu0 }
 0x1e8   : > { %v5118_v23 = vadd.f32 %v5117_v21, %v5116_v50  ;;  %v5008_v54 = vpop.f32.mrb[5].mxu1  ;;  %v7310_v27 = vadd.f32 %v5115_v47, %v1787_v53  ;;  %v1077_v53 = vrot.slane %v7265_v7, 2 }
 0x1e9   : > { %v5009_v40 = vadd.f32 %v5008_v54, %v5007_v38  ;;  %v5010_v62 = vpop.f32.mrb[6].mxu1 }
 0x1ea   : > { %v5011_v5 = vpop.f32.mrb[7].mxu1  ;;  %v7312_v34 = vadd.f32 %v5118_v23, %v1790_v48  ;;  %v7329_v23 = vsel %vm988_vm3, %v1074_v0, %v1075_v56 }
 0x1eb   : > { %v5012_v26 = vadd.f32 %v5011_v5, %v5010_v62  ;;  %v1795_v39 = vadd.f32 %v5009_v40, %v7302_v45 }
 0x1ec   : > { %v5119_v30 = vpop.f32.mrb[36].mxu0  ;;  %2155 = vmatmul.mubr.bf16.gmra.mrb[112].mxu1 %v6907_v29 }
 0x1ed   : > { %v5120_v49 = vpop.f32.mrb[37].mxu0  ;;  %2162 = vmatprep.mubr.bf16.mxu1 %v6987_v31  ;;  %v1798_v37 = vadd.f32 %v5012_v26, %v7302_v45 }
 0x1ee   : > { %v5121_v58 = vadd.f32 %v5120_v49, %v5119_v30  ;;  %v5122_v4 = vpop.f32.mrb[38].mxu0 }
 0x1ef   : > { %v5013_v25 = vpop.f32.mrb[8].mxu1  ;;  %v5123_v18 = vpop.f32.mrb[39].mxu0 }
 0x1f0   : > { %v5124_v35 = vadd.f32 %v5123_v18, %v5122_v4  ;;  %v5014_v13 = vpop.f32.mrb[9].mxu1  ;;  %v7318_v28 = vadd.f32 %v5121_v58, %v1795_v39 }
 0x1f1   : > { %v5015_v52 = vadd.f32 %v5014_v13, %v5013_v25  ;;  %v5016_v59 = vpop.f32.mrb[10].mxu1 }
 0x1f2   : > { %v5017_v10 = vpop.f32.mrb[11].mxu1  ;;  %v7320_v8 = vadd.f32 %v5124_v35, %v1798_v37 }
 0x1f3   : > { %v5018_v29 = vadd.f32 %v5017_v10, %v5016_v59  ;;  %v1803_v47 = vadd.f32 %v5015_v52, %v7302_v45 }
 0x1f4   : > { %v5125_v6 = vpop.f32.mrb[40].mxu0  ;;  %2163 = vmatmul.mubr.bf16.gmra.mrb[116].mxu1 %v6950_v17  ;;  %v7332_v17 = vsel %vm988_vm3, %v1075_v56, %v1077_v53 }
 0x1f5   : > { %v5126_v9 = vpop.f32.mrb[41].mxu0  ;;  %2170 = vmatprep.mubr.bf16.mxu1 %v7017_v16  ;;  %v1806_v41 = vadd.f32 %v5018_v29, %v7302_v45 }
 0x1f6   : > { %v5127_v50 = vadd.f32 %v5126_v9, %v5125_v6  ;;  %v5128_v38 = vpop.f32.mrb[42].mxu0 }
 0x1f7   : > { %v5019_v21 = vpop.f32.mrb[12].mxu1  ;;  %v5129_v48 = vpop.f32.mrb[43].mxu0 }
 0x1f8   : > { %v7334_v54 = vadd.f32 %v5127_v50, %v1803_v47  ;;  %v5130_v40 = vadd.f32 %v5129_v48, %v5128_v38  ;;  %v5020_v36 = vpop.f32.mrb[13].mxu1 }
 0x1f9   : > { %v5021_v62 = vadd.f32 %v5020_v36, %v5019_v21  ;;  %v5022_v5 = vpop.f32.mrb[14].mxu1 }
 0x1fa   : > { %v7339_v26 = vadd.f32 %v5130_v40, %v1806_v41  ;;  %v5023_v30 = vpop.f32.mrb[15].mxu1 }
 0x1fb   : > { %v5024_v49 = vadd.f32 %v5023_v30, %v5022_v5  ;;  %v1811_v4 = vadd.f32 %v5021_v62, %v7302_v45 }
 0x1fc   : > { %v5131_v39 = vpop.f32.mrb[44].mxu0  ;;  %2171 = vmatmul.mubr.bf16.gmra.mrb[120].mxu1 %v6975_v55 }
 0x1fd   : > { %v5132_v58 = vpop.f32.mrb[45].mxu0  ;;  %2178 = vmatprep.mubr.bf16.mxu1 %v7131_v51  ;;  %v1814_v52 = vadd.f32 %v5024_v49, %v7302_v45 }
 0x1fe   : > { %v5133_v25 = vadd.f32 %v5132_v58, %v5131_v39  ;;  %v5134_v18 = vpop.f32.mrb[46].mxu0 }
 0x1ff   : > { %v5025_v37 = vpop.f32.mrb[16].mxu1  ;;  %v5135_v35 = vpop.f32.mrb[47].mxu0 }
 0x200   : > { %v7344_v13 = vadd.f32 %v5133_v25, %v1811_v4  ;;  %v5136_v59 = vadd.f32 %v5135_v35, %v5134_v18  ;;  %v5026_v10 = vpop.f32.mrb[17].mxu1 }
 0x201   : > { %v5027_v29 = vadd.f32 %v5026_v10, %v5025_v37  ;;  %v5028_v6 = vpop.f32.mrb[18].mxu1 }
 0x202   : > { %v7347_v9 = vadd.f32 %v5136_v59, %v1814_v52  ;;  %v5029_v55 = vpop.f32.mrb[19].mxu1 }
 0x203   : > { %v5030_v0 = vadd.f32 %v5029_v55, %v5028_v6  ;;  %v1819_v47 = vadd.f32 %v5027_v29, %v7302_v45 }
 0x204   : > { %v5137_v56 = vpop.f32.mrb[48].mxu0  ;;  %2179 = vmatmul.mubr.bf16.gmra.mrb[124].mxu1 %v7009_v20 }
 0x205   : > { %v5138_v53 = vpop.f32.mrb[49].mxu0  ;;  %2186 = vmatprep.mubr.bf16.mxu1 %v7154_v43  ;;  %v1822_v40 = vadd.f32 %v5030_v0, %v7302_v45 }
 0x206   : > { %v5139_v50 = vadd.f32 %v5138_v53, %v5137_v56  ;;  %v5140_v38 = vpop.f32.mrb[50].mxu0 }
 0x207   : > { %v5031_v21 = vpop.f32.mrb[20].mxu1  ;;  %v5141_v48 = vpop.f32.mrb[51].mxu0 }
 0x208   : > { %v7352_v41 = vadd.f32 %v5139_v50, %v1819_v47  ;;  %v5142_v36 = vadd.f32 %v5141_v48, %v5140_v38  ;;  %v5032_v62 = vpop.f32.mrb[21].mxu1 }
 0x209   : > { %v5033_v5 = vadd.f32 %v5032_v62, %v5031_v21  ;;  %v5034_v30 = vpop.f32.mrb[22].mxu1 }
 0x20a   : > { %v7355_v49 = vadd.f32 %v5142_v36, %v1822_v40  ;;  %v5035_v20 = vpop.f32.mrb[23].mxu1 }
 0x20b   : > { %v5036_v39 = vadd.f32 %v5035_v20, %v5034_v30  ;;  %v1827_v25 = vadd.f32 %v5033_v5, %v7302_v45 }
 0x20c   : > { %v5143_v58 = vpop.f32.mrb[52].mxu0  ;;  %2187 = vmatmul.mubr.bf16.gmra.mrb[128].mxu1 %v7020_v22 }
 0x20d   : > { %v5144_v4 = vpop.f32.mrb[53].mxu0  ;;  %2194 = vmatprep.mubr.bf16.mxu1 %v7177_v44  ;;  %v1830_v10 = vadd.f32 %v5036_v39, %v7302_v45 }
 0x20e   : > { %v5145_v18 = vadd.f32 %v5144_v4, %v5143_v58  ;;  %v5146_v37 = vpop.f32.mrb[54].mxu0 }
 0x20f   : > { %v5037_v35 = vpop.f32.mrb[24].mxu1  ;;  %v5147_v52 = vpop.f32.mrb[55].mxu0 }
 0x210   : > { %v7360_v59 = vadd.f32 %v5145_v18, %v1827_v25  ;;  %v5148_v29 = vadd.f32 %v5147_v52, %v5146_v37  ;;  %v5038_v6 = vpop.f32.mrb[25].mxu1  ;;  %v6293_v18 = vld [vmem:[%s8991_s5] sm:$0xff]  }
 0x211   : > { %v5039_v55 = vadd.f32 %v5038_v6, %v5037_v35  ;;  %v5040_v0 = vpop.f32.mrb[26].mxu1  ;;  %6035 = vmatprep.subr.bf16.mxu0 %v6293_v18 }
 0x212   : > { %v7363_v56 = vadd.f32 %v5148_v29, %v1830_v10  ;;  %v5041_v22 = vpop.f32.mrb[27].mxu1  ;;  %6036 = vmatpush3.bf16.msra.mxu0 %v6293_v18 }
 0x213   : > { %v5042_v53 = vadd.f32 %v5041_v22, %v5040_v0  ;;  %v1835_v38 = vadd.f32 %v5039_v55, %v7302_v45 }
 0x214   : > { %v5149_v47 = vpop.f32.mrb[56].mxu0  ;;  %2195 = vmatmul.mubr.bf16.gmra.mrb[132].mxu1 %v7055_v12 }
 0x215   : > { %v5150_v50 = vpop.f32.mrb[57].mxu0  ;;  %2202 = vmatprep.mubr.bf16.mxu1 %v7200_v15  ;;  %v1838_v5 = vadd.f32 %v5042_v53, %v7302_v45 }
 0x216   : > { %v5151_v21 = vadd.f32 %v5150_v50, %v5149_v47  ;;  %v5152_v48 = vpop.f32.mrb[58].mxu0 }
 0x217   : > { %v5043_v40 = vpop.f32.mrb[28].mxu1  ;;  %v5153_v36 = vpop.f32.mrb[59].mxu0 }
 0x218   : > { %v7368_v62 = vadd.f32 %v5151_v21, %v1835_v38  ;;  %v5154_v30 = vadd.f32 %v5153_v36, %v5152_v48  ;;  %v5044_v20 = vpop.f32.mrb[29].mxu1  ;;  %v1070_v36 = vrot.slane %v7220_v33, 2 }
 0x219   : > { %v5045_v39 = vadd.f32 %v5044_v20, %v5043_v40  ;;  %v5046_v58 = vpop.f32.mrb[30].mxu1  ;;  %v1069_v40 = vrot.slane %v7218_v2, 2 }
 0x21a   : > { %v7371_v4 = vadd.f32 %v5154_v30, %v1838_v5  ;;  %v5047_v12 = vpop.f32.mrb[31].mxu1  ;;  %v1072_v30 = vrot.slane %v7247_v3, 2 }
 0x21b   : > { %v5048_v25 = vadd.f32 %v5047_v12, %v5046_v58  ;;  %v1843_v52 = vadd.f32 %v5045_v39, %v7302_v45 }
 0x21c   : > { %v5155_v37 = vpop.f32.mrb[60].mxu0  ;;  %2203 = vmatmul.mubr.bf16.gmra.mrb[136].mxu1 %v7062_v1 }
 0x21d   : > { %v5156_v35 = vpop.f32.mrb[61].mxu0  ;;  %2210 = vmatprep.mubr.bf16.mxu1 %v7224_v57  ;;  %v1846_v22 = vadd.f32 %v5048_v25, %v7302_v45 }
 0x21e   : > { %v5157_v10 = vadd.f32 %v5156_v35, %v5155_v37  ;;  %v5158_v29 = vpop.f32.mrb[62].mxu0  ;;  %v1071_v37 = vsel %vm988_vm3, %v1069_v40, %v1070_v36 }
 0x21f   : > { %v5049_v6 = vpop.f32.mrb[32].mxu1  ;;  %v5159_v55 = vpop.f32.mrb[63].mxu0 }
 0x220   : > { %v7379_v0 = vadd.f32 %v5157_v10, %v1843_v52  ;;  %v5160_v53 = vadd.f32 %v5159_v55, %v5158_v29  ;;  %v5050_v47 = vpop.f32.mrb[33].mxu1 }
 0x221   : > { %v5051_v50 = vadd.f32 %v5050_v47, %v5049_v6  ;;  %v5052_v38 = vpop.f32.mrb[34].mxu1 }
 0x222   : > { %v7382_v1 = vadd.f32 %v5160_v53, %v1846_v22  ;;  %v5053_v21 = vpop.f32.mrb[35].mxu1  ;;  %v6294_v53 = vld [vmem:[%s8991_s5 + $0x8] sm:$0xff]  }
 0x223   : > { %v5054_v48 = vadd.f32 %v5053_v21, %v5052_v38  ;;  %v1851_v39 = vadd.f32 %v5051_v50, %v7302_v45  ;;  %6037 = vmatprep.subr.bf16.mxu0 %v6294_v53 }
 0x224   : > { %v5161_v5 = vpop.f32.mrb[64].mxu0  ;;  %2211 = vmatmul.mubr.bf16.gmra.mrb[140].mxu1 %v7097_v11  ;;  %v1073_v11 = vsel %vm988_vm3, %v1070_v36, %v1072_v30  ;;  %6038 = vmatpush3.bf16.msra.mxu0 %v6294_v53 }
 0x225   : > { %v5162_v20 = vpop.f32.mrb[65].mxu0  ;;  %2218 = vmatprep.mubr.bf16.mxu1 %v7236_v19  ;;  %v1854_v2 = vadd.f32 %v5054_v48, %v7302_v45  ;;  %v7397_v22 = vpack.c.bf16 %v1073_v11, %v1071_v37 }
 0x226   : > { %v5163_v58 = vadd.f32 %v5162_v20, %v5161_v5  ;;  %v5164_v12 = vpop.f32.mrb[66].mxu0 }
 0x227   : > { %v5055_v25 = vpop.f32.mrb[36].mxu1  ;;  %v5165_v18 = vpop.f32.mrb[67].mxu0 }
 0x228   : > { %v7391_v35 = vadd.f32 %v5163_v58, %v1851_v39  ;;  %v5166_v33 = vadd.f32 %v5165_v18, %v5164_v12  ;;  %v5056_v52 = vpop.f32.mrb[37].mxu1 }
 0x229   : > { %v5057_v3 = vadd.f32 %v5056_v52, %v5055_v25  ;;  %v5058_v10 = vpop.f32.mrb[38].mxu1 }
 0x22a   : > { %v7395_v29 = vadd.f32 %v5166_v33, %v1854_v2  ;;  %v5059_v6 = vpop.f32.mrb[39].mxu1 }
 0x22b   : > { %v5060_v55 = vadd.f32 %v5059_v6, %v5058_v10  ;;  %v1859_v38 = vadd.f32 %v5057_v3, %v7302_v45 }
 0x22c   : > { %v5167_v47 = vpop.f32.mrb[68].mxu0  ;;  %2219 = vmatmul.mubr.bf16.gmra.mrb[144].mxu1 %v7104_v14 }
 0x22d   : > { %v5168_v50 = vpop.f32.mrb[69].mxu0  ;;  %2226 = vmatprep.mubr.bf16.mxu1 %v7397_v22  ;;  %v1862_v30 = vadd.f32 %v5060_v55, %v7302_v45 }
 0x22e   : > { %v5169_v21 = vadd.f32 %v5168_v50, %v5167_v47  ;;  %v5170_v48 = vpop.f32.mrb[70].mxu0 }
 0x22f   : > { %v5061_v40 = vpop.f32.mrb[40].mxu1  ;;  %v5171_v36 = vpop.f32.mrb[71].mxu0 }
 0x230   : > { %v7405_v5 = vadd.f32 %v5169_v21, %v1859_v38  ;;  %v5172_v20 = vadd.f32 %v5171_v36, %v5170_v48  ;;  %v5062_v39 = vpop.f32.mrb[41].mxu1 }
 0x231   : > { %v7408_v58 = vadd.f32 %v5062_v39, %v5061_v40  ;;  %v5064_v14 = vpop.f32.mrb[42].mxu1 }
 0x232   : > { %v7410_v12 = vadd.f32 %v5172_v20, %v1862_v30  ;;  %v5065_v25 = vpop.f32.mrb[43].mxu1 }
 0x233   : > { %v7412_v18 = vadd.f32 %v5065_v25, %v5064_v14 }
 0x234   : > { %9013 = vst [vmem:[#allocation3_spill] sm:$0xff] %v7410_v12  ;;  %2227 = vmatmul.mubr.bf16.gmra.mrb[148].mxu1 %v7276_v63  ;;  %v5337_v37 = vpop.f32.mrb[72].mxu0  ;;  %v6295_v63 = vld [vmem:[%s8991_s5 + $0x10] sm:$0xff]  }
 0x235   : > { %v5338_v2 = vpop.f32.mrb[73].mxu0  ;;  %6003 = vmatprep.mubr.bf16.mxu1 %v6778_v32  ;;  %6039 = vmatprep.subr.bf16.mxu0 %v6295_v63 }
 0x236   : > { %v7416_v33 = vadd.f32 %v5338_v2, %v5337_v37  ;;  %v5340_v52 = vpop.f32.mrb[74].mxu0  ;;  %6040 = vmatpush3.bf16.msra.mxu0 %v6295_v63 }
 0x237   : > { %v5067_v11 = vpop.f32.mrb[44].mxu1  ;;  %v5341_v3 = vpop.f32.mrb[75].mxu0 }
 0x238   : > { %v7418_v10 = vadd.f32 %v5341_v3, %v5340_v52  ;;  %v5068_v6 = vpop.f32.mrb[45].mxu1 }
 0x239   : > { %v7420_v55 = vadd.f32 %v5068_v6, %v5067_v11  ;;  %v5070_v53 = vpop.f32.mrb[46].mxu1 }
 0x23a   : > { %v5071_v47 = vpop.f32.mrb[47].mxu1 }
 0x23b   : > { %v7422_v50 = vadd.f32 %v5071_v47, %v5070_v53 }
 0x23c   : > { %v5343_v38 = vpop.f32.mrb[76].mxu0  ;;  %6004 = vmatmul.mubr.bf16.vlgmr.msra.gmra.mrb[152].mxu1 %v6817_v61 }
 0x23d   : > { %v5344_v32 = vpop.f32.mrb[77].mxu0  ;;  %6007 = vmatprep.mubr.bf16.mxu1 %v6857_v42 }
 0x23e   : > { %v7429_v21 = vadd.f32 %v5344_v32, %v5343_v38  ;;  %v5346_v48 = vpop.f32.mrb[78].mxu0 }
 0x23f   : > { %v5073_v40 = vpop.f32.mrb[48].mxu1  ;;  %v5347_v36 = vpop.f32.mrb[79].mxu0 }
 0x240   : > { %v7431_v30 = vadd.f32 %v5347_v36, %v5346_v48  ;;  %v5074_v20 = vpop.f32.mrb[49].mxu1 }
 0x241   : > { %v7433_v39 = vadd.f32 %v5074_v20, %v5073_v40  ;;  %v5076_v14 = vpop.f32.mrb[50].mxu1 }
 0x242   : > { %v5077_v25 = vpop.f32.mrb[51].mxu1 }
 0x243   : > { %v7435_v37 = vadd.f32 %v5077_v25, %v5076_v14 }
 0x244   : > { %v5349_v61 = vpop.f32.mrb[80].mxu0  ;;  %6008 = vmatmul.mubr.bf16.gmra.mrb[156].mxu1 %v6899_v24  ;;  %v6296_v24 = vld [vmem:[%s8991_s5 + $0x18] sm:$0xff]  }
 0x245   : > { %v5350_v42 = vpop.f32.mrb[81].mxu0  ;;  %6011 = vmatprep.mubr.bf16.mxu1 %v6932_v60  ;;  %6041 = vmatprep.subr.bf16.mxu0 %v6296_v24 }
 0x246   : > { %v7439_v2 = vadd.f32 %v5350_v42, %v5349_v61  ;;  %v5352_v52 = vpop.f32.mrb[82].mxu0  ;;  %6042 = vmatpush3.bf16.msra.mxu0 %v6296_v24 }
 0x247   : > { %v5079_v11 = vpop.f32.mrb[52].mxu1  ;;  %v5353_v3 = vpop.f32.mrb[83].mxu0 }
 0x248   : > { %v7441_v6 = vadd.f32 %v5353_v3, %v5352_v52  ;;  %v5080_v53 = vpop.f32.mrb[53].mxu1 }
 0x249   : > { %v7443_v47 = vadd.f32 %v5080_v53, %v5079_v11  ;;  %v5082_v63 = vpop.f32.mrb[54].mxu1 }
 0x24a   : > { %v5083_v38 = vpop.f32.mrb[55].mxu1 }
 0x24b   : > { %v7445_v32 = vadd.f32 %v5083_v38, %v5082_v63 }
 0x24c   : > { %v5355_v48 = vpop.f32.mrb[84].mxu0  ;;  %6012 = vmatmul.mubr.bf16.gmra.mrb[160].mxu1 %v6965_v46 }
 0x24d   : > { %v5356_v60 = vpop.f32.mrb[85].mxu0  ;;  %6015 = vmatprep.mubr.bf16.mxu1 %v6987_v31 }
 0x24e   : > { %v7452_v40 = vadd.f32 %v5356_v60, %v5355_v48  ;;  %v5358_v36 = vpop.f32.mrb[86].mxu0 }
 0x24f   : > { %v5085_v20 = vpop.f32.mrb[56].mxu1  ;;  %v5359_v14 = vpop.f32.mrb[87].mxu0 }
 0x250   : > { %v7454_v25 = vadd.f32 %v5359_v14, %v5358_v36  ;;  %v5086_v61 = vpop.f32.mrb[57].mxu1 }
 0x251   : > { %v7456_v42 = vadd.f32 %v5086_v61, %v5085_v20  ;;  %v5088_v52 = vpop.f32.mrb[58].mxu1 }
 0x252   : > { %v5089_v11 = vpop.f32.mrb[59].mxu1 }
 0x253   : > { %v7458_v3 = vadd.f32 %v5089_v11, %v5088_v52 }
 0x254   : > { %v5361_v46 = vpop.f32.mrb[88].mxu0  ;;  %6016 = vmatmul.mubr.bf16.gmra.mrb[164].mxu1 %v7017_v16  ;;  %v6297_v16 = vld [vmem:[%s8991_s5 + $0x20] sm:$0xff]  }
 0x255   : > { %v5362_v31 = vpop.f32.mrb[89].mxu0  ;;  %6019 = vmatprep.mubr.bf16.mxu1 %v7131_v51  ;;  %6043 = vmatprep.subr.bf16.mxu0 %v6297_v16 }
 0x256   : > { %v7462_v53 = vadd.f32 %v5362_v31, %v5361_v46  ;;  %v5364_v63 = vpop.f32.mrb[90].mxu0  ;;  %6044 = vmatpush3.bf16.msra.mxu0 %v6297_v16 }
 0x257   : > { %v5091_v38 = vpop.f32.mrb[60].mxu1  ;;  %v5365_v24 = vpop.f32.mrb[91].mxu0 }
 0x258   : > { %v7464_v48 = vadd.f32 %v5365_v24, %v5364_v63  ;;  %v5092_v60 = vpop.f32.mrb[61].mxu1 }
 0x259   : > { %v7466_v36 = vadd.f32 %v5092_v60, %v5091_v38  ;;  %v5094_v20 = vpop.f32.mrb[62].mxu1  ;;  %v1867_v60 = vadd.f32 %v7408_v58, %v7302_v45 }
 0x25a   : > { %v5095_v14 = vpop.f32.mrb[63].mxu1 }
 0x25b   : > { %v7468_v61 = vadd.f32 %v5095_v14, %v5094_v20 }
 0x25c   : > { %v5367_v52 = vpop.f32.mrb[92].mxu0  ;;  %6020 = vmatmul.mubr.bf16.gmra.mrb[168].mxu1 %v7154_v43 }
 0x25d   : > { %v5368_v51 = vpop.f32.mrb[93].mxu0  ;;  %6023 = vmatprep.mubr.bf16.mxu1 %v7177_v44  ;;  %v1870_v44 = vadd.f32 %v7412_v18, %v7302_v45  ;;  %v1875_v18 = vadd.f32 %v7420_v55, %v7302_v45 }
 0x25e   : > { %v7475_v11 = vadd.f32 %v5368_v51, %v5367_v52  ;;  %v5370_v46 = vpop.f32.mrb[94].mxu0 }
 0x25f   : > { %v5173_v31 = vpop.f32.mrb[64].mxu1  ;;  %v5371_v63 = vpop.f32.mrb[95].mxu0 }
 0x260   : > { %v7477_v38 = vadd.f32 %v5371_v63, %v5370_v46  ;;  %v5174_v24 = vpop.f32.mrb[65].mxu1 }
 0x261   : > { %v5175_v20 = vadd.f32 %v5174_v24, %v5173_v31  ;;  %v5176_v14 = vpop.f32.mrb[66].mxu1 }
 0x262   : > { %v5177_v7 = vpop.f32.mrb[67].mxu1 }
 0x263   : > { %v7481_v43 = vadd.f32 %v5175_v20, %v1867_v60  ;;  %v5178_v52 = vadd.f32 %v5177_v7, %v5176_v14 }
 0x264   : > { %v5373_v51 = vpop.f32.mrb[96].mxu0  ;;  %6024 = vmatmul.mubr.bf16.gmra.mrb[172].mxu1 %v7200_v15 }
 0x265   : > { %v7486_v16 = vadd.f32 %v5178_v52, %v1870_v44  ;;  %v5374_v46 = vpop.f32.mrb[97].mxu0  ;;  %6027 = vmatprep.mubr.bf16.mxu1 %v7224_v57  ;;  %v1878_v44 = vadd.f32 %v7422_v50, %v7302_v45  ;;  %v6298_v52 = vld [vmem:[%s8991_s5 + $0x28] sm:$0xff]  }
 0x266   : > { %v7489_v63 = vadd.f32 %v5374_v46, %v5373_v51  ;;  %v5376_v58 = vpop.f32.mrb[98].mxu0  ;;  %6045 = vmatprep.subr.bf16.mxu0 %v6298_v52 }
 0x267   : > { %v5179_v31 = vpop.f32.mrb[68].mxu1  ;;  %v5377_v24 = vpop.f32.mrb[99].mxu0  ;;  %6046 = vmatpush3.bf16.msra.mxu0 %v6298_v52  ;;  %v9016_v52 = vpack.c.bf16 %v7332_v17, %v7329_v23  ;;  %v1894_v23 = vadd.f32 %v7445_v32, %v7302_v45 }
 0x268   : > { %v7491_v12 = vadd.f32 %v5377_v24, %v5376_v58  ;;  %v5180_v60 = vpop.f32.mrb[69].mxu1 }
 0x269   : > { %v5181_v7 = vadd.f32 %v5180_v60, %v5179_v31  ;;  %v5182_v20 = vpop.f32.mrb[70].mxu1 }
 0x26a   : > { %v5183_v14 = vpop.f32.mrb[71].mxu1 }
 0x26b   : > { %v7495_v15 = vadd.f32 %v5181_v7, %v1875_v18  ;;  %v5184_v57 = vadd.f32 %v5183_v14, %v5182_v20  ;;  %v1883_v7 = vadd.f32 %v7433_v39, %v7302_v45 }
 0x26c   : > { %v5379_v51 = vpop.f32.mrb[100].mxu0  ;;  %6028 = vmatmul.mubr.bf16.gmra.mrb[176].mxu1 %v7236_v19 }
 0x26d   : > { %v7503_v46 = vadd.f32 %v5184_v57, %v1878_v44  ;;  %v5380_v58 = vpop.f32.mrb[101].mxu0  ;;  %6031 = vmatprep.mubr.bf16.mxu1 %v7397_v22  ;;  %v1886_v22 = vadd.f32 %v7435_v37, %v7302_v45  ;;  %v1891_v37 = vadd.f32 %v7443_v47, %v7302_v45  ;;  %v6300_v47 = vld [vmem:[%s8992_s6 + $0x40] sm:$0xff]  }
 0x26e   : > { %v7506_v55 = vadd.f32 %v5380_v58, %v5379_v51  ;;  %v5382_v31 = vpop.f32.mrb[102].mxu0  ;;  %5481 = vmatprep.subr.bf16.mxu1 %v6300_v47 }
 0x26f   : > { %9014 = vst [vmem:[#allocation4_spill] sm:$0xff] %v7503_v46  ;;  %v5185_v24 = vpop.f32.mrb[72].mxu1  ;;  %v5383_v50 = vpop.f32.mrb[103].mxu0 }
 0x270   : > { %v7508_v60 = vadd.f32 %v5383_v50, %v5382_v31  ;;  %v5186_v18 = vpop.f32.mrb[73].mxu1 }
 0x271   : > { %v5187_v20 = vadd.f32 %v5186_v18, %v5185_v24  ;;  %v5188_v19 = vpop.f32.mrb[74].mxu1 }
 0x272   : > { %v5189_v14 = vpop.f32.mrb[75].mxu1 }
 0x273   : > { %v7512_v44 = vadd.f32 %v5187_v20, %v1883_v7  ;;  %v5190_v57 = vadd.f32 %v5189_v14, %v5188_v19 }
 0x274   : > { %v5385_v51 = vpop.f32.mrb[104].mxu0  ;;  %6032 = vmatmul.mubr.bf16.gmra.mrb[180].mxu1 %v9016_v52 }
 0x275   : > { %9015 = vst [vmem:[#allocation5_spill] sm:$0xff] %v7512_v44  ;;  %v7519_v58 = vadd.f32 %v5190_v57, %v1886_v22  ;;  %v5386_v31 = vpop.f32.mrb[105].mxu0  ;;  %v6299_v22 = vld [vmem:[%s8991_s5 + $0x30] sm:$0xff]  }
 0x276   : > { %v7521_v50 = vadd.f32 %v5386_v31, %v5385_v51  ;;  %v5388_v39 = vpop.f32.mrb[106].mxu0  ;;  %6047 = vmatprep.subr.bf16.mxu0 %v6299_v22  ;;  %v6301_v31 = vld [vmem:[%s8992_s6] sm:$0xff]  }
 0x277   : > { %v5191_v24 = vpop.f32.mrb[76].mxu1  ;;  %v5389_v18 = vpop.f32.mrb[107].mxu0  ;;  %6048 = vmatpush3.bf16.msra.mxu0 %v6299_v22  ;;  %5482 = vmatpush3.bf16.msra.mxu1 %v6301_v31  ;;  %v6302_v22 = vld [vmem:[%s8992_s6 + $0x48] sm:$0xff]  }
 0x278   : > { %v7523_v46 = vadd.f32 %v5389_v18, %v5388_v39  ;;  %v5192_v7 = vpop.f32.mrb[77].mxu1  ;;  %5483 = vmatprep.subr.bf16.mxu1 %v6302_v22 }
 0x279   : > { %v5193_v20 = vadd.f32 %v5192_v7, %v5191_v24  ;;  %v5194_v19 = vpop.f32.mrb[78].mxu1 }
 0x27a   : > { %v5195_v14 = vpop.f32.mrb[79].mxu1 }
 0x27b   : > { %v7527_v44 = vadd.f32 %v5193_v20, %v1891_v37  ;;  %v5196_v17 = vadd.f32 %v5195_v14, %v5194_v19  ;;  %v1899_v20 = vadd.f32 %v7456_v42, %v7302_v45  ;;  %v6303_v42 = vld [vmem:[%s8992_s6 + $0x8] sm:$0xff]  }
 0x27c   : > { %v5391_v57 = vpop.f32.mrb[108].mxu0  ;;  %5484 = vmatpush3.bf16.msra.mxu1 %v6303_v42 }
 0x27d   : > { %v7534_v51 = vadd.f32 %v5196_v17, %v1894_v23  ;;  %v5392_v52 = vpop.f32.mrb[109].mxu0  ;;  %v1902_v17 = vadd.f32 %v7458_v3, %v7302_v45  ;;  %v6304_v3 = vld [vmem:[%s8992_s6 + $0x50] sm:$0xff]  }
 0x27e   : > { %v7542_v39 = vadd.f32 %v5392_v52, %v5391_v57  ;;  %v5394_v32 = vpop.f32.mrb[110].mxu0  ;;  %5485 = vmatprep.subr.bf16.mxu1 %v6304_v3  ;;  %v6307_v3 = vld [vmem:[%s8992_s6 + $0x58] sm:$0xff]  }
 0x27f   : > { %9017 = vst [vmem:[#allocation6_spill] sm:$0xff] %v7534_v51  ;;  %v5197_v24 = vpop.f32.mrb[80].mxu1  ;;  %v5395_v18 = vpop.f32.mrb[111].mxu0 }
 0x280   : > { %v7544_v7 = vadd.f32 %v5395_v18, %v5394_v32  ;;  %v5198_v37 = vpop.f32.mrb[81].mxu1 }
 0x281   : > { %v5199_v19 = vadd.f32 %v5198_v37, %v5197_v24  ;;  %v5200_v14 = vpop.f32.mrb[82].mxu1 }
 0x282   : > { %v5201_v23 = vpop.f32.mrb[83].mxu1 }
 0x283   : > { %v7550_v57 = vadd.f32 %v5199_v19, %v1899_v20  ;;  %v5202_v52 = vadd.f32 %v5201_v23, %v5200_v14  ;;  %v6305_v19 = vld [vmem:[%s8992_s6 + $0x10] sm:$0xff]  }
 0x284   : > { %v5397_v47 = vpop.f32.mrb[112].mxu0  ;;  %5486 = vmatpush3.bf16.msra.mxu1 %v6305_v19 }
 0x285   : > { %9018 = vst [vmem:[#allocation7_spill] sm:$0xff] %v7550_v57  ;;  %v7555_v32 = vadd.f32 %v5202_v52, %v1902_v17  ;;  %v5398_v31 = vpop.f32.mrb[113].mxu0  ;;  %v1907_v17 = vadd.f32 %v7466_v36, %v7302_v45  ;;  %5487 = vmatprep.subr.bf16.mxu1 %v6307_v3 }
 0x286   : > { %v7563_v24 = vadd.f32 %v5398_v31, %v5397_v47  ;;  %v5400_v18 = vpop.f32.mrb[114].mxu0  ;;  %v1910_v47 = vadd.f32 %v7468_v61, %v7302_v45  ;;  %v6308_v45 = vld [vmem:[%s8992_s6 + $0x18] sm:$0xff]   ;;  %v6309_v61 = vld [vmem:[%s8992_s6 + $0x60] sm:$0xff]  }
 0x287   : > { %9019 = vst [vmem:[#allocation8_spill] sm:$0xff] %v7555_v32  ;;  %v5203_v37 = vpop.f32.mrb[84].mxu1  ;;  %v5401_v20 = vpop.f32.mrb[115].mxu0 }
 0x288   : > { %v7568_v14 = vadd.f32 %v5401_v20, %v5400_v18  ;;  %v5204_v23 = vpop.f32.mrb[85].mxu1  ;;  %v6306_v18 = vld [vmem:[%s8991_s5 + $0x38] sm:$0xff]   ;;  %5488 = vmatpush3.bf16.msra.mxu1 %v6308_v45 }
 0x289   : > { %v5205_v52 = vadd.f32 %v5204_v23, %v5203_v37  ;;  %v5206_v22 = vpop.f32.mrb[86].mxu1  ;;  %6049 = vmatprep.subr.bf16.mxu0 %v6306_v18  ;;  %5489 = vmatprep.subr.bf16.mxu1 %v6309_v61  ;;  %v6311_v61 = vld [vmem:[%s8992_s6 + $0x68] sm:$0xff]  }
 0x28a   : > { %v5207_v32 = vpop.f32.mrb[87].mxu1  ;;  %6050 = vmatpush3.bf16.msra.mxu0 %v6306_v18 }
 0x28b   : > { %v7574_v31 = vadd.f32 %v5205_v52, %v1907_v17  ;;  %v5208_v42 = vadd.f32 %v5207_v32, %v5206_v22  ;;  %v6310_v52 = vld [vmem:[%s8992_s6 + $0x20] sm:$0xff]  }
 0x28c   : > { %v5403_v20 = vpop.f32.mrb[116].mxu0  ;;  %5490 = vmatpush3.bf16.msra.mxu1 %v6310_v52 }
 0x28d   : > { %9020 = vst [vmem:[#allocation9_spill] sm:$0xff] %v7574_v31  ;;  %v7582_v36 = vadd.f32 %v5208_v42, %v1910_v47  ;;  %v5404_v37 = vpop.f32.mrb[117].mxu0  ;;  %5491 = vmatprep.subr.bf16.mxu1 %v6311_v61 }
 0x28e   : > { %v7590_v32 = vadd.f32 %v5404_v37, %v5403_v20  ;;  %v5406_v19 = vpop.f32.mrb[118].mxu0 }
 0x28f   : > { %9021 = vst [vmem:[#allocation10_spill] sm:$0xff] %v7582_v36  ;;  %v5225_v23 = vpop.f32.mrb[88].mxu1  ;;  %v5407_v17 = vpop.f32.mrb[119].mxu0 }
 0x290   : > { %v7595_v22 = vadd.f32 %v5407_v17, %v5406_v19  ;;  %v5226_v47 = vpop.f32.mrb[89].mxu1 }
 0x291   : > { %v5227_v42 = vadd.f32 %v5226_v47, %v5225_v23  ;;  %v5228_v3 = vpop.f32.mrb[90].mxu1 }
 0x292   : > { %v5229_v36 = vpop.f32.mrb[91].mxu1 }
 0x293   : > { %v2109_v31 = vadd.f32 %v5227_v42, %v7310_v27  ;;  %v5230_v20 = vadd.f32 %v5229_v36, %v5228_v3 }
 0x294   : > { %v5409_v37 = vpop.f32.mrb[120].mxu0 }
 0x295   : > { %v2112_v18 = vadd.f32 %v5230_v20, %v7312_v34  ;;  %v5410_v57 = vpop.f32.mrb[121].mxu0  ;;  %v7600_v45 = vadd.f32 %v7416_v33, %v2109_v31  ;;  %v6312_v34 = vld [vmem:[%s8992_s6 + $0x28] sm:$0xff]   ;;  %v6313_v33 = vld [vmem:[%s8992_s6 + $0x70] sm:$0xff]  }
 0x296   : > { %v7602_v51 = vadd.f32 %v5410_v57, %v5409_v37  ;;  %v5412_v19 = vpop.f32.mrb[122].mxu0  ;;  %5492 = vmatpush3.bf16.msra.mxu1 %v6312_v34  ;;  %v7634_v34 = vld [vmem:[#allocation2] sm:$0xff] }
 0x297   : > { %9022 = vst [vmem:[#allocation11_spill] sm:$0xff] %v7600_v45  ;;  %v5231_v23 = vpop.f32.mrb[92].mxu1  ;;  %v5413_v17 = vpop.f32.mrb[123].mxu0  ;;  %v7608_v27 = vadd.f32 %v7418_v10, %v2112_v18  ;;  %v6314_v10 = vld [vmem:[%s8992_s6 + $0x30] sm:$0xff]   ;;  %5493 = vmatprep.subr.bf16.mxu1 %v6313_v33 }
 0x298   : > { %v7616_v57 = vadd.f32 %v5413_v17, %v5412_v19  ;;  %v5232_v31 = vpop.f32.mrb[93].mxu1  ;;  %v6315_v17 = vld [vmem:[%s8992_s6 + $0x78] sm:$0xff]  }
 0x299   : > { %9023 = vst [vmem:[#allocation12_spill] sm:$0xff] %v7608_v27  ;;  %v5233_v36 = vadd.f32 %v5232_v31, %v5231_v23  ;;  %v5234_v52 = vpop.f32.mrb[94].mxu1 }
 0x29a   : > { %v5235_v47 = vpop.f32.mrb[95].mxu1  ;;  %5494 = vmatpush3.bf16.msra.mxu1 %v6314_v10 }
 0x29b   : > { %v2117_v42 = vadd.f32 %v5233_v36, %v7318_v28  ;;  %v5236_v3 = vadd.f32 %v5235_v47, %v5234_v52  ;;  %v6316_v28 = vld [vmem:[%s8992_s6 + $0xc0] sm:$0xff]   ;;  %v7642_v36 = vld [vmem:[#allocation2 + $0x8] sm:$0xff]  ;;  %v2970_v52 = vrot.slane %v7634_v34, 1  ;;  %5495 = vmatprep.subr.bf16.mxu1 %v6315_v17 }
 0x29c   : > { %v5415_v20 = vpop.f32.mrb[124].mxu0  ;;  %5593 = vmatprep.subr.bf16.mxu0 %v6316_v28  ;;  %v3222_v17 = vpack.c.bf16 %v7642_v36, %v7634_v34 }
 0x29d   : > { %v2120_v37 = vadd.f32 %v5236_v3, %v7320_v8  ;;  %v5416_v18 = vpop.f32.mrb[125].mxu0  ;;  %v7624_v19 = vadd.f32 %v7429_v21, %v2117_v42  ;;  %v6317_v21 = vld [vmem:[%s8992_s6 + $0x38] sm:$0xff]   ;;  %v7647_v42 = vld [vmem:[#allocation2 + $0x10] sm:$0x3]  ;;  %v2971_v3 = vrot.slane %v7642_v36, 1 }
 0x29e   : > { %v7626_v61 = vadd.f32 %v5416_v18, %v5415_v20  ;;  %v5418_v23 = vpop.f32.mrb[126].mxu0  ;;  %5496 = vmatpush3.bf16.msra.mxu1 %v6317_v21 }
 0x29f   : > { %9024 = vst [vmem:[#allocation13_spill] sm:$0xff] %v7624_v19  ;;  %v5237_v33 = vpop.f32.mrb[96].mxu1  ;;  %v5419_v8 = vpop.f32.mrb[127].mxu0  ;;  %v7637_v31 = vadd.f32 %v7431_v30, %v2120_v37  ;;  %v2973_v37 = vrot.slane %v7647_v42, 1  ;;  %v2972_v27 = vsel %vm861_vm2, %v2970_v52, %v2971_v3 }
 0x2a0   : > { %v7645_v10 = vadd.f32 %v5419_v8, %v5418_v23  ;;  %v5238_v47 = vpop.f32.mrb[97].mxu1 }
 0x2a1   : > { %9025 = vst [vmem:[#allocation14_spill] sm:$0xff] %v7637_v31  ;;  %v5239_v20 = vadd.f32 %v5238_v47, %v5237_v33  ;;  %v5240_v30 = vpop.f32.mrb[98].mxu1  ;;  %v2974_v23 = vsel %vm861_vm2, %v2971_v3, %v2973_v37 }
 0x2a2   : > { %9026 = vst [vmem:[#allocation15_spill] sm:$0xff] %v7645_v10  ;;  %v5241_v18 = vpop.f32.mrb[99].mxu1  ;;  %v3223_v8 = vpack.c.bf16 %v2974_v23, %v2972_v27 }
 0x2a3   : > { %v2125_v31 = vadd.f32 %v5239_v20, %v7334_v54  ;;  %v5242_v45 = vadd.f32 %v5241_v18, %v5240_v30 }
 0x2a4   : > { %v5421_v28 = vpop.f32.mrb[128].mxu0  ;;  %3891 = vmatprep.mubr.bf16.mxu1 %v3223_v8 }
 0x2a5   : > { %v2128_v19 = vadd.f32 %v5242_v45, %v7339_v26  ;;  %v5422_v33 = vpop.f32.mrb[129].mxu0  ;;  %v7658_v21 = vadd.f32 %v7439_v2, %v2125_v31  ;;  %3892 = vmatmul.mubr.bf16.vlgmr.msra.gmra.mrb[184].mxu1 %v3222_v17 }
 0x2a6   : > { %v7660_v47 = vadd.f32 %v5422_v33, %v5421_v28  ;;  %v5424_v10 = vpop.f32.mrb[130].mxu0 }
 0x2a7   : > { %v5243_v52 = vpop.f32.mrb[100].mxu1  ;;  %v5425_v54 = vpop.f32.mrb[131].mxu0  ;;  %v7663_v20 = vadd.f32 %v7441_v6, %v2128_v19 }
 0x2a8   : > { %v7665_v3 = vadd.f32 %v5425_v54, %v5424_v10  ;;  %v5244_v30 = vpop.f32.mrb[101].mxu1 }
 0x2a9   : > { %v5245_v27 = vadd.f32 %v5244_v30, %v5243_v52  ;;  %v5246_v37 = vpop.f32.mrb[102].mxu1 }
 0x2aa   : > { %v5247_v26 = vpop.f32.mrb[103].mxu1 }
 0x2ab   : > { %v2133_v45 = vadd.f32 %v5245_v27, %v7344_v13  ;;  %v5248_v2 = vadd.f32 %v5247_v26, %v5246_v37 }
 0x2ac   : > { %v5427_v31 = vpop.f32.mrb[132].mxu0 }
 0x2ad   : > { %v2136_v18 = vadd.f32 %v5248_v2, %v7347_v9  ;;  %v5428_v23 = vpop.f32.mrb[133].mxu0  ;;  %v7670_v28 = vadd.f32 %v7452_v40, %v2133_v45 }
 0x2ae   : > { %v7672_v8 = vadd.f32 %v5428_v23, %v5427_v31  ;;  %v5430_v6 = vpop.f32.mrb[134].mxu0 }
 0x2af   : > { %v5249_v19 = vpop.f32.mrb[104].mxu1  ;;  %v5431_v10 = vpop.f32.mrb[135].mxu0  ;;  %v7675_v17 = vadd.f32 %v7454_v25, %v2136_v18 }
 0x2b0   : > { %v5250_v33 = vpop.f32.mrb[105].mxu1  ;;  %v7677_v52 = vadd.f32 %v5431_v10, %v5430_v6 }
 0x2b1   : > { %v5251_v13 = vadd.f32 %v5250_v33, %v5249_v19  ;;  %v5252_v54 = vpop.f32.mrb[106].mxu1 }
 0x2b2   : > { %v5253_v30 = vpop.f32.mrb[107].mxu1 }
 0x2b3   : > { %v2141_v9 = vadd.f32 %v5251_v13, %v7352_v41  ;;  %v5254_v27 = vadd.f32 %v5253_v30, %v5252_v54 }
 0x2b5   : > { %v2144_v40 = vadd.f32 %v5254_v27, %v7355_v49  ;;  %v7682_v37 = vadd.f32 %v7462_v53, %v2141_v9 }
 0x2b7   : > { %v5255_v26 = vpop.f32.mrb[108].mxu1  ;;  %v7685_v45 = vadd.f32 %v7464_v48, %v2144_v40 }
 0x2b8   : > { %v5256_v25 = vpop.f32.mrb[109].mxu1 }
 0x2b9   : > { %v5257_v2 = vadd.f32 %v5256_v25, %v5255_v26  ;;  %v5258_v31 = vpop.f32.mrb[110].mxu1 }
 0x2ba   : > { %v5259_v18 = vpop.f32.mrb[111].mxu1 }
 0x2bb   : > { %v2149_v23 = vadd.f32 %v5257_v2, %v7360_v59  ;;  %v5260_v6 = vadd.f32 %v5259_v18, %v5258_v31 }
 0x2bd   : > { %v2152_v19 = vadd.f32 %v5260_v6, %v7363_v56  ;;  %v7690_v41 = vadd.f32 %v7475_v11, %v2149_v23 }
 0x2bf   : > { %v5261_v49 = vpop.f32.mrb[112].mxu1  ;;  %v7693_v53 = vadd.f32 %v7477_v38, %v2152_v19  ;;  %v3096_v19 = vrot.slane %v7634_v34, 2 }
 0x2c0   : > { %v5262_v10 = vpop.f32.mrb[113].mxu1 }
 0x2c1   : > { %v5263_v33 = vadd.f32 %v5262_v10, %v5261_v49  ;;  %v5264_v48 = vpop.f32.mrb[114].mxu1  ;;  %v3097_v49 = vrot.slane %v7642_v36, 2 }
 0x2c2   : > { %v5265_v13 = vpop.f32.mrb[115].mxu1 }
 0x2c3   : > { %v2157_v54 = vadd.f32 %v5263_v33, %v7368_v62  ;;  %v5266_v30 = vadd.f32 %v5265_v13, %v5264_v48 }
 0x2c5   : > { %v2160_v9 = vadd.f32 %v5266_v30, %v7371_v4  ;;  %v7698_v59 = vadd.f32 %v7489_v63, %v2157_v54 }
 0x2c7   : > { %v5267_v56 = vpop.f32.mrb[116].mxu1  ;;  %v7701_v11 = vadd.f32 %v7491_v12, %v2160_v9  ;;  %v9027_v9 = vld [vmem:[#allocation3_spill] sm:$0xff] }
 0x2c8   : > { %v5268_v27 = vpop.f32.mrb[117].mxu1 }
 0x2c9   : > { %v5269_v40 = vadd.f32 %v5268_v27, %v5267_v56  ;;  %v5270_v38 = vpop.f32.mrb[118].mxu1 }
 0x2ca   : > { %v5271_v26 = vpop.f32.mrb[119].mxu1 }
 0x2cb   : > { %v2165_v25 = vadd.f32 %v5269_v40, %v7379_v0  ;;  %v5272_v2 = vadd.f32 %v5271_v26, %v5270_v38  ;;  %v3099_v0 = vrot.slane %v7647_v42, 2 }
 0x2cd   : > { %v2168_v31 = vadd.f32 %v5272_v2, %v7382_v1  ;;  %v7706_v62 = vadd.f32 %v7506_v55, %v2165_v25  ;;  %v7723_v48 = vsel %vm988_vm3, %v3097_v49, %v3099_v0 }
 0x2cf   : > { %v5273_v4 = vpop.f32.mrb[120].mxu1  ;;  %v7709_v63 = vadd.f32 %v7508_v60, %v2168_v31  ;;  %v7720_v60 = vsel %vm988_vm3, %v3096_v19, %v3097_v49 }
 0x2d0   : > { %v5274_v18 = vpop.f32.mrb[121].mxu1 }
 0x2d1   : > { %v5275_v23 = vadd.f32 %v5274_v18, %v5273_v4  ;;  %v5276_v12 = vpop.f32.mrb[122].mxu1 }
 0x2d2   : > { %v5277_v6 = vpop.f32.mrb[123].mxu1 }
 0x2d3   : > { %v2173_v10 = vadd.f32 %v5275_v23, %v7391_v35  ;;  %v5278_v1 = vadd.f32 %v5277_v6, %v5276_v12 }
 0x2d5   : > { %v2176_v55 = vadd.f32 %v5278_v1, %v7395_v29  ;;  %v7717_v33 = vadd.f32 %v7521_v50, %v2173_v10  ;;  %v9028_v10 = vld [vmem:[#allocation4_spill] sm:$0xff] }
 0x2d7   : > { %v5279_v13 = vpop.f32.mrb[124].mxu1  ;;  %v7726_v34 = vadd.f32 %v7523_v46, %v2176_v55 }
 0x2d8   : > { %v5280_v35 = vpop.f32.mrb[125].mxu1 }
 0x2d9   : > { %v5281_v42 = vadd.f32 %v5280_v35, %v5279_v13  ;;  %v5282_v54 = vpop.f32.mrb[126].mxu1 }
 0x2da   : > { %v5283_v29 = vpop.f32.mrb[127].mxu1 }
 0x2db   : > { %v2181_v50 = vadd.f32 %v5281_v42, %v7405_v5  ;;  %v5284_v30 = vadd.f32 %v5283_v29, %v5282_v54  ;;  %v9029_v42 = vld [vmem:[#allocation5_spill] sm:$0xff] }
 0x2dd   : > { %v2184_v56 = vadd.f32 %v5284_v30, %v9027_v9  ;;  %v7733_v27 = vadd.f32 %v7542_v39, %v2181_v50 }
 0x2df   : > { %v5285_v40 = vpop.f32.mrb[128].mxu1  ;;  %v7736_v38 = vadd.f32 %v7544_v7, %v2184_v56 }
 0x2e0   : > { %v5286_v46 = vpop.f32.mrb[129].mxu1 }
 0x2e1   : > { %v5287_v26 = vadd.f32 %v5286_v46, %v5285_v40  ;;  %v5288_v25 = vpop.f32.mrb[130].mxu1 }
 0x2e2   : > { %v5289_v2 = vpop.f32.mrb[131].mxu1 }
 0x2e3   : > { %v2189_v31 = vadd.f32 %v5287_v26, %v7481_v43  ;;  %v5290_v4 = vadd.f32 %v5289_v2, %v5288_v25  ;;  %v9030_v25 = vld [vmem:[#allocation6_spill] sm:$0xff] }
 0x2e5   : > { %v2192_v18 = vadd.f32 %v5290_v4, %v7486_v16  ;;  %v7741_v5 = vadd.f32 %v7563_v24, %v2189_v31 }
 0x2e7   : > { %v5291_v23 = vpop.f32.mrb[132].mxu1  ;;  %v7744_v39 = vadd.f32 %v7568_v14, %v2192_v18 }
 0x2e8   : > { %v5292_v12 = vpop.f32.mrb[133].mxu1 }
 0x2e9   : > { %v5293_v6 = vadd.f32 %v5292_v12, %v5291_v23  ;;  %v5294_v7 = vpop.f32.mrb[134].mxu1 }
 0x2ea   : > { %v5295_v19 = vpop.f32.mrb[135].mxu1 }
 0x2eb   : > { %v2197_v49 = vadd.f32 %v5293_v6, %v7495_v15  ;;  %v5296_v0 = vadd.f32 %v5295_v19, %v5294_v7  ;;  %v6342_v7 = vld [vmem:[%s8992_s6 + $0x108] sm:$0xff]   ;;  %v9032_v19 = vld [vmem:[#allocation7_spill] sm:$0xff] }
 0x2ed   : > { %v2200_v1 = vadd.f32 %v5296_v0, %v9028_v10  ;;  %v7749_v43 = vadd.f32 %v7590_v32, %v2197_v49  ;;  %v9033_v10 = vld [vmem:[#allocation8_spill] sm:$0xff] }
 0x2ef   : > { %v5297_v16 = vpop.f32.mrb[136].mxu1  ;;  %v7752_v24 = vadd.f32 %v7595_v22, %v2200_v1 }
 0x2f0   : > { %v5298_v55 = vpop.f32.mrb[137].mxu1 }
 0x2f1   : > { %v5299_v13 = vadd.f32 %v5298_v55, %v5297_v16  ;;  %v5300_v14 = vpop.f32.mrb[138].mxu1  ;;  %v6343_v55 = vld [vmem:[%s8992_s6 + $0x150] sm:$0xff]  }
 0x2f2   : > { %v5301_v35 = vpop.f32.mrb[139].mxu1 }
 0x2f3   : > { %v2205_v54 = vadd.f32 %v5299_v13, %v9029_v42  ;;  %v5302_v29 = vadd.f32 %v5301_v35, %v5300_v14  ;;  %v6344_v13 = vld [vmem:[%s8992_s6 + $0x110] sm:$0xff]   ;;  %v6345_v14 = vld [vmem:[%s8992_s6 + $0x158] sm:$0xff]  }
 0x2f5   : > { %v2208_v50 = vadd.f32 %v5302_v29, %v7519_v58  ;;  %v7757_v15 = vadd.f32 %v7602_v51, %v2205_v54  ;;  %v6339_v58 = vld [vmem:[%s8992_s6 + $0x140] sm:$0xff]  }
 0x2f6   : > { %v6340_v51 = vld [vmem:[%s8992_s6 + $0x100] sm:$0xff]   ;;  %5705 = vmatprep.subr.bf16.mxu1 %v6339_v58 }
 0x2f7   : > { %v5303_v30 = vpop.f32.mrb[140].mxu1  ;;  %v7760_v32 = vadd.f32 %v7616_v57, %v2208_v50  ;;  %v6341_v57 = vld [vmem:[%s8992_s6 + $0x148] sm:$0xff]   ;;  %5706 = vmatpush3.bf16.msra.mxu1 %v6340_v51 }
 0x2f8   : > { %v5304_v9 = vpop.f32.mrb[141].mxu1  ;;  %5707 = vmatprep.subr.bf16.mxu1 %v6341_v57  ;;  %v9036_v57 = vld [vmem:[#allocation13_spill] sm:$0xff] }
 0x2f9   : > { %v5305_v56 = vadd.f32 %v5304_v9, %v5303_v30  ;;  %v5306_v22 = vpop.f32.mrb[142].mxu1  ;;  %v6347_v30 = vld [vmem:[%s8992_s6 + $0x118] sm:$0xff]   ;;  %v9034_v9 = vld [vmem:[#allocation9_spill] sm:$0xff] }
 0x2fa   : > { %v5307_v40 = vpop.f32.mrb[143].mxu1 }
 0x2fb   : > { %v2213_v46 = vadd.f32 %v5305_v56, %v7527_v44  ;;  %v5308_v26 = vadd.f32 %v5307_v40, %v5306_v22  ;;  %v9031_v44 = vld [vmem:[#allocation15_spill] sm:$0xff]  ;;  %5708 = vmatpush3.bf16.msra.mxu1 %v6342_v7  ;;  %v9035_v40 = vld [vmem:[#allocation10_spill] sm:$0xff] }
 0x2fc   : > { %5709 = vmatprep.subr.bf16.mxu1 %v6343_v55  ;;  %v9038_v7 = vld [vmem:[#allocation14_spill] sm:$0xff] }
 0x2fd   : > { %v2216_v2 = vadd.f32 %v5308_v26, %v9030_v25  ;;  %v7765_v31 = vadd.f32 %v7626_v61, %v2213_v46  ;;  %v6349_v26 = vld [vmem:[%s8992_s6 + $0x160] sm:$0xff]  }
 0x2fe   : > { %v6350_v25 = vld [vmem:[%s8992_s6 + $0x120] sm:$0xff]  }
 0x2ff   : > { %v5309_v4 = vpop.f32.mrb[144].mxu1  ;;  %v7777_v18 = vadd.f32 %v9031_v44, %v2216_v2  ;;  %5710 = vmatpush3.bf16.msra.mxu1 %v6344_v13  ;;  %v6351_v2 = vld [vmem:[%s8992_s6 + $0x168] sm:$0xff]   ;;  %v9037_v44 = vld [vmem:[#allocation11_spill] sm:$0xff]  ;;  %v6375_v13 = vld [vmem:[#allocation2 + $0x39] sm:$0xff] }
 0x300   : > { %v5310_v23 = vpop.f32.mrb[145].mxu1  ;;  %5711 = vmatprep.subr.bf16.mxu1 %v6345_v14 }
 0x301   : > { %v5311_v61 = vadd.f32 %v5310_v23, %v5309_v4  ;;  %v5312_v12 = vpop.f32.mrb[146].mxu1 }
 0x302   : > { %v5313_v6 = vpop.f32.mrb[147].mxu1 }
 0x303   : > { %v2221_v49 = vadd.f32 %v5311_v61, %v9032_v19  ;;  %v5314_v0 = vadd.f32 %v5313_v6, %v5312_v12  ;;  %5712 = vmatpush3.bf16.msra.mxu1 %v6347_v30  ;;  %v6373_v12 = vld [vmem:[#allocation2 + $0x31] sm:$0xff] }
 0x304   : > { %5713 = vmatprep.subr.bf16.mxu1 %v6349_v26  ;;  %v6355_v30 = vld [vmem:[%s8992_s6 + $0x178] sm:$0xff]   ;;  %v6319_v26 = vld [vmem:[%s8992_s6 + $0xc8] sm:$0xff]  }
 0x305   : > { %v2224_v1 = vadd.f32 %v5314_v0, %v9033_v10  ;;  %v7785_v16 = vadd.f32 %v7660_v47, %v2221_v49  ;;  %v6352_v0 = vld [vmem:[%s8992_s6 + $0x128] sm:$0xff]  }
 0x307   : > { %v5315_v35 = vpop.f32.mrb[148].mxu1  ;;  %v7797_v42 = vadd.f32 %v7665_v3, %v2224_v1  ;;  %5714 = vmatpush3.bf16.msra.mxu1 %v6350_v25  ;;  %v9039_v1 = vld [vmem:[#allocation12_spill] sm:$0xff] }
 0x308   : > { %v5316_v54 = vpop.f32.mrb[149].mxu1  ;;  %5715 = vmatprep.subr.bf16.mxu1 %v6351_v2 }
 0x309   : > { %v5317_v47 = vadd.f32 %v5316_v54, %v5315_v35  ;;  %v5318_v29 = vpop.f32.mrb[150].mxu1  ;;  %v6376_v35 = vld [vmem:[#allocation2 + $0x21] sm:$0xff] }
 0x30a   : > { %v5319_v50 = vpop.f32.mrb[151].mxu1 }
 0x30b   : > { %v2229_v56 = vadd.f32 %v5317_v47, %v9034_v9  ;;  %v5320_v22 = vadd.f32 %v5319_v50, %v5318_v29  ;;  %5716 = vmatpush3.bf16.msra.mxu1 %v6352_v0  ;;  %v6353_v47 = vld [vmem:[%s8992_s6 + $0x170] sm:$0xff]  }
 0x30c   : > { %v6354_v29 = vld [vmem:[%s8992_s6 + $0x130] sm:$0xff]   ;;  %5717 = vmatprep.subr.bf16.mxu1 %v6353_v47 }
 0x30d   : > { %v2232_v46 = vadd.f32 %v5320_v22, %v9035_v40  ;;  %v7805_v3 = vadd.f32 %v7672_v8, %v2229_v56  ;;  %v6318_v22 = vld [vmem:[%s8992_s6 + $0x80] sm:$0xff]  }
 0x30f   : > { %v6005_v58 = vpop.f32.mrb[152].mxu1  ;;  %v7817_v51 = vadd.f32 %v7677_v52, %v2232_v46  ;;  %v6374_v52 = vld [vmem:[#allocation2 + $0x19] sm:$0xff]  ;;  %5718 = vmatpush3.bf16.msra.mxu1 %v6354_v29 }
 0x310   : > { %v2439_v8 = vadd.f32 %v6005_v58, %v9036_v57  ;;  %v2430_v4 = vpop.f32.mrb[153].mxu1  ;;  %5719 = vmatprep.subr.bf16.mxu1 %v6355_v30  ;;  %v6377_v58 = vld [vmem:[#allocation2 + $0x61] sm:$0xff] }
 0x311   : > { %v2431_v23 = vadd.f32 %v2430_v4, %v9037_v44  ;;  %v6006_v61 = vpop.f32.mrb[154].mxu1  ;;  %v6378_v44 = vld [vmem:[#allocation2 + $0x49] sm:$0xff] }
 0x312   : > { %v2559_v6 = vadd.f32 %v6373_v12, %v2439_v8  ;;  %v2442_v19 = vadd.f32 %v6006_v61, %v9038_v7  ;;  %v2433_v49 = vpop.f32.mrb[155].mxu1 }
 0x313   : > { %v2557_v10 = vadd.f32 %v6374_v52, %v2431_v23  ;;  %v2434_v55 = vadd.f32 %v2433_v49, %v9039_v1 }
 0x314   : > { %2832 = vst [vmem:[#allocation2 + $0x31] sm:$0xff] %v2559_v6  ;;  %v2560_v14 = vadd.f32 %v6375_v13, %v2442_v19  ;;  %v6321_v19 = vld [vmem:[%s8992_s6 + $0xd0] sm:$0xff]  }
 0x315   : > { %2830 = vst [vmem:[#allocation2 + $0x19] sm:$0xff] %v2557_v10  ;;  %v2558_v54 = vadd.f32 %v6376_v35, %v2434_v55 }
 0x316   : > { %v2590_v50 = vpack.c.bf16 %v2560_v14, %v2559_v6  ;;  %2833 = vst [vmem:[#allocation2 + $0x39] sm:$0xff] %v2560_v14  ;;  %v6379_v6 = vld [vmem:[#allocation2 + $0x69] sm:$0xff] }
 0x317   : > { %2831 = vst [vmem:[#allocation2 + $0x21] sm:$0xff] %v2558_v54  ;;  %v6009_v9 = vpop.f32.mrb[156].mxu1  ;;  %v2589_v56 = vpack.c.bf16 %v2558_v54, %v2557_v10 }
 0x318   : > { %v2455_v40 = vadd.f32 %v6009_v9, %v7670_v28  ;;  %v2446_v46 = vpop.f32.mrb[157].mxu1  ;;  %v6357_v28 = vld [vmem:[%s8992_s6 + $0x138] sm:$0xff]   ;;  %v6322_v9 = vld [vmem:[%s8992_s6 + $0x90] sm:$0xff]  }
 0x319   : > { %v2447_v25 = vadd.f32 %v2446_v46, %v7658_v21  ;;  %v6010_v2 = vpop.f32.mrb[158].mxu1  ;;  %6051 = vmatprep.mubr.bf16.mxu0 %v2589_v56  ;;  %v6320_v21 = vld [vmem:[%s8992_s6 + $0x88] sm:$0xff]   ;;  %5720 = vmatpush3.bf16.msra.mxu1 %v6357_v28  ;;  %v6323_v46 = vld [vmem:[%s8992_s6 + $0xd8] sm:$0xff]  }
 0x31a   : > { %v2563_v57 = vadd.f32 %v6377_v58, %v2455_v40  ;;  %v2458_v8 = vadd.f32 %v6010_v2, %v7675_v17  ;;  %v2449_v4 = vpop.f32.mrb[159].mxu1  ;;  %6052 = vmatmul.mubr.bf16.vlgmr.msra.gmra.mrb[136].mxu0 %v2590_v50 }
 0x31b   : > { %v2561_v23 = vadd.f32 %v6378_v44, %v2447_v25  ;;  %v2450_v61 = vadd.f32 %v2449_v4, %v7663_v20  ;;  %5594 = vmatpush3.bf16.msra.mxu0 %v6318_v22  ;;  %v7851_v12 = vld [vmem:[#allocation2 + $0x30] sm:$0xff] }
 0x31c   : > { %2836 = vst [vmem:[#allocation2 + $0x61] sm:$0xff] %v2563_v57  ;;  %v2564_v17 = vadd.f32 %v6379_v6, %v2458_v8  ;;  %5595 = vmatprep.subr.bf16.mxu0 %v6319_v26  ;;  %v7853_v7 = vld [vmem:[#allocation2 + $0x18] sm:$0xff]  ;;  %v2980_v13 = vrot.slane %v7851_v12, 1 }
 0x31d   : > { %2834 = vst [vmem:[#allocation2 + $0x49] sm:$0xff] %v2561_v23  ;;  %v6380_v20 = vld [vmem:[#allocation2 + $0x51] sm:$0xff]  ;;  %v7860_v52 = vld [vmem:[#allocation2 + $0x40] sm:$0x3]  ;;  %v2975_v29 = vrot.slane %v7853_v7, 1 }
 0x31e   : > { %v2562_v49 = vadd.f32 %v6380_v20, %v2450_v61  ;;  %v7858_v0 = vld [vmem:[#allocation2 + $0x38] sm:$0xff]  ;;  %2837 = vst [vmem:[#allocation2 + $0x69] sm:$0xff] %v2564_v17  ;;  %v2592_v10 = vpack.c.bf16 %v2564_v17, %v2563_v57  ;;  %v7862_v1 = vld [vmem:[#allocation2 + $0x20] sm:$0xff]  ;;  %v7864_v55 = vld [vmem:[#allocation2 + $0x28] sm:$0x3]  ;;  %v2983_v35 = vrot.slane %v7860_v52, 1 }
 0x31f   : > { %v2981_v14 = vrot.slane %v7858_v0, 1  ;;  %v6013_v54 = vpop.f32.mrb[160].mxu1  ;;  %5596 = vmatpush3.bf16.msra.mxu0 %v6320_v21  ;;  %v2976_v50 = vrot.slane %v7862_v1, 1  ;;  %v2978_v30 = vrot.slane %v7864_v55, 1  ;;  %v6381_v8 = vld [vmem:[#allocation2 + $0x91] sm:$0xff]  ;;  %v6382_v61 = vld [vmem:[#allocation2 + $0x79] sm:$0xff]  ;;  %v7891_v6 = vpack.c.bf16 %v7862_v1, %v7853_v7 }
 0x320   : > { %2835 = vst [vmem:[#allocation2 + $0x51] sm:$0xff] %v2562_v49  ;;  %v2591_v47 = vpack.c.bf16 %v2562_v49, %v2561_v23  ;;  %v2471_v56 = vadd.f32 %v6013_v54, %v7690_v41  ;;  %v2462_v22 = vpop.f32.mrb[161].mxu1  ;;  %5597 = vmatprep.subr.bf16.mxu0 %v6321_v19  ;;  %v3106_v23 = vrot.slane %v7851_v12, 2  ;;  %v6324_v17 = vld [vmem:[%s8992_s6 + $0x98] sm:$0xff]  }
 0x321   : > { %v2982_v40 = vsel %vm861_vm2, %v2980_v13, %v2981_v14  ;;  %v2463_v26 = vadd.f32 %v2462_v22, %v7682_v37  ;;  %v6014_v25 = vpop.f32.mrb[162].mxu1  ;;  %v2977_v2 = vsel %vm861_vm2, %v2975_v29, %v2976_v50  ;;  %v2979_v58 = vsel %vm861_vm2, %v2976_v50, %v2978_v30  ;;  %v6383_v19 = vld [vmem:[#allocation2 + $0x99] sm:$0xff]  ;;  %v6384_v13 = vld [vmem:[#allocation2 + $0x81] sm:$0xff] }
 0x322   : > { %6055 = vmatprep.mubr.bf16.mxu0 %v2591_v47  ;;  %v2984_v57 = vsel %vm861_vm2, %v2981_v14, %v2983_v35  ;;  %v2567_v41 = vadd.f32 %v6381_v8, %v2471_v56  ;;  %v2474_v4 = vadd.f32 %v6014_v25, %v7693_v53  ;;  %v2465_v28 = vpop.f32.mrb[163].mxu1  ;;  %v7885_v44 = vpack.c.bf16 %v2979_v58, %v2977_v2 }
 0x323   : > { %6056 = vmatmul.mubr.bf16.gmra.mrb[140].mxu0 %v2592_v10  ;;  %v2565_v37 = vadd.f32 %v6382_v61, %v2463_v26  ;;  %v2466_v21 = vadd.f32 %v2465_v28, %v7685_v45  ;;  %v3107_v53 = vrot.slane %v7858_v0, 2  ;;  %v7898_v49 = vpack.c.bf16 %v2984_v57, %v2982_v40  ;;  %v6325_v45 = vld [vmem:[%s8992_s6 + $0xe0] sm:$0xff]  }
 0x324   : > { %5598 = vmatpush3.bf16.msra.mxu0 %v6322_v9  ;;  %2840 = vst [vmem:[#allocation2 + $0x91] sm:$0xff] %v2567_v41  ;;  %v2568_v20 = vadd.f32 %v6383_v19, %v2474_v4  ;;  %3899 = vmatprep.mubr.bf16.mxu1 %v7885_v44  ;;  %v7900_v10 = vld [vmem:[#allocation2 + $0x48] sm:$0xff]  ;;  %v3109_v50 = vrot.slane %v7860_v52, 2  ;;  %v7935_v19 = vpack.c.bf16 %v7858_v0, %v7851_v12  ;;  %v6388_v0 = vld [vmem:[#allocation2 + $0xb1] sm:$0xff] }
 0x325   : > { %5599 = vmatprep.subr.bf16.mxu0 %v6323_v46  ;;  %2838 = vst [vmem:[#allocation2 + $0x79] sm:$0xff] %v2565_v37  ;;  %v2566_v14 = vadd.f32 %v6384_v13, %v2466_v21  ;;  %3900 = vmatmul.mubr.bf16.gmra.mrb[188].mxu1 %v7891_v6  ;;  %v3108_v35 = vsel %vm988_vm3, %v3106_v23, %v3107_v53  ;;  %v2985_v56 = vrot.slane %v7900_v10, 1  ;;  %v6326_v46 = vld [vmem:[%s8992_s6 + $0xa0] sm:$0xff]   ;;  %v6327_v52 = vld [vmem:[%s8992_s6 + $0xe8] sm:$0xff]   ;;  %v7929_v61 = vld [vmem:[#allocation2 + $0x70] sm:$0x3] }
 0x326   : > { %2841 = vst [vmem:[#allocation2 + $0x99] sm:$0xff] %v2568_v20  ;;  %3907 = vmatprep.mubr.bf16.mxu1 %v7898_v49  ;;  %v2594_v54 = vpack.c.bf16 %v2568_v20, %v2567_v41  ;;  %v6385_v41 = vld [vmem:[#allocation2 + $0xc1] sm:$0xff]  ;;  %v6386_v21 = vld [vmem:[#allocation2 + $0xa9] sm:$0xff]  ;;  %9040 = vst [vmem:[#allocation3_spill] sm:$0xff] %v7935_v19 }
 0x327   : > { %v7908_v47 = vld [vmem:[#allocation2 + $0x50] sm:$0xff]  ;;  %v7910_v29 = vld [vmem:[#allocation2 + $0x58] sm:$0x3]  ;;  %2839 = vst [vmem:[#allocation2 + $0x81] sm:$0xff] %v2566_v14  ;;  %v6017_v30 = vpop.f32.mrb[164].mxu1  ;;  %v2593_v9 = vpack.c.bf16 %v2566_v14, %v2565_v37  ;;  %v3110_v37 = vsel %vm988_vm3, %v3107_v53, %v3109_v50  ;;  %v7944_v53 = vld [vmem:[#allocation2 + $0x60] sm:$0xff] }
 0x328   : > { %v2986_v22 = vrot.slane %v7908_v47, 1  ;;  %v2988_v40 = vrot.slane %v7910_v29, 1  ;;  %5600 = vmatpush3.bf16.msra.mxu0 %v6324_v17  ;;  %v2487_v26 = vadd.f32 %v6017_v30, %v7706_v62  ;;  %v2478_v25 = vpop.f32.mrb[165].mxu1  ;;  %v7927_v62 = vld [vmem:[#allocation2 + $0x68] sm:$0xff]  ;;  %v7940_v20 = vpack.c.bf16 %v3110_v37, %v3108_v35  ;;  %v6389_v37 = vld [vmem:[#allocation2 + $0xf1] sm:$0xff] }
 0x329   : > { %5601 = vmatprep.subr.bf16.mxu0 %v6325_v45  ;;  %v2479_v2 = vadd.f32 %v2478_v25, %v7698_v59  ;;  %v6018_v58 = vpop.f32.mrb[166].mxu1  ;;  %6059 = vmatprep.mubr.bf16.mxu0 %v2593_v9  ;;  %v6387_v45 = vld [vmem:[#allocation2 + $0xc9] sm:$0xff]  ;;  %v3112_v12 = vrot.slane %v7908_v47, 2  ;;  %v2991_v35 = vrot.slane %v7927_v62, 1  ;;  %v2993_v50 = vrot.slane %v7929_v61, 1 }
 0x32a   : > { %v2987_v57 = vsel %vm861_vm2, %v2985_v56, %v2986_v22  ;;  %v2989_v8 = vsel %vm861_vm2, %v2986_v22, %v2988_v40  ;;  %v2571_v4 = vadd.f32 %v6385_v41, %v2487_v26  ;;  %v2490_v28 = vadd.f32 %v6018_v58, %v7709_v63  ;;  %v2481_v23 = vpop.f32.mrb[167].mxu1  ;;  %v6328_v63 = vld [vmem:[%s8992_s6 + $0xa8] sm:$0xff]   ;;  %v6330_v26 = vld [vmem:[%s8992_s6 + $0xb0] sm:$0xff]  }
 0x32b   : > { %6060 = vmatmul.mubr.bf16.gmra.mrb[144].mxu0 %v2594_v54  ;;  %v2569_v59 = vadd.f32 %v6386_v21, %v2479_v2  ;;  %v2482_v17 = vadd.f32 %v2481_v23, %v7701_v11  ;;  %v7942_v14 = vpack.c.bf16 %v2989_v8, %v2987_v57  ;;  %v6329_v11 = vld [vmem:[%s8992_s6 + $0xf0] sm:$0xff]   ;;  %v3111_v9 = vrot.slane %v7900_v10, 2 }
 0x32c   : > { %5602 = vmatpush3.bf16.msra.mxu0 %v6326_v46  ;;  %2844 = vst [vmem:[#allocation2 + $0xc1] sm:$0xff] %v2571_v4  ;;  %v2572_v13 = vadd.f32 %v6387_v45, %v2490_v28  ;;  %v3114_v56 = vrot.slane %v7910_v29, 2  ;;  %v2990_v46 = vrot.slane %v7944_v53, 1  ;;  %v3117_v25 = vrot.slane %v7927_v62, 2  ;;  %v6331_v29 = vld [vmem:[%s8992_s6 + $0xf8] sm:$0xff]  }
 0x32d   : > { %5603 = vmatprep.subr.bf16.mxu0 %v6327_v52  ;;  %2842 = vst [vmem:[#allocation2 + $0xa9] sm:$0xff] %v2569_v59  ;;  %v2570_v54 = vadd.f32 %v6388_v0, %v2482_v17  ;;  %3908 = vmatmul.mubr.bf16.gmra.mrb[192].mxu1 %v7935_v19  ;;  %v3113_v58 = vsel %vm988_vm3, %v3111_v9, %v3112_v12  ;;  %v3119_v57 = vrot.slane %v7929_v61, 2  ;;  %v6390_v45 = vld [vmem:[#allocation2 + $0xd9] sm:$0xff]  ;;  %v6392_v9 = vld [vmem:[#allocation2 + $0xe1] sm:$0xff] }
 0x32e   : > { %2845 = vst [vmem:[#allocation2 + $0xc9] sm:$0xff] %v2572_v13  ;;  %3915 = vmatprep.mubr.bf16.mxu1 %v7942_v14  ;;  %v2596_v30 = vpack.c.bf16 %v2572_v13, %v2571_v4  ;;  %v2992_v4 = vsel %vm861_vm2, %v2990_v46, %v2991_v35  ;;  %v2994_v28 = vsel %vm861_vm2, %v2991_v35, %v2993_v50  ;;  %v7970_v23 = vld [vmem:[#allocation2 + $0x80] sm:$0xff]  ;;  %v7982_v0 = vld [vmem:[#allocation2 + $0x78] sm:$0xff] }
 0x32f   : > { %2843 = vst [vmem:[#allocation2 + $0xb1] sm:$0xff] %v2570_v54  ;;  %v6021_v22 = vpop.f32.mrb[168].mxu1  ;;  %v2595_v40 = vpack.c.bf16 %v2570_v54, %v2569_v59  ;;  %v7976_v61 = vpack.c.bf16 %v7908_v47, %v7900_v10  ;;  %v6391_v47 = vld [vmem:[#allocation2 + $0xf9] sm:$0xff]  ;;  %v7990_v50 = vpack.c.bf16 %v2994_v28, %v2992_v4  ;;  %v3122_v46 = vrot.slane %v7970_v23, 2 }
 0x330   : > { %5604 = vmatpush3.bf16.msra.mxu0 %v6328_v63  ;;  %v2503_v52 = vadd.f32 %v6021_v22, %v7733_v27  ;;  %v2494_v2 = vpop.f32.mrb[169].mxu1  ;;  %v3116_v27 = vrot.slane %v7944_v53, 2  ;;  %v3115_v63 = vsel %vm988_vm3, %v3112_v12, %v3114_v56  ;;  %v2996_v12 = vrot.slane %v7970_v23, 1 }
 0x331   : > { %5605 = vmatprep.subr.bf16.mxu0 %v6329_v11  ;;  %v2495_v8 = vadd.f32 %v2494_v2, %v7717_v33  ;;  %v6022_v41 = vpop.f32.mrb[170].mxu1  ;;  %6063 = vmatprep.mubr.bf16.mxu0 %v2595_v40  ;;  %v7978_v33 = vld [vmem:[#allocation2 + $0x88] sm:$0x3]  ;;  %v7987_v54 = vpack.c.bf16 %v3115_v63, %v3113_v58  ;;  %9041 = vst [vmem:[#allocation4_spill] sm:$0xff] %v7990_v50  ;;  %v8005_v58 = vld [vmem:[#allocation2 + $0x98] sm:$0xff] }
 0x332   : > { %v2575_v21 = vadd.f32 %v6389_v37, %v2503_v52  ;;  %v2506_v59 = vadd.f32 %v6022_v41, %v7736_v38  ;;  %v2497_v17 = vpop.f32.mrb[171].mxu1  ;;  %v6332_v38 = vld [vmem:[%s8992_s6 + $0xb8] sm:$0xff]   ;;  %v3118_v10 = vsel %vm988_vm3, %v3116_v27, %v3117_v25  ;;  %v2998_v22 = vrot.slane %v7978_v33, 1  ;;  %v8008_v41 = vld [vmem:[#allocation2 + $0x90] sm:$0xff] }
 0x333   : > { %6064 = vmatmul.mubr.bf16.gmra.mrb[148].mxu0 %v2596_v30  ;;  %v2573_v13 = vadd.f32 %v6390_v45, %v2495_v8  ;;  %v2498_v11 = vadd.f32 %v2497_v17, %v7726_v34  ;;  %v6333_v34 = vld [vmem:[%s8992_s6 + $0x1c0] sm:$0xff]   ;;  %v3120_v30 = vsel %vm988_vm3, %v3117_v25, %v3119_v57  ;;  %v3121_v52 = vrot.slane %v7982_v0, 2 }
 0x334   : > { %5606 = vmatpush3.bf16.msra.mxu0 %v6330_v26  ;;  %2848 = vst [vmem:[#allocation2 + $0xf1] sm:$0xff] %v2575_v21  ;;  %v2576_v35 = vadd.f32 %v6391_v47, %v2506_v59  ;;  %v7999_v40 = vpack.c.bf16 %v3120_v30, %v3118_v10  ;;  %v8014_v37 = vpack.c.bf16 %v7927_v62, %v7944_v53  ;;  %v2882_v17 = vld [vmem:[#allocation2 + $0xa0] sm:$0x3]  ;;  %v3126_v53 = vrot.slane %v8008_v41, 2 }
 0x335   : > { %5607 = vmatprep.subr.bf16.mxu0 %v6331_v29  ;;  %2846 = vst [vmem:[#allocation2 + $0xd9] sm:$0xff] %v2573_v13  ;;  %v2574_v56 = vadd.f32 %v6392_v9, %v2498_v11  ;;  %3916 = vmatmul.mubr.bf16.gmra.mrb[196].mxu1 %v7976_v61  ;;  %v2995_v29 = vrot.slane %v7982_v0, 1  ;;  %v3123_v4 = vsel %vm988_vm3, %v3121_v52, %v3122_v46  ;;  %v3001_v11 = vrot.slane %v8005_v58, 1  ;;  %v6396_v9 = vld [vmem:[#allocation2 + $0x111] sm:$0xff] }
 0x336   : > { %2849 = vst [vmem:[#allocation2 + $0xf9] sm:$0xff] %v2576_v35  ;;  %3923 = vmatprep.mubr.bf16.mxu1 %v7990_v50  ;;  %v2598_v26 = vpack.c.bf16 %v2576_v35, %v2575_v21  ;;  %v2999_v59 = vsel %vm861_vm2, %v2996_v12, %v2998_v22  ;;  %v3127_v47 = vrot.slane %v8005_v58, 2  ;;  %v6395_v35 = vld [vmem:[#allocation2 + $0x129] sm:$0xff]  ;;  %v3129_v30 = vrot.slane %v2882_v17, 2 }
 0x337   : > { %2847 = vst [vmem:[#allocation2 + $0xe1] sm:$0xff] %v2574_v56  ;;  %v6025_v2 = vpop.f32.mrb[172].mxu1  ;;  %v2597_v25 = vpack.c.bf16 %v2574_v56, %v2573_v13  ;;  %v2997_v21 = vsel %vm861_vm2, %v2995_v29, %v2996_v12 }
 0x338   : > { %5608 = vmatpush3.bf16.msra.mxu0 %v6332_v38  ;;  %v2519_v57 = vadd.f32 %v6025_v2, %v7749_v43  ;;  %v2510_v8 = vpop.f32.mrb[173].mxu1  ;;  %v6393_v43 = vld [vmem:[#allocation2 + $0x121] sm:$0xff]  ;;  %v6394_v38 = vld [vmem:[#allocation2 + $0x109] sm:$0xff] }
 0x339   : > { %5817 = vmatprep.subr.bf16.mxu0 %v6333_v34  ;;  %v2511_v28 = vadd.f32 %v2510_v8, %v7741_v5  ;;  %v6026_v27 = vpop.f32.mrb[174].mxu1  ;;  %6067 = vmatprep.mubr.bf16.mxu0 %v2597_v25  ;;  %v3124_v5 = vrot.slane %v7978_v33, 2  ;;  %v8024_v34 = vpack.c.bf16 %v2999_v59, %v2997_v21  ;;  %v3003_v33 = vrot.slane %v2882_v17, 1  ;;  %v8036_v8 = vld [vmem:[#allocation2 + $0xb0] sm:$0xff]  ;;  %v2885_v17 = vld [vmem:[#allocation2 + $0xb8] sm:$0x3] }
 0x33a   : > { %v2579_v63 = vadd.f32 %v6393_v43, %v2519_v57  ;;  %v2522_v45 = vadd.f32 %v6026_v27, %v7752_v24  ;;  %v2513_v13 = vpop.f32.mrb[175].mxu1  ;;  %v8034_v57 = vld [vmem:[#allocation2 + $0xa8] sm:$0xff]  ;;  %v6397_v43 = vld [vmem:[#allocation2 + $0x151] sm:$0xff] }
 0x33b   : > { %6068 = vmatmul.mubr.bf16.gmra.mrb[152].mxu0 %v2598_v26  ;;  %v2577_v10 = vadd.f32 %v6394_v38, %v2511_v28  ;;  %v2514_v62 = vadd.f32 %v2513_v13, %v7744_v39  ;;  %9042 = vst [vmem:[#allocation5_spill] sm:$0xff] %v8024_v34  ;;  %v3125_v24 = vsel %vm988_vm3, %v3122_v46, %v3124_v5  ;;  %v3000_v46 = vrot.slane %v8008_v41, 1 }
 0x33c   : > { %2852 = vst [vmem:[#allocation2 + $0x121] sm:$0xff] %v2579_v63  ;;  %v2580_v12 = vadd.f32 %v6395_v35, %v2522_v45  ;;  %v8028_v22 = vpack.c.bf16 %v3125_v24, %v3123_v4  ;;  %v3128_v39 = vsel %vm988_vm3, %v3126_v53, %v3127_v47  ;;  %v3130_v4 = vsel %vm988_vm3, %v3127_v47, %v3129_v30  ;;  %v6399_v53 = vld [vmem:[#allocation2 + $0x159] sm:$0xff]  ;;  %v8054_v35 = vld [vmem:[#allocation2 + $0xc8] sm:$0xff] }
 0x33d   : > { %2850 = vst [vmem:[#allocation2 + $0x109] sm:$0xff] %v2577_v10  ;;  %v2578_v56 = vadd.f32 %v6396_v9, %v2514_v62  ;;  %3924 = vmatmul.mubr.bf16.gmra.mrb[200].mxu1 %v8014_v37  ;;  %v3002_v21 = vsel %vm861_vm2, %v3000_v46, %v3001_v11  ;;  %v3004_v59 = vsel %vm861_vm2, %v3001_v11, %v3003_v33  ;;  %v3131_v62 = vrot.slane %v8034_v57, 2 }
 0x33e   : > { %2853 = vst [vmem:[#allocation2 + $0x129] sm:$0xff] %v2580_v12  ;;  %3931 = vmatprep.mubr.bf16.mxu1 %v8024_v34  ;;  %v2600_v26 = vpack.c.bf16 %v2580_v12, %v2579_v63  ;;  %v8045_v13 = vpack.c.bf16 %v7970_v23, %v7982_v0  ;;  %v8047_v5 = vpack.c.bf16 %v3130_v4, %v3128_v39  ;;  %v3132_v11 = vrot.slane %v8036_v8, 2  ;;  %v6400_v23 = vld [vmem:[#allocation2 + $0x141] sm:$0xff] }
 0x33f   : > { %2851 = vst [vmem:[#allocation2 + $0x111] sm:$0xff] %v2578_v56  ;;  %v6029_v52 = vpop.f32.mrb[176].mxu1  ;;  %v2599_v2 = vpack.c.bf16 %v2578_v56, %v2577_v10  ;;  %v3134_v12 = vrot.slane %v2885_v17, 2  ;;  %v3006_v24 = vrot.slane %v8036_v8, 1  ;;  %v8060_v56 = vld [vmem:[#allocation2 + $0xc0] sm:$0xff]  ;;  %v3137_v46 = vrot.slane %v8054_v35, 2 }
 0x340   : > { %v2535_v25 = vadd.f32 %v6029_v52, %v7765_v31  ;;  %v2526_v29 = vpop.f32.mrb[177].mxu1  ;;  %v3133_v30 = vsel %vm988_vm3, %v3131_v62, %v3132_v11  ;;  %v2888_v52 = vld [vmem:[#allocation2 + $0xd0] sm:$0x3]  ;;  %v8068_v4 = vpack.c.bf16 %v8005_v58, %v8008_v41 }
 0x341   : > { %v2527_v28 = vadd.f32 %v2526_v29, %v7757_v15  ;;  %v6030_v27 = vpop.f32.mrb[178].mxu1  ;;  %6071 = vmatprep.mubr.bf16.mxu0 %v2599_v2  ;;  %v6398_v15 = vld [vmem:[#allocation2 + $0x139] sm:$0xff]  ;;  %v8995_v2 = vrot.slane %v7862_v1, 2 }
 0x342   : > { %v2583_v63 = vadd.f32 %v6397_v43, %v2535_v25  ;;  %v2538_v31 = vadd.f32 %v6030_v27, %v7777_v18  ;;  %v2529_v45 = vpop.f32.mrb[179].mxu1  ;;  %v8052_v18 = vpack.c.bf16 %v3004_v59, %v3002_v21  ;;  %v3135_v27 = vsel %vm988_vm3, %v3132_v11, %v3134_v12 }
 0x343   : > { %6072 = vmatmul.mubr.bf16.gmra.mrb[156].mxu0 %v2600_v26  ;;  %v2581_v38 = vadd.f32 %v6398_v15, %v2527_v28  ;;  %v2530_v10 = vadd.f32 %v2529_v45, %v7760_v32  ;;  %v3008_v32 = vrot.slane %v2885_v17, 1  ;;  %v3005_v26 = vrot.slane %v8034_v57, 1 }
 0x344   : > { %2856 = vst [vmem:[#allocation2 + $0x151] sm:$0xff] %v2583_v63  ;;  %v2584_v47 = vadd.f32 %v6399_v53, %v2538_v31  ;;  %9043 = vst [vmem:[#allocation6_spill] sm:$0xff] %v8052_v18  ;;  %v3011_v28 = vrot.slane %v8054_v35, 1  ;;  %v6401_v31 = vld [vmem:[#allocation2 + $0x181] sm:$0xff]  ;;  %v3013_v15 = vrot.slane %v2888_v52, 1  ;;  %v8084_v53 = vld [vmem:[#allocation2 + $0xd8] sm:$0xff] }
 0x345   : > { %2854 = vst [vmem:[#allocation2 + $0x139] sm:$0xff] %v2581_v38  ;;  %v2582_v0 = vadd.f32 %v6400_v23, %v2530_v10  ;;  %3932 = vmatmul.mubr.bf16.gmra.mrb[204].mxu1 %v8045_v13  ;;  %v3007_v17 = vsel %vm861_vm2, %v3005_v26, %v3006_v24  ;;  %v3009_v43 = vsel %vm861_vm2, %v3006_v24, %v3008_v32  ;;  %v6402_v10 = vld [vmem:[#allocation2 + $0x169] sm:$0xff]  ;;  %v3139_v12 = vrot.slane %v2888_v52, 2 }
 0x346   : > { %2857 = vst [vmem:[#allocation2 + $0x159] sm:$0xff] %v2584_v47  ;;  %3939 = vmatprep.mubr.bf16.mxu1 %v8052_v18  ;;  %v2602_v9 = vpack.c.bf16 %v2584_v47, %v2583_v63  ;;  %v8075_v63 = vld [vmem:[#allocation2 + $0xe0] sm:$0xff]  ;;  %v6403_v23 = vld [vmem:[#allocation2 + $0x189] sm:$0xff]  ;;  %v3010_v24 = vrot.slane %v8060_v56, 1 }
 0x347   : > { %2855 = vst [vmem:[#allocation2 + $0x141] sm:$0xff] %v2582_v0  ;;  %v6033_v33 = vpop.f32.mrb[180].mxu1  ;;  %v2601_v39 = vpack.c.bf16 %v2582_v0, %v2581_v38  ;;  %v8079_v38 = vld [vmem:[#allocation2 + $0xe8] sm:$0x3]  ;;  %v3142_v32 = vrot.slane %v8075_v63, 2 }
 0x348   : > { %v2551_v25 = vadd.f32 %v6033_v33, %v7805_v3  ;;  %v2542_v29 = vpop.f32.mrb[181].mxu1  ;;  %v3136_v3 = vrot.slane %v8060_v56, 2  ;;  %v3140_v33 = vsel %vm988_vm3, %v3137_v46, %v3139_v12  ;;  %v3012_v52 = vsel %vm861_vm2, %v3010_v24, %v3011_v28 }
 0x349   : > { %v2543_v21 = vadd.f32 %v2542_v29, %v7785_v16  ;;  %v6034_v59 = vpop.f32.mrb[182].mxu1  ;;  %6075 = vmatprep.mubr.bf16.mxu0 %v2601_v39  ;;  %v8081_v16 = vpack.c.bf16 %v3135_v27, %v3133_v30  ;;  %v6404_v30 = vld [vmem:[#allocation2 + $0x171] sm:$0xff]  ;;  %v3144_v39 = vrot.slane %v8079_v38, 2  ;;  %v3141_v29 = vrot.slane %v8084_v53, 2 }
 0x34a   : > { %v2587_v45 = vadd.f32 %v6401_v31, %v2551_v25  ;;  %v2554_v58 = vadd.f32 %v6034_v59, %v7817_v51  ;;  %v2545_v41 = vpop.f32.mrb[183].mxu1  ;;  %v3138_v47 = vsel %vm988_vm3, %v3136_v3, %v3137_v46  ;;  %v8087_v51 = vpack.c.bf16 %v3009_v43, %v3007_v17  ;;  %v8101_v59 = vld [vmem:[#allocation2 + $0xf8] sm:$0xff]  ;;  %v8111_v43 = vld [vmem:[#allocation2 + $0x108] sm:$0xff] }
 0x34b   : > { %6076 = vmatmul.mubr.bf16.gmra.mrb[160].mxu0 %v2602_v9  ;;  %v2585_v62 = vadd.f32 %v6402_v10, %v2543_v21  ;;  %v2546_v11 = vadd.f32 %v2545_v41, %v7797_v42  ;;  %v3101_v42 = vrot.slane %v7853_v7, 2  ;;  %v3014_v25 = vsel %vm861_vm2, %v3011_v28, %v3013_v15  ;;  %v8099_v21 = vld [vmem:[#allocation2 + $0xf0] sm:$0xff]  ;;  %v8103_v7 = vld [vmem:[#allocation2 + $0x100] sm:$0x3]  ;;  %v8115_v3 = vld [vmem:[#allocation2 + $0x118] sm:$0x3] }
 0x34c   : > { %2860 = vst [vmem:[#allocation2 + $0x181] sm:$0xff] %v2587_v45  ;;  %v2588_v0 = vadd.f32 %v6403_v23, %v2554_v58  ;;  %9044 = vst [vmem:[#allocation15_spill] sm:$0xff] %v8087_v51  ;;  %v3104_v17 = vrot.slane %v7864_v55, 2  ;;  %v8113_v28 = vld [vmem:[#allocation2 + $0x110] sm:$0xff]  ;;  %v8117_v31 = vpack.c.bf16 %v3140_v33, %v3138_v47  ;;  %v8122_v58 = vpack.c.bf16 %v8036_v8, %v8034_v57  ;;  %v8127_v55 = vld [vmem:[#allocation2 + $0x120] sm:$0xff] }
 0x34d   : > { %2858 = vst [vmem:[#allocation2 + $0x169] sm:$0xff] %v2585_v62  ;;  %v2586_v9 = vadd.f32 %v6404_v30, %v2546_v11  ;;  %3940 = vmatmul.mubr.bf16.gmra.mrb[208].mxu1 %v8068_v4  ;;  %v8108_v46 = vsel %vm988_vm3, %v3101_v42, %v8995_v2  ;;  %v8124_v41 = vpack.c.bf16 %v3014_v25, %v3012_v52  ;;  %v3015_v15 = vrot.slane %v8084_v53, 1  ;;  %v8129_v10 = vld [vmem:[#allocation2 + $0x128] sm:$0xff] }
 0x34e   : > { %2861 = vst [vmem:[#allocation2 + $0x189] sm:$0xff] %v2588_v0  ;;  %3947 = vmatprep.mubr.bf16.mxu1 %v8087_v51  ;;  %v2604_v26 = vpack.c.bf16 %v2588_v0, %v2587_v45  ;;  %v3143_v45 = vsel %vm988_vm3, %v3141_v29, %v3142_v32  ;;  %v3145_v11 = vsel %vm988_vm3, %v3142_v32, %v3144_v39  ;;  %v3016_v47 = vrot.slane %v8075_v63, 1  ;;  %v8150_v39 = vld [vmem:[#allocation2 + $0x138] sm:$0xff]  ;;  %v8154_v52 = vld [vmem:[#allocation2 + $0x148] sm:$0x3] }
 0x34f   : > { %2859 = vst [vmem:[#allocation2 + $0x171] sm:$0xff] %v2586_v9  ;;  %v2603_v27 = vpack.c.bf16 %v2586_v9, %v2585_v62  ;;  %9045 = vst [vmem:[#allocation7_spill] sm:$0xff] %v8124_v41  ;;  %v8131_v62 = vld [vmem:[#allocation2 + $0x130] sm:$0x3]  ;;  %v8135_v12 = vpack.c.bf16 %v3145_v11, %v3143_v45  ;;  %v3146_v57 = vrot.slane %v8099_v21, 2  ;;  %v3147_v8 = vrot.slane %v8101_v59, 2 }
 0x350   : > { %v3149_v23 = vrot.slane %v8103_v7, 2  ;;  %v3151_v0 = vrot.slane %v8111_v43, 2  ;;  %v3152_v24 = vrot.slane %v8113_v28, 2  ;;  %v3154_v30 = vrot.slane %v8115_v3, 2  ;;  %v8160_v45 = vld [vmem:[#allocation2 + $0x150] sm:$0xff]  ;;  %v8162_v11 = vld [vmem:[#allocation2 + $0x158] sm:$0xff] }
 0x351   : > { %6079 = vmatprep.mubr.bf16.mxu0 %v2603_v27  ;;  %v3148_v32 = vsel %vm988_vm3, %v3146_v57, %v3147_v8  ;;  %v3156_v9 = vrot.slane %v8127_v55, 2  ;;  %v3157_v42 = vrot.slane %v8129_v10, 2  ;;  %v3159_v33 = vrot.slane %v8131_v62, 2  ;;  %v8164_v57 = vld [vmem:[#allocation2 + $0x160] sm:$0x3] }
 0x352   : > { %v3150_v25 = vsel %vm988_vm3, %v3147_v8, %v3149_v23  ;;  %v3153_v29 = vsel %vm988_vm3, %v3151_v0, %v3152_v24  ;;  %v3155_v27 = vsel %vm988_vm3, %v3152_v24, %v3154_v30  ;;  %v6334_v23 = vld [vmem:[%s8992_s6 + $0x180] sm:$0xff]   ;;  %v8177_v0 = vpack.c.bf16 %v8054_v35, %v8060_v56 }
 0x353   : > { %6080 = vmatmul.mubr.bf16.gmra.mrb[164].mxu0 %v2604_v26  ;;  %v8152_v26 = vld [vmem:[#allocation2 + $0x140] sm:$0xff]  ;;  %v8168_v36 = vpack.c.bf16 %v3155_v27, %v3153_v29  ;;  %v3158_v2 = vsel %vm988_vm3, %v3156_v9, %v3157_v42  ;;  %v3160_v8 = vsel %vm988_vm3, %v3157_v42, %v3159_v33  ;;  %v9046_v24 = vrot.slane %v7862_v1, 2  ;;  %v6335_v42 = vld [vmem:[%s8992_s6 + $0x1c8] sm:$0xff]  }
 0x354   : > { %4052 = vmatprep.mubr.bf16.mxu0 %v7891_v6  ;;  %v3018_v6 = vrot.slane %v8079_v38, 1  ;;  %v8166_v38 = vpack.c.bf16 %v3150_v25, %v3148_v32  ;;  %v3021_v32 = vrot.slane %v8101_v59, 1  ;;  %v8183_v25 = vpack.c.bf16 %v3160_v8, %v3158_v2  ;;  %v8185_v29 = vld [vmem:[#allocation2 + $0x180] sm:$0xff] }
 0x355   : > { %3948 = vmatmul.mubr.bf16.gmra.mrb[212].mxu1 %v8122_v58  ;;  %v3105_v30 = vsel %vm988_vm3, %v9046_v24, %v3104_v17  ;;  %9048 = vst [vmem:[#allocation9_spill] sm:$0xff] %v8185_v29  ;;  %v3017_v9 = vsel %vm861_vm2, %v3015_v15, %v3016_v47  ;;  %v3161_v33 = vrot.slane %v8150_v39, 2  ;;  %v3162_v35 = vrot.slane %v8152_v26, 2  ;;  %v8194_v56 = vld [vmem:[#allocation2 + $0x188] sm:$0xff] }
 0x356   : > { %3955 = vmatprep.mubr.bf16.mxu1 %v8124_v41  ;;  %9047 = vst [vmem:[#allocation8_spill] sm:$0xff] %v8183_v25  ;;  %v3164_v1 = vrot.slane %v8154_v52, 2  ;;  %9049 = vst [vmem:[#allocation10_spill] sm:$0xff] %v8194_v56  ;;  %v3019_v17 = vsel %vm861_vm2, %v3016_v47, %v3018_v6  ;;  %v3166_v2 = vrot.slane %v8160_v45, 2  ;;  %v3167_v27 = vrot.slane %v8162_v11, 2  ;;  %v8204_v41 = vld [vmem:[#allocation2 + $0x168] sm:$0xff] }
 0x357   : > { %v3169_v15 = vrot.slane %v8164_v57, 2  ;;  %v9050_v8 = vpack.c.bf16 %v7723_v48, %v7720_v60  ;;  %v3023_v24 = vrot.slane %v8103_v7, 1  ;;  %v8206_v51 = vld [vmem:[#allocation2 + $0x170] sm:$0xff]  ;;  %v8208_v18 = vld [vmem:[#allocation2 + $0x178] sm:$0x3]  ;;  %v3163_v47 = vsel %vm988_vm3, %v3161_v33, %v3162_v35  ;;  %v6336_v60 = vld [vmem:[%s8992_s6 + $0x188] sm:$0xff]  }
 0x358   : > { %v3165_v6 = vsel %vm988_vm3, %v3162_v35, %v3164_v1  ;;  %v3050_v34 = vrot.slane %v8185_v29, 1  ;;  %v3168_v7 = vsel %vm988_vm3, %v3166_v2, %v3167_v27  ;;  %v3051_v25 = vrot.slane %v8194_v56, 1  ;;  %v2912_v33 = vld [vmem:[#allocation2 + $0x190] sm:$0x3] }
 0x359   : > { %v8217_v48 = vpack.c.bf16 %v3165_v6, %v3163_v47  ;;  %v8222_v50 = vpack.c.bf16 %v3019_v17, %v3017_v9  ;;  %v3176_v1 = vrot.slane %v8185_v29, 2  ;;  %v3177_v47 = vrot.slane %v8194_v56, 2 }
 0x35a   : > { %v3052_v2 = vsel %vm861_vm2, %v3050_v34, %v3051_v25  ;;  %v3172_v9 = vrot.slane %v8206_v51, 2  ;;  %v3053_v17 = vrot.slane %v2912_v33, 1  ;;  %v3179_v6 = vrot.slane %v2912_v33, 2 }
 0x35b   : > { %4053 = vmatmul.mubr.bf16.vlgmr.msra.gmra.mrb[168].mxu0 %v9050_v8  ;;  %v3170_v8 = vsel %vm988_vm3, %v3167_v27, %v3169_v15  ;;  %9051 = vst [vmem:[#allocation13_spill] sm:$0xff] %v8222_v50  ;;  %v3171_v27 = vrot.slane %v8204_v41, 2  ;;  %v3178_v15 = vsel %vm988_vm3, %v3176_v1, %v3177_v47  ;;  %v6346_v1 = vld [vmem:[%s8992_s6 + $0x1d8] sm:$0xff]  }
 0x35c   : > { %5818 = vmatpush3.bf16.msra.mxu0 %v6334_v23  ;;  %4060 = vmatprep.mubr.bf16.mxu0 %v7935_v19  ;;  %v6337_v23 = vld [vmem:[%s8992_s6 + $0x1d0] sm:$0xff]   ;;  %v8227_v35 = vpack.c.bf16 %v3170_v8, %v3168_v7  ;;  %v3020_v7 = vrot.slane %v8099_v21, 1 }
 0x35d   : > { %5819 = vmatprep.subr.bf16.mxu0 %v6335_v42  ;;  %3956 = vmatmul.mubr.bf16.gmra.mrb[216].mxu1 %v8177_v0  ;;  %v3174_v42 = vrot.slane %v8208_v18, 2  ;;  %v6338_v8 = vld [vmem:[%s8992_s6 + $0x190] sm:$0xff]   ;;  %v3173_v34 = vsel %vm988_vm3, %v3171_v27, %v3172_v9  ;;  %v3024_v27 = vsel %vm861_vm2, %v3021_v32, %v3023_v24 }
 0x35e   : > { %9052 = vst [vmem:[#allocation11_spill] sm:$0xff] %v8227_v35  ;;  %3963 = vmatprep.mubr.bf16.mxu1 %v8222_v50  ;;  %v8245_v35 = vpack.c.bf16 %v3105_v30, %v8108_v46  ;;  %v3180_v50 = vsel %vm988_vm3, %v3177_v47, %v3179_v6  ;;  %v3022_v56 = vsel %vm861_vm2, %v3020_v7, %v3021_v32  ;;  %v6348_v46 = vld [vmem:[%s8992_s6 + $0x198] sm:$0xff]   ;;  %v3026_v32 = vrot.slane %v8113_v28, 1  ;;  %v6360_v47 = vld [vmem:[%s8992_s6 + $0x1a8] sm:$0xff]  }
 0x35f   : > { %v3175_v19 = vsel %vm988_vm3, %v3172_v9, %v3174_v42  ;;  %v8258_v9 = vpack.c.bf16 %v3180_v50, %v3178_v15  ;;  %v8269_v30 = vpack.c.bf16 %v3024_v27, %v3022_v56  ;;  %v6356_v50 = vld [vmem:[%s8992_s6 + $0x1e0] sm:$0xff]   ;;  %v6359_v56 = vld [vmem:[%s8992_s6 + $0x1e8] sm:$0xff]   ;;  %v6361_v42 = vld [vmem:[%s8992_s6 + $0x1f0] sm:$0xff]   ;;  %v3033_v15 = vrot.slane %v8131_v62, 1 }
 0x360   : > { %5820 = vmatpush3.bf16.msra.mxu0 %v6336_v60  ;;  %v8250_v33 = vpack.c.bf16 %v3175_v19, %v3173_v34  ;;  %v3054_v60 = vsel %vm861_vm2, %v3051_v25, %v3053_v17  ;;  %v8264_v19 = vpack.c.bf16 %v8075_v63, %v8084_v53  ;;  %v3028_v25 = vrot.slane %v8115_v3, 1  ;;  %v6358_v53 = vld [vmem:[%s8992_s6 + $0x1a0] sm:$0xff]   ;;  %v6363_v6 = vld [vmem:[%s8992_s6 + $0x1f8] sm:$0xff]  }
 0x361   : > { %5821 = vmatprep.subr.bf16.mxu0 %v6337_v23  ;;  %v8256_v29 = vpack.c.bf16 %v3054_v60, %v3052_v2  ;;  %v3025_v63 = vrot.slane %v8111_v43, 1  ;;  %v8291_v3 = vpack.c.bf16 %v8101_v59, %v8099_v21  ;;  %v3031_v17 = vrot.slane %v8129_v10, 1  ;;  %v6362_v59 = vld [vmem:[%s8992_s6 + $0x1b0] sm:$0xff]   ;;  %v6364_v34 = vld [vmem:[%s8992_s6 + $0x1b8] sm:$0xff]   ;;  %v8328_v60 = vld [vmem:[%s8992_s6 + $0x200] sm:$0xff]  }
 0x362   : > { %v3029_v23 = vsel %vm861_vm2, %v3026_v32, %v3028_v25  ;;  %v3030_v21 = vrot.slane %v8127_v55, 1  ;;  %v8318_v62 = vpack.c.bf16 %v8113_v28, %v8111_v43  ;;  %v3036_v27 = vrot.slane %v8152_v26, 1 }
 0x363   : > { %4061 = vmatmul.mubr.bf16.gmra.mrb[172].mxu0 %v8245_v35  ;;  %v3027_v24 = vsel %vm861_vm2, %v3025_v63, %v3026_v32  ;;  %v3038_v43 = vrot.slane %v8154_v52, 1  ;;  %v3035_v28 = vrot.slane %v8150_v39, 1  ;;  %v8342_v25 = vpack.c.bf16 %v8129_v10, %v8127_v55 }
 0x364   : > { %4068 = vmatprep.mubr.bf16.mxu0 %v7976_v61  ;;  %5822 = vmatpush3.bf16.msra.mxu0 %v6338_v8  ;;  %v8296_v2 = vpack.c.bf16 %v3029_v23, %v3027_v24  ;;  %v3032_v7 = vsel %vm861_vm2, %v3030_v21, %v3031_v17  ;;  %v3034_v8 = vsel %vm861_vm2, %v3031_v17, %v3033_v15  ;;  %v3041_v24 = vrot.slane %v8162_v11, 1 }
 0x365   : > { %5823 = vmatprep.subr.bf16.mxu0 %v6346_v1  ;;  %3964 = vmatmul.mubr.bf16.gmra.mrb[220].mxu1 %v8264_v19  ;;  %v8323_v1 = vpack.c.bf16 %v3034_v8, %v3032_v7  ;;  %v3043_v23 = vrot.slane %v8164_v57, 1  ;;  %v3040_v55 = vrot.slane %v8160_v45, 1  ;;  %v8361_v15 = vpack.c.bf16 %v8152_v26, %v8150_v39 }
 0x366   : > { %3971 = vmatprep.mubr.bf16.mxu1 %v8269_v30  ;;  %v3046_v21 = vrot.slane %v8206_v51, 1  ;;  %v8376_v39 = vpack.c.bf16 %v8162_v11, %v8160_v45  ;;  %v9056_v45 = vld [vmem:[#allocation6_spill] sm:$0xff]  ;;  %v9057_v11 = vld [vmem:[#allocation9_spill] sm:$0xff] }
 0x367   : > { %v3042_v10 = vsel %vm861_vm2, %v3040_v55, %v3041_v24  ;;  %v3044_v17 = vsel %vm861_vm2, %v3041_v24, %v3043_v23 }
 0x368   : > { %5824 = vmatpush3.bf16.msra.mxu0 %v6348_v46  ;;  %v3037_v46 = vsel %vm861_vm2, %v3035_v28, %v3036_v27  ;;  %v8363_v57 = vpack.c.bf16 %v3044_v17, %v3042_v10  ;;  %v9061_v28 = vld [vmem:[#allocation7_spill] sm:$0xff] }
 0x369   : > { %5825 = vmatprep.subr.bf16.mxu0 %v6356_v50  ;;  %v3039_v50 = vsel %vm861_vm2, %v3036_v27, %v3038_v43  ;;  %v9059_v27 = vld [vmem:[#allocation11_spill] sm:$0xff] }
 0x36a   : > { %v8344_v63 = vpack.c.bf16 %v3039_v50, %v3037_v46  ;;  %v9060_v43 = vld [vmem:[#allocation15_spill] sm:$0xff]  ;;  %v6366_v46 = vld [vmem:[%s8992_s6 + $0x208] sm:$0xff]  }
 0x36b   : > { %4069 = vmatmul.mubr.bf16.gmra.mrb[176].mxu0 %v7940_v20  ;;  %v9062_v50 = vld [vmem:[#allocation3_spill] sm:$0xff] }
 0x36c   : > { %4076 = vmatprep.mubr.bf16.mxu0 %v8014_v37  ;;  %5826 = vmatpush3.bf16.msra.mxu0 %v6358_v53 }
 0x36d   : > { %5827 = vmatprep.subr.bf16.mxu0 %v6359_v56  ;;  %3972 = vmatmul.mubr.bf16.gmra.mrb[224].mxu1 %v8291_v3 }
 0x36e   : > { %3979 = vmatprep.mubr.bf16.mxu1 %v8296_v2 }
 0x370   : > { %5828 = vmatpush3.bf16.msra.mxu0 %v6360_v47 }
 0x371   : > { %5829 = vmatprep.subr.bf16.mxu0 %v6361_v42 }
 0x373   : > { %4077 = vmatmul.mubr.bf16.gmra.mrb[180].mxu0 %v7987_v54 }
 0x374   : > { %4084 = vmatprep.mubr.bf16.mxu0 %v8045_v13  ;;  %5830 = vmatpush3.bf16.msra.mxu0 %v6362_v59  ;;  %v3048_v59 = vrot.slane %v8208_v18, 1  ;;  %v8386_v18 = vpack.c.bf16 %v8206_v51, %v8204_v41  ;;  %v9054_v51 = vld [vmem:[#allocation8_spill] sm:$0xff] }
 0x375   : > { %5831 = vmatprep.subr.bf16.mxu0 %v6363_v6  ;;  %3980 = vmatmul.mubr.bf16.gmra.mrb[228].mxu1 %v8318_v62  ;;  %v3045_v6 = vrot.slane %v8204_v41, 1  ;;  %v9055_v41 = vld [vmem:[#allocation5_spill] sm:$0xff] }
 0x376   : > { %3987 = vmatprep.mubr.bf16.mxu1 %v8323_v1  ;;  %v3049_v8 = vsel %vm861_vm2, %v3046_v21, %v3048_v59 }
 0x377   : > { %v3047_v7 = vsel %vm861_vm2, %v3045_v6, %v3046_v21 }
 0x378   : > { %5832 = vmatpush3.bf16.msra.mxu0 %v6364_v34  ;;  %v5497_v32 = vpop.f32.mrb[184].mxu1  ;;  %v8378_v26 = vpack.c.bf16 %v3049_v8, %v3047_v7 }
 0x379   : > { %6083 = vmatprep.subr.bf16.mxu0 %v8328_v60  ;;  %v5498_v52 = vpop.f32.mrb[185].mxu1 }
 0x37a   : > { %v8346_v53 = vadd.f32 %v5498_v52, %v5497_v32  ;;  %v5500_v56 = vpop.f32.mrb[186].mxu1  ;;  %v6367_v32 = vld [vmem:[%s8992_s6 + $0x210] sm:$0xff]   ;;  %v6368_v52 = vld [vmem:[%s8992_s6 + $0x218] sm:$0xff]  }
 0x37b   : > { %4085 = vmatmul.mubr.bf16.gmra.mrb[184].mxu0 %v7999_v40  ;;  %v5501_v47 = vpop.f32.mrb[187].mxu1 }
 0x37c   : > { %4092 = vmatprep.mubr.bf16.mxu0 %v8068_v4  ;;  %v8352_v42 = vadd.f32 %v5501_v47, %v5500_v56  ;;  %v6372_v56 = vld [vmem:[%s8992_s6 + $0x238] sm:$0xff]  }
 0x37d   : > { %3988 = vmatmul.mubr.bf16.gmra.mrb[232].mxu1 %v8342_v25 }
 0x37e   : > { %3995 = vmatprep.mubr.bf16.mxu1 %v8344_v63 }
 0x383   : > { %4093 = vmatmul.mubr.bf16.gmra.mrb[188].mxu0 %v8028_v22 }
 0x384   : > { %4100 = vmatprep.mubr.bf16.mxu0 %v8122_v58 }
 0x385   : > { %3996 = vmatmul.mubr.bf16.gmra.mrb[236].mxu1 %v8361_v15 }
 0x386   : > { %4003 = vmatprep.mubr.bf16.mxu1 %v8363_v57 }
 0x38b   : > { %4101 = vmatmul.mubr.bf16.gmra.mrb[192].mxu0 %v8047_v5 }
 0x38c   : > { %4108 = vmatprep.mubr.bf16.mxu0 %v8177_v0 }
 0x38d   : > { %4004 = vmatmul.mubr.bf16.gmra.mrb[240].mxu1 %v8376_v39 }
 0x38e   : > { %4011 = vmatprep.mubr.bf16.mxu1 %v8378_v26 }
 0x393   : > { %4109 = vmatmul.mubr.bf16.gmra.mrb[196].mxu0 %v8081_v16 }
 0x394   : > { %4116 = vmatprep.mubr.bf16.mxu0 %v8264_v19 }
 0x395   : > { %4012 = vmatmul.mubr.bf16.gmra.mrb[244].mxu1 %v8386_v18 }
 0x396   : > { %4213 = vmatprep.mubr.bf16.mxu1 %v8245_v35  ;;  %v9058_v35 = vld [vmem:[#allocation10_spill] sm:$0xff] }
 0x397   : > { %v8416_v34 = vpack.c.bf16 %v9058_v35, %v9057_v11 }
 0x39b   : > { %4117 = vmatmul.mubr.bf16.gmra.mrb[200].mxu0 %v8117_v31 }
 0x39c   : > { %4124 = vmatprep.mubr.bf16.mxu0 %v8291_v3 }
 0x39d   : > { %4214 = vmatmul.mubr.bf16.vlgmr.msra.gmra.mrb[248].mxu1 %v7885_v44  ;;  %v9053_v44 = vld [vmem:[#allocation4_spill] sm:$0xff] }
 0x39e   : > { %4221 = vmatprep.mubr.bf16.mxu1 %v7940_v20 }
 0x3a3   : > { %4125 = vmatmul.mubr.bf16.gmra.mrb[204].mxu0 %v8135_v12 }
 0x3a4   : > { %4132 = vmatprep.mubr.bf16.mxu0 %v8318_v62 }
 0x3a5   : > { %4222 = vmatmul.mubr.bf16.gmra.mrb[252].mxu1 %v7898_v49 }
 0x3a6   : > { %4229 = vmatprep.mubr.bf16.mxu1 %v7987_v54 }
 0x3ab   : > { %4133 = vmatmul.mubr.bf16.gmra.mrb[208].mxu0 %v8166_v38 }
 0x3ac   : > { %4140 = vmatprep.mubr.bf16.mxu0 %v8342_v25 }
 0x3ad   : > { %4230 = vmatmul.mubr.bf16.gmra.mrb[0].mxu1 %v7942_v14 }
 0x3ae   : > { %4237 = vmatprep.mubr.bf16.mxu1 %v7999_v40 }
 0x3b3   : > { %4141 = vmatmul.mubr.bf16.gmra.mrb[212].mxu0 %v8168_v36 }
 0x3b4   : > { %4148 = vmatprep.mubr.bf16.mxu0 %v8361_v15 }
 0x3b5   : > { %4238 = vmatmul.mubr.bf16.gmra.mrb[4].mxu1 %v9053_v44 }
 0x3b6   : > { %4245 = vmatprep.mubr.bf16.mxu1 %v8028_v22 }
 0x3bb   : > { %4149 = vmatmul.mubr.bf16.gmra.mrb[216].mxu0 %v9054_v51 }
 0x3bc   : > { %4156 = vmatprep.mubr.bf16.mxu0 %v8376_v39 }
 0x3bd   : > { %4246 = vmatmul.mubr.bf16.gmra.mrb[8].mxu1 %v9055_v41 }
 0x3be   : > { %4253 = vmatprep.mubr.bf16.mxu1 %v8047_v5 }
 0x3c3   : > { %4157 = vmatmul.mubr.bf16.gmra.mrb[220].mxu0 %v8217_v48 }
 0x3c4   : > { %4164 = vmatprep.mubr.bf16.mxu0 %v8386_v18 }
 0x3c5   : > { %4254 = vmatmul.mubr.bf16.gmra.mrb[12].mxu1 %v9056_v45 }
 0x3c6   : > { %4261 = vmatprep.mubr.bf16.mxu1 %v8081_v16 }
 0x3cb   : > { %4165 = vmatmul.mubr.bf16.gmra.mrb[224].mxu0 %v9059_v27 }
 0x3cc   : > { %4172 = vmatprep.mubr.bf16.mxu0 %v8416_v34 }
 0x3cd   : > { %4262 = vmatmul.mubr.bf16.gmra.mrb[16].mxu1 %v9060_v43 }
 0x3ce   : > { %4269 = vmatprep.mubr.bf16.mxu1 %v8117_v31 }
 0x3d3   : > { %4173 = vmatmul.mubr.bf16.gmra.mrb[228].mxu0 %v8250_v33 }
 0x3d4   : > { %4374 = vmatprep.mubr.bf16.mxu0 %v7898_v49  ;;  %v9063_v49 = vld [vmem:[#allocation13_spill] sm:$0xff] }
 0x3d5   : > { %4270 = vmatmul.mubr.bf16.gmra.mrb[20].mxu1 %v9061_v28 }
 0x3d6   : > { %4277 = vmatprep.mubr.bf16.mxu1 %v8135_v12 }
 0x3db   : > { %4375 = vmatmul.mubr.bf16.vlgmr.msra.gmra.mrb[232].mxu0 %v9062_v50  ;;  %v8494_v50 = vld [vmem:[#allocation2 + $0x1a0] sm:$0xff] }
 0x3dc   : > { %6084 = vmatpush3.bf16.msra.mxu0 %v8328_v60  ;;  %4382 = vmatprep.mubr.bf16.mxu0 %v7942_v14  ;;  %v6369_v14 = vld [vmem:[%s8992_s6 + $0x220] sm:$0xff]   ;;  %v6370_v60 = vld [vmem:[%s8992_s6 + $0x228] sm:$0xff]  }
 0x3dd   : > { %6085 = vmatprep.subr.bf16.mxu0 %v6366_v46  ;;  %4278 = vmatmul.mubr.bf16.gmra.mrb[24].mxu1 %v9063_v49 }
 0x3de   : > { %4285 = vmatprep.mubr.bf16.mxu1 %v8166_v38 }
 0x3e0   : > { %6086 = vmatpush3.bf16.msra.mxu0 %v6366_v46 }
 0x3e1   : > { %6087 = vmatprep.subr.bf16.mxu0 %v6367_v32 }
 0x3e3   : > { %4383 = vmatmul.mubr.bf16.gmra.mrb[236].mxu0 %v7976_v61  ;;  %v6371_v61 = vld [vmem:[%s8992_s6 + $0x230] sm:$0xff]  }
 0x3e4   : > { %4390 = vmatprep.mubr.bf16.mxu0 %v9053_v44  ;;  %6088 = vmatpush3.bf16.msra.mxu0 %v6367_v32 }
 0x3e5   : > { %6089 = vmatprep.subr.bf16.mxu0 %v6368_v52  ;;  %4286 = vmatmul.mubr.bf16.gmra.mrb[28].mxu1 %v8269_v30 }
 0x3e6   : > { %4293 = vmatprep.mubr.bf16.mxu1 %v8168_v36 }
 0x3e8   : > { %6090 = vmatpush3.bf16.msra.mxu0 %v6368_v52 }
 0x3e9   : > { %6091 = vmatprep.subr.bf16.mxu0 %v6369_v14 }
 0x3eb   : > { %4391 = vmatmul.mubr.bf16.gmra.mrb[240].mxu0 %v8014_v37 }
 0x3ec   : > { %4398 = vmatprep.mubr.bf16.mxu0 %v9055_v41  ;;  %6092 = vmatpush3.bf16.msra.mxu0 %v6369_v14  ;;  %v3182_v14 = vrot.slane %v8494_v50, 2 }
 0x3ed   : > { %6093 = vmatprep.subr.bf16.mxu0 %v6370_v60  ;;  %4294 = vmatmul.mubr.bf16.gmra.mrb[32].mxu1 %v8296_v2 }
 0x3ee   : > { %4301 = vmatprep.mubr.bf16.mxu1 %v9054_v51 }
 0x3f0   : > { %6094 = vmatpush3.bf16.msra.mxu0 %v6370_v60 }
 0x3f1   : > { %6095 = vmatprep.subr.bf16.mxu0 %v6371_v61 }
 0x3f3   : > { %4399 = vmatmul.mubr.bf16.gmra.mrb[244].mxu0 %v8045_v13 }
 0x3f4   : > { %4406 = vmatprep.mubr.bf16.mxu0 %v9056_v45  ;;  %6096 = vmatpush3.bf16.msra.mxu0 %v6371_v61 }
 0x3f5   : > { %6097 = vmatprep.subr.bf16.mxu0 %v6372_v56  ;;  %4302 = vmatmul.mubr.bf16.gmra.mrb[36].mxu1 %v8323_v1 }
 0x3f6   : > { %4309 = vmatprep.mubr.bf16.mxu1 %v8217_v48 }
 0x3f8   : > { %6098 = vmatpush3.bf16.msra.mxu0 %v6372_v56  ;;  %v5503_v37 = vpop.f32.mrb[188].mxu1 }
 0x3f9   : > { %v5504_v24 = vpop.f32.mrb[189].mxu1 }
 0x3fa   : > { %v8464_v23 = vadd.f32 %v5504_v24, %v5503_v37  ;;  %v5506_v47 = vpop.f32.mrb[190].mxu1 }
 0x3fb   : > { %4407 = vmatmul.mubr.bf16.gmra.mrb[248].mxu0 %v8068_v4  ;;  %v5507_v55 = vpop.f32.mrb[191].mxu1 }
 0x3fc   : > { %4414 = vmatprep.mubr.bf16.mxu0 %v9060_v43  ;;  %v8468_v13 = vadd.f32 %v5507_v55, %v5506_v47 }
 0x3fd   : > { %4310 = vmatmul.mubr.bf16.gmra.mrb[40].mxu1 %v8344_v63 }
 0x3fe   : > { %4317 = vmatprep.mubr.bf16.mxu1 %v9059_v27 }
 0x400   : > { %v5509_v10 = vpop.f32.mrb[192].mxu1 }
 0x401   : > { %v5510_v17 = vpop.f32.mrb[193].mxu1 }
 0x402   : > { %v8472_v21 = vadd.f32 %v5510_v17, %v5509_v10  ;;  %v5512_v59 = vpop.f32.mrb[194].mxu1 }
 0x403   : > { %4415 = vmatmul.mubr.bf16.gmra.mrb[252].mxu0 %v8122_v58  ;;  %v5513_v6 = vpop.f32.mrb[195].mxu1 }
 0x404   : > { %4422 = vmatprep.mubr.bf16.mxu0 %v9061_v28  ;;  %v8476_v4 = vadd.f32 %v5513_v6, %v5512_v59 }
 0x405   : > { %4318 = vmatmul.mubr.bf16.gmra.mrb[44].mxu1 %v8363_v57 }
 0x406   : > { %4325 = vmatprep.mubr.bf16.mxu1 %v8250_v33 }
 0x408   : > { %v5515_v7 = vpop.f32.mrb[196].mxu1 }
 0x409   : > { %v5516_v8 = vpop.f32.mrb[197].mxu1 }
 0x40a   : > { %v8480_v44 = vadd.f32 %v5516_v8, %v5515_v7  ;;  %v5518_v41 = vpop.f32.mrb[198].mxu1 }
 0x40b   : > { %4423 = vmatmul.mubr.bf16.gmra.mrb[0].mxu0 %v8177_v0  ;;  %v5519_v45 = vpop.f32.mrb[199].mxu1  ;;  %v8492_v0 = vld [vmem:[#allocation2 + $0x198] sm:$0xff] }
 0x40c   : > { %4430 = vmatprep.mubr.bf16.mxu0 %v9063_v49  ;;  %v8484_v58 = vadd.f32 %v5519_v45, %v5518_v41  ;;  %v8498_v49 = vld [vmem:[#allocation2 + $0x1a8] sm:$0x3]  ;;  %v3181_v52 = vrot.slane %v8492_v0, 2 }
 0x40d   : > { %4326 = vmatmul.mubr.bf16.gmra.mrb[48].mxu1 %v8378_v26  ;;  %v3184_v60 = vrot.slane %v8498_v49, 2 }
 0x40e   : > { %4333 = vmatprep.mubr.bf16.mxu1 %v8258_v9 }
 0x410   : > { %v5521_v11 = vpop.f32.mrb[200].mxu1 }
 0x411   : > { %v5522_v35 = vpop.f32.mrb[201].mxu1 }
 0x412   : > { %v8488_v43 = vadd.f32 %v5522_v35, %v5521_v11  ;;  %v5524_v28 = vpop.f32.mrb[202].mxu1 }
 0x413   : > { %4431 = vmatmul.mubr.bf16.gmra.mrb[4].mxu0 %v8264_v19  ;;  %v5525_v46 = vpop.f32.mrb[203].mxu1  ;;  %v8505_v19 = vsel %vm988_vm3, %v3181_v52, %v3182_v14 }
 0x414   : > { %4438 = vmatprep.mubr.bf16.mxu0 %v8269_v30  ;;  %v8496_v32 = vadd.f32 %v5525_v46, %v5524_v28  ;;  %v8508_v30 = vsel %vm988_vm3, %v3182_v14, %v3184_v60  ;;  %v8531_v28 = vld [vmem:[%s8993_s7] ss:$0 sm:$0xff] }
 0x415   : > { %4334 = vmatmul.mubr.bf16.gmra.mrb[52].mxu1 %v8256_v29  ;;  %v3275_v56 = vpack.c.bf16 %v8508_v30, %v8505_v19  ;;  %v3897_v14 = vadd.f32 %v8352_v42, %v8531_v28 }
 0x418   : > { %v5527_v61 = vpop.f32.mrb[204].mxu1 }
 0x419   : > { %v5528_v37 = vpop.f32.mrb[205].mxu1 }
 0x41a   : > { %v8512_v24 = vadd.f32 %v5528_v37, %v5527_v61  ;;  %v5530_v47 = vpop.f32.mrb[206].mxu1 }
 0x41b   : > { %4439 = vmatmul.mubr.bf16.gmra.mrb[8].mxu0 %v8291_v3  ;;  %v5531_v55 = vpop.f32.mrb[207].mxu1 }
 0x41c   : > { %4446 = vmatprep.mubr.bf16.mxu0 %v8296_v2  ;;  %v8516_v10 = vadd.f32 %v5531_v55, %v5530_v47 }
 0x420   : > { %v5533_v17 = vpop.f32.mrb[208].mxu1 }
 0x421   : > { %v5534_v59 = vpop.f32.mrb[209].mxu1 }
 0x422   : > { %v8518_v6 = vadd.f32 %v5534_v59, %v5533_v17  ;;  %v5536_v7 = vpop.f32.mrb[210].mxu1 }
 0x423   : > { %4447 = vmatmul.mubr.bf16.gmra.mrb[12].mxu0 %v8318_v62  ;;  %v5537_v8 = vpop.f32.mrb[211].mxu1 }
 0x424   : > { %4454 = vmatprep.mubr.bf16.mxu0 %v8323_v1  ;;  %v8522_v41 = vadd.f32 %v5537_v8, %v5536_v7  ;;  %v3894_v1 = vadd.f32 %v8346_v53, %v8531_v28 }
 0x428   : > { %v5539_v45 = vpop.f32.mrb[212].mxu1 }
 0x429   : > { %v5540_v11 = vpop.f32.mrb[213].mxu1 }
 0x42a   : > { %v8524_v3 = vadd.f32 %v5540_v11, %v5539_v45  ;;  %v5542_v35 = vpop.f32.mrb[214].mxu1  ;;  %v3902_v11 = vadd.f32 %v8464_v23, %v8531_v28 }
 0x42b   : > { %4455 = vmatmul.mubr.bf16.gmra.mrb[16].mxu0 %v8342_v25  ;;  %v5543_v2 = vpop.f32.mrb[215].mxu1 }
 0x42c   : > { %4462 = vmatprep.mubr.bf16.mxu0 %v8344_v63  ;;  %v8533_v62 = vadd.f32 %v5543_v2, %v5542_v35 }
 0x42e   : > { %v5609_v46 = vpop.f32.mrb[168].mxu0 }
 0x42f   : > { %v5610_v52 = vpop.f32.mrb[169].mxu0 }
 0x430   : > { %v5611_v60 = vadd.f32 %v5610_v52, %v5609_v46  ;;  %v5612_v25 = vpop.f32.mrb[170].mxu0  ;;  %v5545_v61 = vpop.f32.mrb[216].mxu1  ;;  %v3905_v52 = vadd.f32 %v8468_v13, %v8531_v28  ;;  %v3910_v13 = vadd.f32 %v8472_v21, %v8531_v28 }
 0x431   : > { %v5613_v37 = vpop.f32.mrb[171].mxu0  ;;  %v5546_v55 = vpop.f32.mrb[217].mxu1 }
 0x432   : > { %v8539_v63 = vadd.f32 %v5611_v60, %v3894_v1  ;;  %v5614_v47 = vadd.f32 %v5613_v37, %v5612_v25  ;;  %v8541_v17 = vadd.f32 %v5546_v55, %v5545_v61  ;;  %v5548_v59 = vpop.f32.mrb[218].mxu1 }
 0x433   : > { %4463 = vmatmul.mubr.bf16.gmra.mrb[20].mxu0 %v8361_v15  ;;  %v5549_v53 = vpop.f32.mrb[219].mxu1 }
 0x434   : > { %v8544_v7 = vadd.f32 %v5614_v47, %v3897_v14  ;;  %4470 = vmatprep.mubr.bf16.mxu0 %v8363_v57  ;;  %v8547_v8 = vadd.f32 %v5549_v53, %v5548_v59 }
 0x436   : > { %v5615_v42 = vpop.f32.mrb[172].mxu0 }
 0x437   : > { %v5616_v45 = vpop.f32.mrb[173].mxu0 }
 0x438   : > { %v5617_v35 = vadd.f32 %v5616_v45, %v5615_v42  ;;  %v5618_v2 = vpop.f32.mrb[174].mxu0  ;;  %v5551_v1 = vpop.f32.mrb[220].mxu1 }
 0x439   : > { %v5619_v46 = vpop.f32.mrb[175].mxu0  ;;  %v5552_v60 = vpop.f32.mrb[221].mxu1 }
 0x43a   : > { %v8553_v15 = vadd.f32 %v5617_v35, %v3902_v11  ;;  %v5620_v14 = vadd.f32 %v5619_v46, %v5618_v2  ;;  %v8555_v25 = vadd.f32 %v5552_v60, %v5551_v1  ;;  %v5554_v57 = vpop.f32.mrb[222].mxu1  ;;  %v3055_v11 = vrot.slane %v8492_v0, 1 }
 0x43b   : > { %4471 = vmatmul.mubr.bf16.gmra.mrb[24].mxu0 %v8376_v39  ;;  %v5555_v37 = vpop.f32.mrb[223].mxu1  ;;  %v3056_v39 = vrot.slane %v8494_v50, 1  ;;  %v3058_v35 = vrot.slane %v8498_v49, 1 }
 0x43c   : > { %v8558_v61 = vadd.f32 %v5620_v14, %v3905_v52  ;;  %4478 = vmatprep.mubr.bf16.mxu0 %v8378_v26  ;;  %v8561_v23 = vadd.f32 %v5555_v37, %v5554_v57  ;;  %v3913_v26 = vadd.f32 %v8476_v4, %v8531_v28 }
 0x43d   : > { %v3057_v49 = vsel %vm861_vm2, %v3055_v11, %v3056_v39  ;;  %v3059_v4 = vsel %vm861_vm2, %v3056_v39, %v3058_v35 }
 0x43e   : > { %v5621_v47 = vpop.f32.mrb[176].mxu0 }
 0x43f   : > { %v5622_v55 = vpop.f32.mrb[177].mxu0 }
 0x440   : > { %v5623_v59 = vadd.f32 %v5622_v55, %v5621_v47  ;;  %v5624_v53 = vpop.f32.mrb[178].mxu0  ;;  %v5557_v42 = vpop.f32.mrb[224].mxu1  ;;  %v3918_v55 = vadd.f32 %v8480_v44, %v8531_v28 }
 0x441   : > { %v5625_v45 = vpop.f32.mrb[179].mxu0  ;;  %v5558_v46 = vpop.f32.mrb[225].mxu1 }
 0x442   : > { %v8570_v2 = vadd.f32 %v5623_v59, %v3910_v13  ;;  %v5626_v1 = vadd.f32 %v5625_v45, %v5624_v53  ;;  %v8572_v52 = vadd.f32 %v5558_v46, %v5557_v42  ;;  %v5560_v21 = vpop.f32.mrb[226].mxu1  ;;  %v3274_v53 = vpack.c.bf16 %v3059_v4, %v3057_v49 }
 0x443   : > { %4479 = vmatmul.mubr.bf16.gmra.mrb[28].mxu0 %v8386_v18  ;;  %v5561_v60 = vpop.f32.mrb[227].mxu1  ;;  %v3921_v45 = vadd.f32 %v8484_v58, %v8531_v28  ;;  %v3273_v58 = vpack.c.bf16 %v8494_v50, %v8492_v0  ;;  %v3926_v49 = vadd.f32 %v8488_v43, %v8531_v28 }
 0x444   : > { %v8575_v14 = vadd.f32 %v5626_v1, %v3913_v26  ;;  %4486 = vmatprep.mubr.bf16.mxu0 %v8256_v29  ;;  %v8578_v57 = vadd.f32 %v5561_v60, %v5560_v21 }
 0x446   : > { %v5627_v37 = vpop.f32.mrb[180].mxu0 }
 0x447   : > { %v5628_v47 = vpop.f32.mrb[181].mxu0 }
 0x448   : > { %v5629_v13 = vadd.f32 %v5628_v47, %v5627_v37  ;;  %v5630_v59 = vpop.f32.mrb[182].mxu0  ;;  %v5563_v18 = vpop.f32.mrb[228].mxu1 }
 0x449   : > { %v5631_v42 = vpop.f32.mrb[183].mxu0  ;;  %v5564_v1 = vpop.f32.mrb[229].mxu1 }
 0x44a   : > { %v8586_v29 = vadd.f32 %v5629_v13, %v3918_v55  ;;  %v5632_v26 = vadd.f32 %v5631_v42, %v5630_v59  ;;  %v8588_v11 = vadd.f32 %v5564_v1, %v5563_v18  ;;  %v5566_v39 = vpop.f32.mrb[230].mxu1 }
 0x44b   : > { %4487 = vmatmul.mubr.bf16.gmra.mrb[32].mxu0 %v8416_v34  ;;  %v5567_v44 = vpop.f32.mrb[231].mxu1  ;;  %v3929_v34 = vadd.f32 %v8496_v32, %v8531_v28  ;;  %v3934_v32 = vadd.f32 %v8512_v24, %v8531_v28 }
 0x44c   : > { %v8591_v35 = vadd.f32 %v5632_v26, %v3921_v45  ;;  %4494 = vmatprep.mubr.bf16.mxu0 %v3274_v53  ;;  %v8593_v46 = vadd.f32 %v5567_v44, %v5566_v39 }
 0x44e   : > { %v5633_v21 = vpop.f32.mrb[184].mxu0 }
 0x44f   : > { %v5634_v60 = vpop.f32.mrb[185].mxu0 }
 0x450   : > { %v5635_v4 = vadd.f32 %v5634_v60, %v5633_v21  ;;  %v5636_v37 = vpop.f32.mrb[186].mxu0  ;;  %v5569_v47 = vpop.f32.mrb[232].mxu1  ;;  %v3937_v60 = vadd.f32 %v8516_v10, %v8531_v28  ;;  %v3942_v10 = vadd.f32 %v8518_v6, %v8531_v28 }
 0x451   : > { %v5637_v55 = vpop.f32.mrb[187].mxu0  ;;  %v5570_v53 = vpop.f32.mrb[233].mxu1 }
 0x452   : > { %v8601_v13 = vadd.f32 %v5635_v4, %v3926_v49  ;;  %v5638_v59 = vadd.f32 %v5637_v55, %v5636_v37  ;;  %v8603_v18 = vadd.f32 %v5570_v53, %v5569_v47  ;;  %v5572_v42 = vpop.f32.mrb[234].mxu1 }
 0x453   : > { %4495 = vmatmul.mubr.bf16.gmra.mrb[36].mxu0 %v3273_v58  ;;  %v5573_v0 = vpop.f32.mrb[235].mxu1 }
 0x454   : > { %v8605_v45 = vadd.f32 %v5638_v59, %v3929_v34  ;;  %6099 = vmatprep.mubr.bf16.mxu0 %v7940_v20  ;;  %v8608_v43 = vadd.f32 %v5573_v0, %v5572_v42 }
 0x456   : > { %v5639_v50 = vpop.f32.mrb[188].mxu0 }
 0x457   : > { %v5640_v26 = vpop.f32.mrb[189].mxu0 }
 0x458   : > { %v5641_v1 = vadd.f32 %v5640_v26, %v5639_v50  ;;  %v5642_v39 = vpop.f32.mrb[190].mxu0  ;;  %v5575_v44 = vpop.f32.mrb[236].mxu1  ;;  %v3945_v26 = vadd.f32 %v8522_v41, %v8531_v28  ;;  %v3950_v41 = vadd.f32 %v8524_v3, %v8531_v28 }
 0x459   : > { %v5643_v21 = vpop.f32.mrb[191].mxu0  ;;  %v5576_v4 = vpop.f32.mrb[237].mxu1 }
 0x45a   : > { %v8614_v58 = vadd.f32 %v5641_v1, %v3934_v32  ;;  %v5644_v49 = vadd.f32 %v5643_v21, %v5642_v39  ;;  %v8616_v37 = vadd.f32 %v5576_v4, %v5575_v44  ;;  %v5578_v20 = vpop.f32.mrb[238].mxu1 }
 0x45b   : > { %6100 = vmatmul.mubr.bf16.vlgmr.msra.gmra.mrb[136].mxu0 %v7987_v54  ;;  %v5579_v55 = vpop.f32.mrb[239].mxu1 }
 0x45c   : > { %v8619_v47 = vadd.f32 %v5644_v49, %v3937_v60  ;;  %6103 = vmatprep.mubr.bf16.mxu0 %v7999_v40  ;;  %v8622_v24 = vadd.f32 %v5579_v55, %v5578_v20 }
 0x45e   : > { %v5645_v34 = vpop.f32.mrb[192].mxu0  ;;  %v4001_v30 = vadd.f32 %v8622_v24, %v8531_v28 }
 0x45f   : > { %v5646_v59 = vpop.f32.mrb[193].mxu0 }
 0x460   : > { %v5647_v53 = vadd.f32 %v5646_v59, %v5645_v34  ;;  %v5648_v42 = vpop.f32.mrb[194].mxu0  ;;  %v5581_v0 = vpop.f32.mrb[240].mxu1  ;;  %v3953_v59 = vadd.f32 %v8533_v62, %v8531_v28  ;;  %v3958_v62 = vadd.f32 %v8541_v17, %v8531_v28 }
 0x461   : > { %v5649_v50 = vpop.f32.mrb[195].mxu0  ;;  %v5582_v1 = vpop.f32.mrb[241].mxu1 }
 0x462   : > { %v8628_v54 = vadd.f32 %v5647_v53, %v3942_v10  ;;  %v5650_v32 = vadd.f32 %v5649_v50, %v5648_v42  ;;  %v8630_v39 = vadd.f32 %v5582_v1, %v5581_v0  ;;  %v5584_v40 = vpop.f32.mrb[242].mxu1 }
 0x463   : > { %6104 = vmatmul.mubr.bf16.gmra.mrb[140].mxu0 %v8028_v22  ;;  %v5585_v21 = vpop.f32.mrb[243].mxu1 }
 0x464   : > { %v8633_v44 = vadd.f32 %v5650_v32, %v3945_v26  ;;  %6107 = vmatprep.mubr.bf16.mxu0 %v8047_v5  ;;  %v8636_v6 = vadd.f32 %v5585_v21, %v5584_v40  ;;  %v4006_v24 = vadd.f32 %v8630_v39, %v8531_v28 }
 0x466   : > { %v5651_v60 = vpop.f32.mrb[196].mxu0 }
 0x467   : > { %v5652_v49 = vpop.f32.mrb[197].mxu0 }
 0x468   : > { %v5653_v4 = vadd.f32 %v5652_v49, %v5651_v60  ;;  %v5654_v20 = vpop.f32.mrb[198].mxu0  ;;  %v5587_v55 = vpop.f32.mrb[244].mxu1  ;;  %v3961_v49 = vadd.f32 %v8547_v8, %v8531_v28 }
 0x469   : > { %v5655_v34 = vpop.f32.mrb[199].mxu0  ;;  %v5588_v53 = vpop.f32.mrb[245].mxu1 }
 0x46a   : > { %v8642_v22 = vadd.f32 %v5653_v4, %v3950_v41  ;;  %v5656_v10 = vadd.f32 %v5655_v34, %v5654_v20  ;;  %v8644_v42 = vadd.f32 %v5588_v53, %v5587_v55  ;;  %v5590_v5 = vpop.f32.mrb[246].mxu1 }
 0x46b   : > { %6108 = vmatmul.mubr.bf16.gmra.mrb[144].mxu0 %v8081_v16  ;;  %v5591_v50 = vpop.f32.mrb[247].mxu1 }
 0x46c   : > { %v8647_v0 = vadd.f32 %v5656_v10, %v3953_v59  ;;  %6111 = vmatprep.mubr.bf16.mxu0 %v8117_v31  ;;  %v8650_v3 = vadd.f32 %v5591_v50, %v5590_v5  ;;  %v3966_v5 = vadd.f32 %v8555_v25, %v8531_v28 }
 0x46e   : > { %v5657_v26 = vpop.f32.mrb[200].mxu0 }
 0x46f   : > { %v5658_v32 = vpop.f32.mrb[201].mxu0 }
 0x470   : > { %v5659_v1 = vadd.f32 %v5658_v32, %v5657_v26  ;;  %v5660_v40 = vpop.f32.mrb[202].mxu0  ;;  %v5721_v60 = vpop.f32.mrb[248].mxu1 }
 0x471   : > { %v5661_v21 = vpop.f32.mrb[203].mxu0  ;;  %v5722_v4 = vpop.f32.mrb[249].mxu1 }
 0x472   : > { %v8656_v16 = vadd.f32 %v5659_v1, %v3958_v62  ;;  %v5662_v41 = vadd.f32 %v5661_v21, %v5660_v40  ;;  %v5723_v20 = vadd.f32 %v5722_v4, %v5721_v60  ;;  %v5724_v31 = vpop.f32.mrb[250].mxu1  ;;  %v3969_v62 = vadd.f32 %v8561_v23, %v8531_v28 }
 0x473   : > { %6112 = vmatmul.mubr.bf16.gmra.mrb[148].mxu0 %v8135_v12  ;;  %v5725_v34 = vpop.f32.mrb[251].mxu1 }
 0x474   : > { %v8659_v55 = vadd.f32 %v5662_v41, %v3961_v49  ;;  %6115 = vmatprep.mubr.bf16.mxu0 %v8166_v38  ;;  %v8663_v17 = vadd.f32 %v5723_v20, %v8539_v63  ;;  %v5726_v59 = vadd.f32 %v5725_v34, %v5724_v31  ;;  %v3974_v20 = vadd.f32 %v8572_v52, %v8531_v28 }
 0x476   : > { %v5663_v10 = vpop.f32.mrb[204].mxu0  ;;  %v8666_v8 = vadd.f32 %v5726_v59, %v8544_v7 }
 0x477   : > { %v5664_v53 = vpop.f32.mrb[205].mxu0 }
 0x478   : > { %v5665_v50 = vadd.f32 %v5664_v53, %v5663_v10  ;;  %v5666_v26 = vpop.f32.mrb[206].mxu0  ;;  %v5727_v32 = vpop.f32.mrb[252].mxu1  ;;  %v3977_v10 = vadd.f32 %v8578_v57, %v8531_v28 }
 0x479   : > { %v5667_v12 = vpop.f32.mrb[207].mxu0  ;;  %v5728_v1 = vpop.f32.mrb[253].mxu1 }
 0x47a   : > { %v8672_v38 = vadd.f32 %v5665_v50, %v3966_v5  ;;  %v5668_v63 = vadd.f32 %v5667_v12, %v5666_v26  ;;  %v5729_v40 = vadd.f32 %v5728_v1, %v5727_v32  ;;  %v5730_v21 = vpop.f32.mrb[254].mxu1 }
 0x47b   : > { %6116 = vmatmul.mubr.bf16.gmra.mrb[152].mxu0 %v8168_v36  ;;  %v5731_v60 = vpop.f32.mrb[255].mxu1 }
 0x47c   : > { %v8675_v7 = vadd.f32 %v5668_v63, %v3969_v62  ;;  %6119 = vmatprep.mubr.bf16.mxu0 %v9054_v51  ;;  %v8679_v25 = vadd.f32 %v5729_v40, %v8553_v15  ;;  %v5732_v49 = vadd.f32 %v5731_v60, %v5730_v21  ;;  %v3982_v63 = vadd.f32 %v8588_v11, %v8531_v28 }
 0x47d   : > { %v3985_v60 = vadd.f32 %v8593_v46, %v8531_v28 }
 0x47e   : > { %v5669_v41 = vpop.f32.mrb[208].mxu0  ;;  %v8682_v23 = vadd.f32 %v5732_v49, %v8558_v61 }
 0x47f   : > { %v5670_v4 = vpop.f32.mrb[209].mxu0 }
 0x480   : > { %v5671_v31 = vadd.f32 %v5670_v4, %v5669_v41  ;;  %v5672_v34 = vpop.f32.mrb[210].mxu0  ;;  %v5733_v59 = vpop.f32.mrb[0].mxu1 }
 0x481   : > { %v5673_v36 = vpop.f32.mrb[211].mxu0  ;;  %v5734_v53 = vpop.f32.mrb[1].mxu1 }
 0x482   : > { %v8688_v51 = vadd.f32 %v5671_v31, %v3974_v20  ;;  %v5674_v15 = vadd.f32 %v5673_v36, %v5672_v34  ;;  %v5735_v5 = vadd.f32 %v5734_v53, %v5733_v59  ;;  %v5736_v50 = vpop.f32.mrb[2].mxu1  ;;  %v3990_v59 = vadd.f32 %v8603_v18, %v8531_v28 }
 0x483   : > { %6120 = vmatmul.mubr.bf16.gmra.mrb[156].mxu0 %v8217_v48  ;;  %v5737_v26 = vpop.f32.mrb[3].mxu1 }
 0x484   : > { %v8691_v61 = vadd.f32 %v5674_v15, %v3977_v10  ;;  %6123 = vmatprep.mubr.bf16.mxu0 %v9059_v27  ;;  %v8695_v52 = vadd.f32 %v5735_v5, %v8570_v2  ;;  %v5738_v12 = vadd.f32 %v5737_v26, %v5736_v50  ;;  %v3993_v5 = vadd.f32 %v8608_v43, %v8531_v28 }
 0x486   : > { %v5675_v32 = vpop.f32.mrb[212].mxu0  ;;  %v8698_v57 = vadd.f32 %v5738_v12, %v8575_v14 }
 0x487   : > { %v5676_v62 = vpop.f32.mrb[213].mxu0 }
 0x488   : > { %v5677_v1 = vadd.f32 %v5676_v62, %v5675_v32  ;;  %v5678_v40 = vpop.f32.mrb[214].mxu0  ;;  %v5739_v21 = vpop.f32.mrb[4].mxu1 }
 0x489   : > { %v5679_v48 = vpop.f32.mrb[215].mxu0  ;;  %v5740_v49 = vpop.f32.mrb[5].mxu1 }
 0x48a   : > { %v8704_v27 = vadd.f32 %v5677_v1, %v3982_v63  ;;  %v5680_v2 = vadd.f32 %v5679_v48, %v5678_v40  ;;  %v5741_v41 = vadd.f32 %v5740_v49, %v5739_v21  ;;  %v5742_v4 = vpop.f32.mrb[6].mxu1  ;;  %v3998_v40 = vadd.f32 %v8616_v37, %v8531_v28 }
 0x48b   : > { %6124 = vmatmul.mubr.bf16.gmra.mrb[160].mxu0 %v8250_v33  ;;  %v5743_v20 = vpop.f32.mrb[7].mxu1 }
 0x48c   : > { %v8707_v14 = vadd.f32 %v5680_v2, %v3985_v60  ;;  %6127 = vmatprep.mubr.bf16.mxu0 %v8258_v9  ;;  %v8711_v11 = vadd.f32 %v5741_v41, %v8586_v29  ;;  %v5744_v31 = vadd.f32 %v5743_v20, %v5742_v4 }
 0x48e   : > { %v5681_v34 = vpop.f32.mrb[216].mxu0  ;;  %v8714_v46 = vadd.f32 %v5744_v31, %v8591_v35 }
 0x48f   : > { %v5682_v36 = vpop.f32.mrb[217].mxu0 }
 0x490   : > { %v5683_v10 = vadd.f32 %v5682_v36, %v5681_v34  ;;  %v5684_v15 = vpop.f32.mrb[218].mxu0  ;;  %v5745_v53 = vpop.f32.mrb[8].mxu1 }
 0x491   : > { %v5685_v33 = vpop.f32.mrb[219].mxu0  ;;  %v5746_v50 = vpop.f32.mrb[9].mxu1 }
 0x492   : > { %v8720_v9 = vadd.f32 %v5683_v10, %v3990_v59  ;;  %v5686_v29 = vadd.f32 %v5685_v33, %v5684_v15  ;;  %v5747_v26 = vadd.f32 %v5746_v50, %v5745_v53  ;;  %v5748_v12 = vpop.f32.mrb[10].mxu1  ;;  %v4009_v53 = vadd.f32 %v8636_v6, %v8531_v28 }
 0x493   : > { %6128 = vmatmul.mubr.bf16.gmra.mrb[164].mxu0 %v3275_v56  ;;  %v5749_v18 = vpop.f32.mrb[11].mxu1  ;;  %v4014_v6 = vadd.f32 %v8644_v42, %v8531_v28 }
 0x494   : > { %v8725_v35 = vadd.f32 %v5686_v29, %v3993_v5  ;;  %v8728_v32 = vadd.f32 %v5747_v26, %v8601_v13  ;;  %v5750_v62 = vadd.f32 %v5749_v18, %v5748_v12 }
 0x496   : > { %v5687_v63 = vpop.f32.mrb[220].mxu0  ;;  %v8731_v43 = vadd.f32 %v5750_v62, %v8605_v45 }
 0x497   : > { %v5688_v1 = vpop.f32.mrb[221].mxu0 }
 0x498   : > { %v5689_v48 = vadd.f32 %v5688_v1, %v5687_v63  ;;  %v5690_v21 = vpop.f32.mrb[222].mxu0  ;;  %v5751_v19 = vpop.f32.mrb[12].mxu1 }
 0x499   : > { %v5691_v60 = vpop.f32.mrb[223].mxu0  ;;  %v5752_v2 = vpop.f32.mrb[13].mxu1 }
 0x49a   : > { %v8737_v56 = vadd.f32 %v5689_v48, %v3998_v40  ;;  %v5692_v13 = vadd.f32 %v5691_v60, %v5690_v21  ;;  %v5753_v49 = vadd.f32 %v5752_v2, %v5751_v19  ;;  %v5754_v41 = vpop.f32.mrb[14].mxu1  ;;  %v4017_v19 = vadd.f32 %v8650_v3, %v8531_v28 }
 0x49b   : > { %v5755_v45 = vpop.f32.mrb[15].mxu1 }
 0x49c   : > { %v8739_v4 = vadd.f32 %v5692_v13, %v4001_v30  ;;  %v8742_v20 = vadd.f32 %v5753_v49, %v8614_v58  ;;  %v5756_v37 = vadd.f32 %v5755_v45, %v5754_v41 }
 0x49e   : > { %v5693_v31 = vpop.f32.mrb[224].mxu0  ;;  %v8745_v34 = vadd.f32 %v5756_v37, %v8619_v47 }
 0x49f   : > { %v5694_v36 = vpop.f32.mrb[225].mxu0 }
 0x4a0   : > { %v5695_v59 = vadd.f32 %v5694_v36, %v5693_v31  ;;  %v5696_v10 = vpop.f32.mrb[226].mxu0  ;;  %v5757_v33 = vpop.f32.mrb[16].mxu1 }
 0x4a1   : > { %v5697_v15 = vpop.f32.mrb[227].mxu0  ;;  %v5758_v29 = vpop.f32.mrb[17].mxu1 }
 0x4a2   : > { %v8751_v5 = vadd.f32 %v5695_v59, %v4006_v24  ;;  %v5698_v58 = vadd.f32 %v5697_v15, %v5696_v10  ;;  %v5759_v50 = vadd.f32 %v5758_v29, %v5757_v33  ;;  %v5760_v26 = vpop.f32.mrb[18].mxu1 }
 0x4a3   : > { %v5761_v47 = vpop.f32.mrb[19].mxu1 }
 0x4a4   : > { %v8753_v12 = vadd.f32 %v5698_v58, %v4009_v53  ;;  %v8756_v18 = vadd.f32 %v5759_v50, %v8628_v54  ;;  %v5762_v39 = vadd.f32 %v5761_v47, %v5760_v26 }
 0x4a6   : > { %v5699_v62 = vpop.f32.mrb[228].mxu0  ;;  %v8759_v63 = vadd.f32 %v5762_v39, %v8633_v44 }
 0x4a7   : > { %v5700_v1 = vpop.f32.mrb[229].mxu0 }
 0x4a8   : > { %v5701_v40 = vadd.f32 %v5700_v1, %v5699_v62  ;;  %v5702_v48 = vpop.f32.mrb[230].mxu0  ;;  %v5763_v60 = vpop.f32.mrb[20].mxu1 }
 0x4a9   : > { %v5703_v21 = vpop.f32.mrb[231].mxu0  ;;  %v5764_v13 = vpop.f32.mrb[21].mxu1 }
 0x4aa   : > { %v8765_v30 = vadd.f32 %v5701_v40, %v4014_v6  ;;  %v5704_v54 = vadd.f32 %v5703_v21, %v5702_v48  ;;  %v5765_v2 = vadd.f32 %v5764_v13, %v5763_v60  ;;  %v5766_v49 = vpop.f32.mrb[22].mxu1 }
 0x4ab   : > { %v5767_v44 = vpop.f32.mrb[23].mxu1 }
 0x4ac   : > { %v8767_v41 = vadd.f32 %v5704_v54, %v4017_v19  ;;  %v8770_v45 = vadd.f32 %v5765_v2, %v8642_v22  ;;  %v5768_v42 = vadd.f32 %v5767_v44, %v5766_v49 }
 0x4ae   : > { %v5833_v37 = vpop.f32.mrb[232].mxu0  ;;  %v8773_v31 = vadd.f32 %v5768_v42, %v8647_v0 }
 0x4af   : > { %v5834_v36 = vpop.f32.mrb[233].mxu0 }
 0x4b0   : > { %v5835_v24 = vadd.f32 %v5834_v36, %v5833_v37  ;;  %v5836_v28 = vpop.f32.mrb[234].mxu0  ;;  %v5769_v3 = vpop.f32.mrb[24].mxu1 }
 0x4b1   : > { %v5837_v59 = vpop.f32.mrb[235].mxu0  ;;  %v5770_v15 = vpop.f32.mrb[25].mxu1 }
 0x4b2   : > { %v5838_v10 = vadd.f32 %v5837_v59, %v5836_v28  ;;  %v8776_v33 = vadd.f32 %v5835_v24, %v8663_v17  ;;  %v5771_v53 = vadd.f32 %v5770_v15, %v5769_v3  ;;  %v5772_v58 = vpop.f32.mrb[26].mxu1 }
 0x4b3   : > { %v5773_v29 = vpop.f32.mrb[27].mxu1 }
 0x4b4   : > { %v8779_v22 = vadd.f32 %v5838_v10, %v8666_v8  ;;  %v8782_v50 = vadd.f32 %v5771_v53, %v8656_v16  ;;  %v5774_v0 = vadd.f32 %v5773_v29, %v5772_v58 }
 0x4b6   : > { %v5839_v26 = vpop.f32.mrb[236].mxu0  ;;  %v8785_v47 = vadd.f32 %v5774_v0, %v8659_v55 }
 0x4b7   : > { %v5840_v39 = vpop.f32.mrb[237].mxu0 }
 0x4b8   : > { %v5841_v62 = vadd.f32 %v5840_v39, %v5839_v26  ;;  %v5842_v1 = vpop.f32.mrb[238].mxu0  ;;  %v5775_v6 = vpop.f32.mrb[28].mxu1 }
 0x4b9   : > { %v5843_v17 = vpop.f32.mrb[239].mxu0  ;;  %v5776_v48 = vpop.f32.mrb[29].mxu1 }
 0x4ba   : > { %v5844_v40 = vadd.f32 %v5843_v17, %v5842_v1  ;;  %v8788_v21 = vadd.f32 %v5841_v62, %v8679_v25  ;;  %v5777_v8 = vadd.f32 %v5776_v48, %v5775_v6  ;;  %v5778_v60 = vpop.f32.mrb[30].mxu1 }
 0x4bb   : > { %v5779_v19 = vpop.f32.mrb[31].mxu1 }
 0x4bc   : > { %v8791_v16 = vadd.f32 %v5844_v40, %v8682_v23  ;;  %v8794_v54 = vadd.f32 %v5777_v8, %v8672_v38  ;;  %v5780_v55 = vadd.f32 %v5779_v19, %v5778_v60 }
 0x4be   : > { %v5845_v13 = vpop.f32.mrb[240].mxu0  ;;  %v8797_v2 = vadd.f32 %v5780_v55, %v8675_v7 }
 0x4bf   : > { %v5846_v49 = vpop.f32.mrb[241].mxu0 }
 0x4c0   : > { %v5847_v44 = vadd.f32 %v5846_v49, %v5845_v13  ;;  %v5848_v42 = vpop.f32.mrb[242].mxu0  ;;  %v5781_v37 = vpop.f32.mrb[32].mxu1 }
 0x4c1   : > { %v5849_v25 = vpop.f32.mrb[243].mxu0  ;;  %v5782_v24 = vpop.f32.mrb[33].mxu1 }
 0x4c2   : > { %v5850_v36 = vadd.f32 %v5849_v25, %v5848_v42  ;;  %v8800_v28 = vadd.f32 %v5847_v44, %v8695_v52  ;;  %v5783_v23 = vadd.f32 %v5782_v24, %v5781_v37  ;;  %v5784_v3 = vpop.f32.mrb[34].mxu1 }
 0x4c3   : > { %v5785_v59 = vpop.f32.mrb[35].mxu1 }
 0x4c4   : > { %v8803_v38 = vadd.f32 %v5850_v36, %v8698_v57  ;;  %v8806_v10 = vadd.f32 %v5783_v23, %v8688_v51  ;;  %v5786_v7 = vadd.f32 %v5785_v59, %v5784_v3 }
 0x4c6   : > { %v5851_v15 = vpop.f32.mrb[244].mxu0  ;;  %v8809_v53 = vadd.f32 %v5786_v7, %v8691_v61 }
 0x4c7   : > { %v5852_v58 = vpop.f32.mrb[245].mxu0 }
 0x4c8   : > { %v5853_v29 = vadd.f32 %v5852_v58, %v5851_v15  ;;  %v5854_v0 = vpop.f32.mrb[246].mxu0  ;;  %v5787_v26 = vpop.f32.mrb[36].mxu1 }
 0x4c9   : > { %v5855_v52 = vpop.f32.mrb[247].mxu0  ;;  %v5788_v62 = vpop.f32.mrb[37].mxu1 }
 0x4ca   : > { %v5856_v39 = vadd.f32 %v5855_v52, %v5854_v0  ;;  %v8812_v1 = vadd.f32 %v5853_v29, %v8711_v11  ;;  %v5789_v57 = vadd.f32 %v5788_v62, %v5787_v26  ;;  %v5790_v6 = vpop.f32.mrb[38].mxu1 }
 0x4cb   : > { %v5791_v17 = vpop.f32.mrb[39].mxu1 }
 0x4cc   : > { %v8815_v51 = vadd.f32 %v5856_v39, %v8714_v46  ;;  %v8818_v40 = vadd.f32 %v5789_v57, %v8704_v27  ;;  %v5792_v61 = vadd.f32 %v5791_v17, %v5790_v6 }
 0x4ce   : > { %v5857_v48 = vpop.f32.mrb[248].mxu0  ;;  %v8821_v8 = vadd.f32 %v5792_v61, %v8707_v14 }
 0x4cf   : > { %v5858_v60 = vpop.f32.mrb[249].mxu0 }
 0x4d0   : > { %v5859_v19 = vadd.f32 %v5858_v60, %v5857_v48  ;;  %v5860_v55 = vpop.f32.mrb[250].mxu0  ;;  %v5793_v13 = vpop.f32.mrb[40].mxu1 }
 0x4d1   : > { %v5861_v11 = vpop.f32.mrb[251].mxu0  ;;  %v5794_v44 = vpop.f32.mrb[41].mxu1 }
 0x4d2   : > { %v5862_v49 = vadd.f32 %v5861_v11, %v5860_v55  ;;  %v8824_v42 = vadd.f32 %v5859_v19, %v8728_v32  ;;  %v5795_v46 = vadd.f32 %v5794_v44, %v5793_v13  ;;  %v5796_v37 = vpop.f32.mrb[42].mxu1 }
 0x4d3   : > { %v5797_v25 = vpop.f32.mrb[43].mxu1 }
 0x4d4   : > { %v8827_v27 = vadd.f32 %v5862_v49, %v8731_v43  ;;  %v8830_v36 = vadd.f32 %v5795_v46, %v8720_v9  ;;  %v5798_v14 = vadd.f32 %v5797_v25, %v5796_v37 }
 0x4d6   : > { %v5863_v24 = vpop.f32.mrb[252].mxu0  ;;  %v8833_v23 = vadd.f32 %v5798_v14, %v8725_v35 }
 0x4d7   : > { %v5864_v3 = vpop.f32.mrb[253].mxu0 }
 0x4d8   : > { %v5865_v59 = vadd.f32 %v5864_v3, %v5863_v24  ;;  %v5866_v7 = vpop.f32.mrb[254].mxu0  ;;  %v5799_v15 = vpop.f32.mrb[44].mxu1 }
 0x4d9   : > { %v5867_v32 = vpop.f32.mrb[255].mxu0  ;;  %v5800_v29 = vpop.f32.mrb[45].mxu1 }
 0x4da   : > { %v5868_v58 = vadd.f32 %v5867_v32, %v5866_v7  ;;  %v8836_v0 = vadd.f32 %v5865_v59, %v8742_v20  ;;  %v5801_v43 = vadd.f32 %v5800_v29, %v5799_v15  ;;  %v5802_v26 = vpop.f32.mrb[46].mxu1 }
 0x4db   : > { %v5803_v52 = vpop.f32.mrb[47].mxu1 }
 0x4dc   : > { %v8839_v9 = vadd.f32 %v5868_v58, %v8745_v34  ;;  %v8842_v39 = vadd.f32 %v5801_v43, %v8737_v56  ;;  %v5804_v35 = vadd.f32 %v5803_v52, %v5802_v26 }
 0x4de   : > { %v5869_v62 = vpop.f32.mrb[0].mxu0  ;;  %v8845_v57 = vadd.f32 %v5804_v35, %v8739_v4 }
 0x4df   : > { %v5870_v6 = vpop.f32.mrb[1].mxu0 }
 0x4e0   : > { %v5871_v17 = vadd.f32 %v5870_v6, %v5869_v62  ;;  %v5872_v61 = vpop.f32.mrb[2].mxu0  ;;  %v5805_v48 = vpop.f32.mrb[48].mxu1 }
 0x4e1   : > { %v5873_v20 = vpop.f32.mrb[3].mxu0  ;;  %v5806_v19 = vpop.f32.mrb[49].mxu1 }
 0x4e2   : > { %v5874_v60 = vadd.f32 %v5873_v20, %v5872_v61  ;;  %v8848_v55 = vadd.f32 %v5871_v17, %v8756_v18  ;;  %v5807_v34 = vadd.f32 %v5806_v19, %v5805_v48  ;;  %v5808_v13 = vpop.f32.mrb[50].mxu1 }
 0x4e3   : > { %v5809_v11 = vpop.f32.mrb[51].mxu1 }
 0x4e4   : > { %v8851_v56 = vadd.f32 %v5874_v60, %v8759_v63  ;;  %v8854_v49 = vadd.f32 %v5807_v34, %v8751_v5  ;;  %v5810_v4 = vadd.f32 %v5809_v11, %v5808_v13 }
 0x4e6   : > { %v5875_v44 = vpop.f32.mrb[4].mxu0  ;;  %v8857_v46 = vadd.f32 %v5810_v4, %v8753_v12 }
 0x4e7   : > { %v5876_v37 = vpop.f32.mrb[5].mxu0 }
 0x4e8   : > { %v5877_v25 = vadd.f32 %v5876_v37, %v5875_v44  ;;  %v5878_v14 = vpop.f32.mrb[6].mxu0  ;;  %v5811_v24 = vpop.f32.mrb[52].mxu1 }
 0x4e9   : > { %v5879_v18 = vpop.f32.mrb[7].mxu0  ;;  %v5812_v59 = vpop.f32.mrb[53].mxu1 }
 0x4ea   : > { %v5880_v3 = vadd.f32 %v5879_v18, %v5878_v14  ;;  %v8860_v7 = vadd.f32 %v5877_v25, %v8770_v45  ;;  %v5813_v63 = vadd.f32 %v5812_v59, %v5811_v24  ;;  %v5814_v15 = vpop.f32.mrb[54].mxu1 }
 0x4eb   : > { %v5815_v32 = vpop.f32.mrb[55].mxu1 }
 0x4ec   : > { %v8863_v5 = vadd.f32 %v5880_v3, %v8773_v31  ;;  %v8866_v58 = vadd.f32 %v5813_v63, %v8765_v30  ;;  %v5816_v12 = vadd.f32 %v5815_v32, %v5814_v15 }
 0x4ee   : > { %v5881_v29 = vpop.f32.mrb[8].mxu0  ;;  %v8869_v43 = vadd.f32 %v5816_v12, %v8767_v41 }
 0x4ef   : > { %v5882_v26 = vpop.f32.mrb[9].mxu0 }
 0x4f0   : > { %v5883_v52 = vadd.f32 %v5882_v26, %v5881_v29  ;;  %v5884_v35 = vpop.f32.mrb[10].mxu0 }
 0x4f1   : > { %v5885_v62 = vpop.f32.mrb[11].mxu0 }
 0x4f2   : > { %v5886_v45 = vadd.f32 %v5885_v62, %v5884_v35  ;;  %v8872_v6 = vadd.f32 %v5883_v52, %v8782_v50 }
 0x4f4   : > { %v8875_v17 = vadd.f32 %v5886_v45, %v8785_v47 }
 0x4f6   : > { %v5887_v31 = vpop.f32.mrb[12].mxu0 }
 0x4f7   : > { %v5888_v61 = vpop.f32.mrb[13].mxu0 }
 0x4f8   : > { %v5889_v30 = vadd.f32 %v5888_v61, %v5887_v31  ;;  %v5890_v48 = vpop.f32.mrb[14].mxu0 }
 0x4f9   : > { %v5891_v20 = vpop.f32.mrb[15].mxu0 }
 0x4fa   : > { %v5892_v60 = vadd.f32 %v5891_v20, %v5890_v48  ;;  %v8878_v41 = vadd.f32 %v5889_v30, %v8794_v54 }
 0x4fc   : > { %v8881_v19 = vadd.f32 %v5892_v60, %v8797_v2 }
 0x4fe   : > { %v5893_v34 = vpop.f32.mrb[16].mxu0 }
 0x4ff   : > { %v5894_v13 = vpop.f32.mrb[17].mxu0 }
 0x500   : > { %v5895_v11 = vadd.f32 %v5894_v13, %v5893_v34  ;;  %v5896_v50 = vpop.f32.mrb[18].mxu0 }
 0x501   : > { %v5897_v4 = vpop.f32.mrb[19].mxu0 }
 0x502   : > { %v5898_v44 = vadd.f32 %v5897_v4, %v5896_v50  ;;  %v8884_v47 = vadd.f32 %v5895_v11, %v8806_v10 }
 0x504   : > { %v8887_v37 = vadd.f32 %v5898_v44, %v8809_v53 }
 0x506   : > { %v5899_v25 = vpop.f32.mrb[20].mxu0 }
 0x507   : > { %v5900_v14 = vpop.f32.mrb[21].mxu0 }
 0x508   : > { %v5901_v24 = vadd.f32 %v5900_v14, %v5899_v25  ;;  %v5902_v54 = vpop.f32.mrb[22].mxu0 }
 0x509   : > { %v5903_v18 = vpop.f32.mrb[23].mxu0 }
 0x50a   : > { %v5904_v3 = vadd.f32 %v5903_v18, %v5902_v54  ;;  %v8890_v2 = vadd.f32 %v5901_v24, %v8818_v40 }
 0x50c   : > { %v8893_v59 = vadd.f32 %v5904_v3, %v8821_v8 }
 0x50e   : > { %v5905_v63 = vpop.f32.mrb[24].mxu0 }
 0x50f   : > { %v5906_v15 = vpop.f32.mrb[25].mxu0 }
 0x510   : > { %v5907_v32 = vadd.f32 %v5906_v15, %v5905_v63  ;;  %v5908_v10 = vpop.f32.mrb[26].mxu0 }
 0x511   : > { %v5909_v12 = vpop.f32.mrb[27].mxu0 }
 0x512   : > { %v5910_v29 = vadd.f32 %v5909_v12, %v5908_v10  ;;  %v8896_v53 = vadd.f32 %v5907_v32, %v8830_v36 }
 0x514   : > { %v8899_v26 = vadd.f32 %v5910_v29, %v8833_v23 }
 0x516   : > { %v5911_v52 = vpop.f32.mrb[28].mxu0 }
 0x517   : > { %v5912_v35 = vpop.f32.mrb[29].mxu0 }
 0x518   : > { %v5913_v62 = vadd.f32 %v5912_v35, %v5911_v52  ;;  %v5914_v40 = vpop.f32.mrb[30].mxu0 }
 0x519   : > { %v5915_v45 = vpop.f32.mrb[31].mxu0 }
 0x51a   : > { %v5916_v31 = vadd.f32 %v5915_v45, %v5914_v40  ;;  %v8902_v8 = vadd.f32 %v5913_v62, %v8842_v39 }
 0x51c   : > { %v8905_v61 = vadd.f32 %v5916_v31, %v8845_v57 }
 0x51e   : > { %v5917_v30 = vpop.f32.mrb[32].mxu0 }
 0x51f   : > { %v5918_v48 = vpop.f32.mrb[33].mxu0 }
 0x520   : > { %v5919_v20 = vadd.f32 %v5918_v48, %v5917_v30  ;;  %v5920_v36 = vpop.f32.mrb[34].mxu0 }
 0x521   : > { %v5921_v60 = vpop.f32.mrb[35].mxu0 }
 0x522   : > { %v5922_v34 = vadd.f32 %v5921_v60, %v5920_v36  ;;  %v8908_v23 = vadd.f32 %v5919_v20, %v8854_v49 }
 0x524   : > { %v8911_v13 = vadd.f32 %v5922_v34, %v8857_v46 }
 0x526   : > { %v5923_v11 = vpop.f32.mrb[36].mxu0 }
 0x527   : > { %v5924_v39 = vpop.f32.mrb[37].mxu0 }
 0x528   : > { %v5925_v50 = vadd.f32 %v5924_v39, %v5923_v11  ;;  %v5926_v57 = vpop.f32.mrb[38].mxu0 }
 0x529   : > { %v5927_v4 = vpop.f32.mrb[39].mxu0 }
 0x52a   : > { %v5928_v44 = vadd.f32 %v5927_v4, %v5926_v57  ;;  %v8914_v25 = vadd.f32 %v5925_v50, %v8866_v58 }
 0x52c   : > { %v8917_v14 = vadd.f32 %v5928_v44, %v8869_v43 }
 0x52e   : > { %v6101_v49 = vpop.f32.mrb[136].mxu0 }
 0x52f   : > { %v4546_v24 = vadd.f32 %v6101_v49, %v8788_v21  ;;  %v4537_v46 = vpop.f32.mrb[137].mxu0 }
 0x530   : > { %v4538_v54 = vadd.f32 %v4537_v46, %v8776_v33  ;;  %v6102_v18 = vpop.f32.mrb[138].mxu0 }
 0x531   : > { %4698 = vst [vmem:[%s6475_s14 + $0x10] sm:$0xff] %v4546_v24  ;;  %v4549_v3 = vadd.f32 %v6102_v18, %v8791_v16  ;;  %v4540_v63 = vpop.f32.mrb[139].mxu0 }
 0x532   : > { %4696 = vst [vmem:[%s6475_s14] sm:$0xff] %v4538_v54  ;;  %v4541_v58 = vadd.f32 %v4540_v63, %v8779_v22 }
 0x533   : > { %4699 = vst [vmem:[%s6475_s14 + $0x18] sm:$0xff] %v4549_v3 }
 0x534   : > { %4697 = vst [vmem:[%s6475_s14 + $0x8] sm:$0xff] %v4541_v58 }
 0x536   : > { %v6105_v43 = vpop.f32.mrb[140].mxu0 }
 0x537   : > { %v4562_v21 = vadd.f32 %v6105_v43, %v8812_v1  ;;  %v4553_v15 = vpop.f32.mrb[141].mxu0 }
 0x538   : > { %v4554_v33 = vadd.f32 %v4553_v15, %v8800_v28  ;;  %v6106_v32 = vpop.f32.mrb[142].mxu0 }
 0x539   : > { %4702 = vst [vmem:[%s6475_s14 + $0x30] sm:$0xff] %v4562_v21  ;;  %v4565_v16 = vadd.f32 %v6106_v32, %v8815_v51  ;;  %v4556_v10 = vpop.f32.mrb[143].mxu0 }
 0x53a   : > { %4700 = vst [vmem:[%s6475_s14 + $0x20] sm:$0xff] %v4554_v33  ;;  %v4557_v22 = vadd.f32 %v4556_v10, %v8803_v38 }
 0x53b   : > { %4703 = vst [vmem:[%s6475_s14 + $0x38] sm:$0xff] %v4565_v16 }
 0x53c   : > { %4701 = vst [vmem:[%s6475_s14 + $0x28] sm:$0xff] %v4557_v22 }
 0x53e   : > { %v6109_v12 = vpop.f32.mrb[144].mxu0 }
 0x53f   : > { %v4578_v1 = vadd.f32 %v6109_v12, %v8836_v0  ;;  %v4569_v29 = vpop.f32.mrb[145].mxu0 }
 0x540   : > { %v4570_v28 = vadd.f32 %v4569_v29, %v8824_v42  ;;  %v6110_v52 = vpop.f32.mrb[146].mxu0 }
 0x541   : > { %4706 = vst [vmem:[%s6475_s14 + $0x50] sm:$0xff] %v4578_v1  ;;  %v4581_v51 = vadd.f32 %v6110_v52, %v8839_v9  ;;  %v4572_v35 = vpop.f32.mrb[147].mxu0 }
 0x542   : > { %4704 = vst [vmem:[%s6475_s14 + $0x40] sm:$0xff] %v4570_v28  ;;  %v4573_v38 = vadd.f32 %v4572_v35, %v8827_v27 }
 0x543   : > { %4707 = vst [vmem:[%s6475_s14 + $0x58] sm:$0xff] %v4581_v51 }
 0x544   : > { %4705 = vst [vmem:[%s6475_s14 + $0x48] sm:$0xff] %v4573_v38 }
 0x546   : > { %v6113_v62 = vpop.f32.mrb[148].mxu0 }
 0x547   : > { %v4594_v0 = vadd.f32 %v6113_v62, %v8860_v7  ;;  %v4585_v40 = vpop.f32.mrb[149].mxu0 }
 0x548   : > { %v4586_v42 = vadd.f32 %v4585_v40, %v8848_v55  ;;  %v6114_v45 = vpop.f32.mrb[150].mxu0 }
 0x549   : > { %4710 = vst [vmem:[%s6475_s14 + $0x70] sm:$0xff] %v4594_v0  ;;  %v4597_v9 = vadd.f32 %v6114_v45, %v8863_v5  ;;  %v4588_v31 = vpop.f32.mrb[151].mxu0 }
 0x54a   : > { %4708 = vst [vmem:[%s6475_s14 + $0x60] sm:$0xff] %v4586_v42  ;;  %v4589_v27 = vadd.f32 %v4588_v31, %v8851_v56 }
 0x54b   : > { %4711 = vst [vmem:[%s6475_s14 + $0x78] sm:$0xff] %v4597_v9 }
 0x54c   : > { %4709 = vst [vmem:[%s6475_s14 + $0x68] sm:$0xff] %v4589_v27 }
 0x54e   : > { %v6117_v30 = vpop.f32.mrb[152].mxu0 }
 0x54f   : > { %v4610_v7 = vadd.f32 %v6117_v30, %v8878_v41  ;;  %v4601_v48 = vpop.f32.mrb[153].mxu0 }
 0x550   : > { %v4602_v55 = vadd.f32 %v4601_v48, %v8872_v6  ;;  %v6118_v20 = vpop.f32.mrb[154].mxu0 }
 0x551   : > { %4714 = vst [vmem:[%s6475_s14 + $0x90] sm:$0xff] %v4610_v7  ;;  %v4613_v5 = vadd.f32 %v6118_v20, %v8881_v19  ;;  %v4604_v36 = vpop.f32.mrb[155].mxu0 }
 0x552   : > { %4712 = vst [vmem:[%s6475_s14 + $0x80] sm:$0xff] %v4602_v55  ;;  %v4605_v56 = vadd.f32 %v4604_v36, %v8875_v17 }
 0x553   : > { %4715 = vst [vmem:[%s6475_s14 + $0x98] sm:$0xff] %v4613_v5 }
 0x554   : > { %4713 = vst [vmem:[%s6475_s14 + $0x88] sm:$0xff] %v4605_v56 }
 0x556   : > { %v6121_v60 = vpop.f32.mrb[156].mxu0 }
 0x557   : > { %v4626_v41 = vadd.f32 %v6121_v60, %v8890_v2  ;;  %v4617_v34 = vpop.f32.mrb[157].mxu0 }
 0x558   : > { %v4618_v6 = vadd.f32 %v4617_v34, %v8884_v47  ;;  %v6122_v11 = vpop.f32.mrb[158].mxu0 }
 0x559   : > { %4718 = vst [vmem:[%s6475_s14 + $0xb0] sm:$0xff] %v4626_v41  ;;  %v4629_v19 = vadd.f32 %v6122_v11, %v8893_v59  ;;  %v4620_v39 = vpop.f32.mrb[159].mxu0 }
 0x55a   : > { %4716 = vst [vmem:[%s6475_s14 + $0xa0] sm:$0xff] %v4618_v6  ;;  %v4621_v17 = vadd.f32 %v4620_v39, %v8887_v37 }
 0x55b   : > { %4719 = vst [vmem:[%s6475_s14 + $0xb8] sm:$0xff] %v4629_v19 }
 0x55c   : > { %4717 = vst [vmem:[%s6475_s14 + $0xa8] sm:$0xff] %v4621_v17 }
 0x55e   : > { %v6125_v50 = vpop.f32.mrb[160].mxu0 }
 0x55f   : > { %v4642_v2 = vadd.f32 %v6125_v50, %v8902_v8  ;;  %v4633_v57 = vpop.f32.mrb[161].mxu0 }
 0x560   : > { %v4634_v47 = vadd.f32 %v4633_v57, %v8896_v53  ;;  %v6126_v4 = vpop.f32.mrb[162].mxu0 }
 0x561   : > { %4722 = vst [vmem:[%s6475_s14 + $0xd0] sm:$0xff] %v4642_v2  ;;  %v4645_v59 = vadd.f32 %v6126_v4, %v8905_v61  ;;  %v4636_v44 = vpop.f32.mrb[163].mxu0 }
 0x562   : > { %4720 = vst [vmem:[%s6475_s14 + $0xc0] sm:$0xff] %v4634_v47  ;;  %v4637_v37 = vadd.f32 %v4636_v44, %v8899_v26 }
 0x563   : > { %4723 = vst [vmem:[%s6475_s14 + $0xd8] sm:$0xff] %v4645_v59 }
 0x564   : > { %4721 = vst [vmem:[%s6475_s14 + $0xc8] sm:$0xff] %v4637_v37 }
 0x566   : > { %v6129_v49 = vpop.f32.mrb[164].mxu0 }
 0x567   : > { %v4658_v8 = vadd.f32 %v6129_v49, %v8914_v25  ;;  %v4649_v24 = vpop.f32.mrb[165].mxu0 }
 0x568   : > { %v4650_v46 = vadd.f32 %v4649_v24, %v8908_v23  ;;  %v6130_v53 = vpop.f32.mrb[166].mxu0 }
 0x569   : > { %4726 = vst [vmem:[%s6475_s14 + $0xf0] sm:$0xff] %v4658_v8  ;;  %v4661_v54 = vadd.f32 %v6130_v53, %v8917_v14  ;;  %v4652_v18 = vpop.f32.mrb[167].mxu0 }
 0x56a   : > { %4724 = vst [vmem:[%s6475_s14 + $0xe0] sm:$0xff] %v4650_v46  ;;  %v4653_v61 = vadd.f32 %v4652_v18, %v8911_v13 }
 0x56b   : > { %4727 = vst [vmem:[%s6475_s14 + $0xf8] sm:$0xff] %v4661_v54 }
 0x56c   : > { %4725 = vst [vmem:[%s6475_s14 + $0xe8] sm:$0xff] %v4653_v61 }
 0x56d PF: > { %s18_s27 = sadd.s32 1, %s6411_s27  }
 0x56e   : > { %p15_p5 = scmp.ge.s32.totalorder %s18_s27, 4  }
 0x570   :  { %17 = sbr.rel (!%p15_p5) target bundleno = 1 (0x1), region = 88 }

</bundles_post_ra>
